<compile_context>
chip_gen: v6e
topology: v6e:2x2x1
jax: 0.10.0
libtpu: 0.0.40
codegen_flags: <defaults>
</compile_context>

<pallas_src>
import functools

import jax
import jax.numpy as jnp
import numpy as np
from jax.experimental import pallas as pl
from jax.experimental.pallas import tpu as pltpu

NEG_SLOPE = 0.01  # PyTorch nn.LeakyReLU() default


def _round_up(x, m):
    return ((x + m - 1) // m) * m


# ----------------------------------------------------------------------------
# Fused matmul + bias + activation Pallas kernel (bf16 operands, f32 accumulate)
# ----------------------------------------------------------------------------
def _matmul_bias_act_pallas(a, b, bias, act):
    """act((a @ b) + bias).  a:(M,K) f32, b:(K,N) f32, bias:(N,) f32 -> (M,N) f32."""
    M, K = a.shape
    K2, N = b.shape
    assert K == K2, (K, K2)

    # ---- tile selection (sublane/lane aligned, VMEM-safe, megacore-friendly)
    tm = 128 if M >= 128 else _round_up(M, 8)
    M_pad = _round_up(M, tm)
    N_pad = _round_up(N, 128)

    if M_pad // tm >= 2:
        tn = 512                      # M already gives >=2 parallel programs
    else:
        tn = 128 if N_pad >= 256 else N_pad   # split N so v7x gets 2 cores busy
    while tn > N_pad or N_pad % tn != 0:
        tn //= 2

    if K <= 4096:
        K_pad = _round_up(K, 128)
        tk = K_pad
    else:
        K_pad = _round_up(K, 4096)
        tk = 4096

    grid = (M_pad // tm, N_pad // tn, K_pad // tk)

    # ---- pad + cast (zero padding is exact for the dot product)
    a_p = jnp.pad(a, ((0, M_pad - M), (0, K_pad - K))).astype(jnp.bfloat16)
    b_p = jnp.pad(b, ((0, K_pad - K), (0, N_pad - N))).astype(jnp.bfloat16)
    bias_p = jnp.pad(jnp.asarray(bias, jnp.float32), (0, N_pad - N)).reshape(1, N_pad)

    def kernel(a_ref, b_ref, t_ref, o_ref, acc_ref):
        @pl.when(pl.program_id(2) == 0)
        def _():
            acc_ref[...] = jnp.zeros_like(acc_ref)

        acc_ref[...] += jnp.dot(a_ref[...], b_ref[...],
                                preferred_element_type=jnp.float32)

        @pl.when(pl.program_id(2) == pl.num_programs(2) - 1)
        def _():
            y = acc_ref[...] + t_ref[...]
            if act == "leaky_relu":
                y = jnp.maximum(y, NEG_SLOPE * y)
            o_ref[...] = y.astype(o_ref.dtype)

    out = pl.pallas_call(
        kernel,
        out_shape=jax.ShapeDtypeStruct((M_pad, N_pad), jnp.float32),
        grid_spec=pltpu.PrefetchScalarGridSpec(
            num_scalar_prefetch=0,
            grid=grid,
            in_specs=[
                pl.BlockSpec((tm, tk), lambda i, j, k: (i, k)),
                pl.BlockSpec((tk, tn), lambda i, j, k: (k, j)),
                pl.BlockSpec((1, tn), lambda i, j, k: (0, j)),
            ],
            out_specs=pl.BlockSpec((tm, tn), lambda i, j, k: (i, j)),
            scratch_shapes=[pltpu.VMEM((tm, tn), jnp.float32)],
        ),
        compiler_params=pltpu.CompilerParams(
            dimension_semantics=("parallel", "parallel", "arbitrary"),
            vmem_limit_bytes=48 * 1024 * 1024,   # fits v7x's 64 MiB VMEM
        ),
    )(a_p, b_p, bias_p)
    return out[:M, :N]


# ----------------------------------------------------------------------------
# Conv2d(k=3, s=2, p=1) as im2col + fused matmul (NHWC)
# ----------------------------------------------------------------------------
def _im2col_k3s2p1(x):
    """x: (N, H, W, C) -> (N*Ho*Wo, 9*C), stride-2, pad-1, 3x3."""
    N, H, W, C = x.shape
    Ho, Wo = H // 2, W // 2
    xp = jnp.pad(x, ((0, 0), (1, 1), (1, 1), (0, 0)))
    cols = []
    for dh in range(3):
        for dw in range(3):
            cols.append(xp[:, dh:dh + 2 * Ho:2, dw:dw + 2 * Wo:2, :])
    patches = jnp.stack(cols, axis=3)                  # (N, Ho, Wo, 9, C)
    return patches.reshape(N * Ho * Wo, 9 * C), (N, Ho, Wo)


def conv_s2_fused(x, w_pt, bias, act):
    """x: NHWC, w_pt: (C_out, C_in, 3, 3) (PyTorch layout)."""
    C_out = w_pt.shape[0]
    patches, (N, Ho, Wo) = _im2col_k3s2p1(x)
    w_mat = jnp.transpose(w_pt, (2, 3, 1, 0)).reshape(-1, C_out)   # (9*C_in, C_out)
    out = _matmul_bias_act_pallas(patches, w_mat, bias, act)
    return out.reshape(N, Ho, Wo, C_out)


# ----------------------------------------------------------------------------
# Parameters and forward pass
# ----------------------------------------------------------------------------
def init_params(key):
    dim = 128
    keys = iter(jax.random.split(key, 16))

    def w(shape, std=0.02):
        return std * jax.random.normal(next(keys), shape, jnp.float32)

    p = {}
    p["c1_w"] = w((dim, 3, 3, 3));           p["c1_b"] = w((dim,))
    p["c2_w"] = w((2 * dim, dim, 3, 3));     p["c2_b"] = w((2 * dim,))
    p["c3_w"] = w((4 * dim, 2 * dim, 3, 3)); p["c3_b"] = w((4 * dim,))
    fc = w((1, 4 * 4 * 4 * dim), std=1.0)
    # normalize_final_linear(): F.normalize(weight, p=2, dim=1)
    p["fc_w"] = fc / jnp.linalg.norm(fc, axis=1, keepdims=True)
    p["fc_b"] = w((1,))
    return p


def discriminator_forward(img, p):
    x = img.reshape(-1, 3, 32, 32).transpose(0, 2, 3, 1)            # NHWC
    x = conv_s2_fused(x, p["c1_w"], p["c1_b"], "leaky_relu")        # (N, 16, 16, 128)
    x = conv_s2_fused(x, p["c2_w"], p["c2_b"], "leaky_relu")        # (N,  8,  8, 256)
    x = conv_s2_fused(x, p["c3_w"], p["c3_b"], "leaky_relu")        # (N,  4,  4, 512)
    N = x.shape[0]
    x = x.transpose(0, 3, 1, 2).reshape(N, -1)   # NCHW flatten = PyTorch .view order
    return _matmul_bias_act_pallas(x, p["fc_w"].T, p["fc_b"], "none")   # (N, 1)


def discriminator_ref(img, p):
    """Pure-JAX reference (lax conv) of the same forward pass."""
    x = img.reshape(-1, 3, 32, 32)

    def conv(x, w, b):
        y = jax.lax.conv_general_dilated(
            x, w, window_strides=(2, 2), padding=((1, 1), (1, 1)),
            dimension_numbers=("NCHW", "OIHW", "NCHW"))
        return jax.nn.leaky_relu(y + b.reshape(1, -1, 1, 1), negative_slope=NEG_SLOPE)

    x = conv(x, p["c1_w"], p["c1_b"])
    x = conv(x, p["c2_w"], p["c2_b"])
    x = conv(x, p["c3_w"], p["c3_b"])
    x = x.reshape(x.shape[0], -1)
    return x @ p["fc_w"].T + p["fc_b"]


if __name__ == "__main__":
    batch = 2
    key = jax.random.PRNGKey(0)
    k_img, k_p = jax.random.split(key)
    img = jax.random.normal(k_img, (batch, 3, 32, 32), jnp.float32)
    params = init_params(k_p)

    fwd = jax.jit(discriminator_forward)
    out = jax.block_until_ready(fwd(img, params))
    assert out.shape == (batch, 1), out.shape
    assert out.dtype == jnp.float32

    ref = jax.block_until_ready(jax.jit(discriminator_ref)(img, params))
    np.testing.assert_allclose(np.asarray(out), np.asarray(ref), atol=1e-2, rtol=5e-2)
    assert np.isfinite(np.asarray(out)).all()

    print("KERNEL_OK")
</pallas_src>

<mosaic_0001>
module attributes {stable_mosaic.version = 11 : i64} {
  func.func @kernel(%arg0: i32, %arg1: i32, %arg2: i32, %arg3: memref<128x128xbf16, #tpu.memory_space<vmem>>, %arg4: memref<128x128xbf16, #tpu.memory_space<vmem>>, %arg5: memref<1x128xf32, #tpu.memory_space<vmem>>, %arg6: memref<128x128xf32, #tpu.memory_space<vmem>>, %arg7: memref<128x128xf32, #tpu.memory_space<vmem>>) attributes {dimension_semantics = [#tpu.dimension_semantics<parallel>, #tpu.dimension_semantics<parallel>, #tpu.dimension_semantics<arbitrary>], iteration_bounds = array<i64: 4, 1, 1>, scalar_prefetch = 0 : i64, scratch_operands = 1 : i64, tpu.core_type = #tpu.core_type<tc>, window_params = [{transform_indices = @transform_0, window_bounds = array<i64: 128, 128>}, {transform_indices = @transform_1, window_bounds = array<i64: 128, 128>}, {transform_indices = @transform_2, window_bounds = array<i64: 1, 128>}, {transform_indices = @transform_3, window_bounds = array<i64: 128, 128>}]} {
    %c0_i32 = arith.constant 0 : i32
    %0 = arith.cmpi eq, %arg2, %c0_i32 : i32
    %1 = arith.extui %0 : i1 to i32
    %c0_i32_0 = arith.constant 0 : i32
    %2 = arith.cmpi ne, %1, %c0_i32_0 : i32
    scf.if %2 {
      %cst_10 = arith.constant 0.000000e+00 : f32
      %12 = vector.broadcast %cst_10 : f32 to vector<128x128xf32>
      %c0_11 = arith.constant 0 : index
      %c0_12 = arith.constant 0 : index
      %13 = vector.load %arg7[%c0_11, %c0_12] : memref<128x128xf32, #tpu.memory_space<vmem>>, vector<128x128xf32>
      tpu.vector_store %arg7[%c0_11, %c0_12], %12 {strides = array<i32>} : memref<128x128xf32, #tpu.memory_space<vmem>>, vector<128x128xf32>,
    } else {
    }
    %c0 = arith.constant 0 : index
    %c0_1 = arith.constant 0 : index
    %3 = vector.load %arg7[%c0, %c0_1] : memref<128x128xf32, #tpu.memory_space<vmem>>, vector<128x128xf32>
    %c0_2 = arith.constant 0 : index
    %c0_3 = arith.constant 0 : index
    %4 = vector.load %arg3[%c0_2, %c0_3] : memref<128x128xbf16, #tpu.memory_space<vmem>>, vector<128x128xbf16>
    %c0_4 = arith.constant 0 : index
    %c0_5 = arith.constant 0 : index
    %5 = vector.load %arg4[%c0_4, %c0_5] : memref<128x128xbf16, #tpu.memory_space<vmem>>, vector<128x128xbf16>
    %cst = arith.constant dense<0.000000e+00> : vector<128x128xf32>
    %6 = tpu.matmul %4, %5, %cst {dimension_numbers = #tpu.dot_dimension_numbers<[1], [0], [0], [1], [0, 0, 1, 1], [], []>} : vector<128x128xbf16>, vector<128x128xbf16>, vector<128x128xf32> -> vector<128x128xf32>
    %7 = arith.addf %3, %6 : vector<128x128xf32>
    %c0_6 = arith.constant 0 : index
    %c0_7 = arith.constant 0 : index
    %8 = vector.load %arg7[%c0_6, %c0_7] : memref<128x128xf32, #tpu.memory_space<vmem>>, vector<128x128xf32>
    tpu.vector_store %arg7[%c0_6, %c0_7], %7 {strides = array<i32>} : memref<128x128xf32, #tpu.memory_space<vmem>>, vector<128x128xf32>,
    %c0_i32_8 = arith.constant 0 : i32
    %9 = arith.cmpi eq, %arg2, %c0_i32_8 : i32
    %10 = arith.extui %9 : i1 to i32
    %c0_i32_9 = arith.constant 0 : i32
    %11 = arith.cmpi ne, %10, %c0_i32_9 : i32
    scf.if %11 {
      %c0_10 = arith.constant 0 : index
      %c0_11 = arith.constant 0 : index
      %12 = vector.load %arg7[%c0_10, %c0_11] : memref<128x128xf32, #tpu.memory_space<vmem>>, vector<128x128xf32>
      %c0_12 = arith.constant 0 : index
      %c0_13 = arith.constant 0 : index
      %13 = vector.load %arg5[%c0_12, %c0_13] : memref<1x128xf32, #tpu.memory_space<vmem>>, vector<1x128xf32>
      %14 = vector.broadcast %13 : vector<1x128xf32> to vector<128x128xf32>
      %15 = arith.addf %12, %14 : vector<128x128xf32>
      %cst_14 = arith.constant 0.00999999977 : f32
      %16 = vector.broadcast %cst_14 : f32 to vector<128x128xf32>
      %17 = arith.mulf %16, %15 : vector<128x128xf32>
      %18 = arith.maximumf %15, %17 : vector<128x128xf32>
      %c0_15 = arith.constant 0 : index
      %c0_16 = arith.constant 0 : index
      %19 = vector.load %arg6[%c0_15, %c0_16] : memref<128x128xf32, #tpu.memory_space<vmem>>, vector<128x128xf32>
      tpu.vector_store %arg6[%c0_15, %c0_16], %18 {strides = array<i32>} : memref<128x128xf32, #tpu.memory_space<vmem>>, vector<128x128xf32>,
    } else {
    }
    return
  }
  func.func @transform_0(%arg0: i32, %arg1: i32, %arg2: i32) -> (i32, i32) {
    %c0_i32 = arith.constant 0 : i32
    return %arg0, %arg2 : i32, i32
  }
  func.func @transform_1(%arg0: i32, %arg1: i32, %arg2: i32) -> (i32, i32) {
    %c0_i32 = arith.constant 0 : i32
    return %arg2, %arg1 : i32, i32
  }
  func.func @transform_2(%arg0: i32, %arg1: i32, %arg2: i32) -> (i32, i32) {
    %c0_i32 = arith.constant 0 : i32
    %c0_i32_0 = arith.constant 0 : i32
    return %c0_i32, %arg1 : i32, i32
  }
  func.func @transform_3(%arg0: i32, %arg1: i32, %arg2: i32) -> (i32, i32) {
    %c0_i32 = arith.constant 0 : i32
    return %arg0, %arg1 : i32, i32
  }
}

module attributes {stable_mosaic.version = 11 : i64} {
  func.func @kernel(%arg0: i32, %arg1: i32, %arg2: i32, %arg3: memref<128x1152xbf16, #tpu.memory_space<vmem>>, %arg4: memref<1152x128xbf16, #tpu.memory_space<vmem>>, %arg5: memref<1x128xf32, #tpu.memory_space<vmem>>, %arg6: memref<128x128xf32, #tpu.memory_space<vmem>>, %arg7: memref<128x128xf32, #tpu.memory_space<vmem>>) attributes {dimension_semantics = [#tpu.dimension_semantics<parallel>, #tpu.dimension_semantics<parallel>, #tpu.dimension_semantics<arbitrary>], iteration_bounds = array<i64: 1, 2, 1>, scalar_prefetch = 0 : i64, scratch_operands = 1 : i64, tpu.core_type = #tpu.core_type<tc>, window_params = [{transform_indices = @transform_0, window_bounds = array<i64: 128, 1152>}, {transform_indices = @transform_1, window_bounds = array<i64: 1152, 128>}, {transform_indices = @transform_2, window_bounds = array<i64: 1, 128>}, {transform_indices = @transform_3, window_bounds = array<i64: 128, 128>}]} {
    %c0_i32 = arith.constant 0 : i32
    %0 = arith.cmpi eq, %arg2, %c0_i32 : i32
    %1 = arith.extui %0 : i1 to i32
    %c0_i32_0 = arith.constant 0 : i32
    %2 = arith.cmpi ne, %1, %c0_i32_0 : i32
    scf.if %2 {
      %cst_10 = arith.constant 0.000000e+00 : f32
      %12 = vector.broadcast %cst_10 : f32 to vector<128x128xf32>
      %c0_11 = arith.constant 0 : index
      %c0_12 = arith.constant 0 : index
      %13 = vector.load %arg7[%c0_11, %c0_12] : memref<128x128xf32, #tpu.memory_space<vmem>>, vector<128x128xf32>
      tpu.vector_store %arg7[%c0_11, %c0_12], %12 {strides = array<i32>} : memref<128x128xf32, #tpu.memory_space<vmem>>, vector<128x128xf32>,
    } else {
    }
    %c0 = arith.constant 0 : index
    %c0_1 = arith.constant 0 : index
    %3 = vector.load %arg7[%c0, %c0_1] : memref<128x128xf32, #tpu.memory_space<vmem>>, vector<128x128xf32>
    %c0_2 = arith.constant 0 : index
    %c0_3 = arith.constant 0 : index
    %4 = vector.load %arg3[%c0_2, %c0_3] : memref<128x1152xbf16, #tpu.memory_space<vmem>>, vector<128x1152xbf16>
    %c0_4 = arith.constant 0 : index
    %c0_5 = arith.constant 0 : index
    %5 = vector.load %arg4[%c0_4, %c0_5] : memref<1152x128xbf16, #tpu.memory_space<vmem>>, vector<1152x128xbf16>
    %cst = arith.constant dense<0.000000e+00> : vector<128x128xf32>
    %6 = tpu.matmul %4, %5, %cst {dimension_numbers = #tpu.dot_dimension_numbers<[1], [0], [0], [1], [0, 0, 1, 1], [], []>} : vector<128x1152xbf16>, vector<1152x128xbf16>, vector<128x128xf32> -> vector<128x128xf32>
    %7 = arith.addf %3, %6 : vector<128x128xf32>
    %c0_6 = arith.constant 0 : index
    %c0_7 = arith.constant 0 : index
    %8 = vector.load %arg7[%c0_6, %c0_7] : memref<128x128xf32, #tpu.memory_space<vmem>>, vector<128x128xf32>
    tpu.vector_store %arg7[%c0_6, %c0_7], %7 {strides = array<i32>} : memref<128x128xf32, #tpu.memory_space<vmem>>, vector<128x128xf32>,
    %c0_i32_8 = arith.constant 0 : i32
    %9 = arith.cmpi eq, %arg2, %c0_i32_8 : i32
    %10 = arith.extui %9 : i1 to i32
    %c0_i32_9 = arith.constant 0 : i32
    %11 = arith.cmpi ne, %10, %c0_i32_9 : i32
    scf.if %11 {
      %c0_10 = arith.constant 0 : index
      %c0_11 = arith.constant 0 : index
      %12 = vector.load %arg7[%c0_10, %c0_11] : memref<128x128xf32, #tpu.memory_space<vmem>>, vector<128x128xf32>
      %c0_12 = arith.constant 0 : index
      %c0_13 = arith.constant 0 : index
      %13 = vector.load %arg5[%c0_12, %c0_13] : memref<1x128xf32, #tpu.memory_space<vmem>>, vector<1x128xf32>
      %14 = vector.broadcast %13 : vector<1x128xf32> to vector<128x128xf32>
      %15 = arith.addf %12, %14 : vector<128x128xf32>
      %cst_14 = arith.constant 0.00999999977 : f32
      %16 = vector.broadcast %cst_14 : f32 to vector<128x128xf32>
      %17 = arith.mulf %16, %15 : vector<128x128xf32>
      %18 = arith.maximumf %15, %17 : vector<128x128xf32>
      %c0_15 = arith.constant 0 : index
      %c0_16 = arith.constant 0 : index
      %19 = vector.load %arg6[%c0_15, %c0_16] : memref<128x128xf32, #tpu.memory_space<vmem>>, vector<128x128xf32>
      tpu.vector_store %arg6[%c0_15, %c0_16], %18 {strides = array<i32>} : memref<128x128xf32, #tpu.memory_space<vmem>>, vector<128x128xf32>,
    } else {
    }
    return
  }
  func.func @transform_0(%arg0: i32, %arg1: i32, %arg2: i32) -> (i32, i32) {
    %c0_i32 = arith.constant 0 : i32
    return %arg0, %arg2 : i32, i32
  }
  func.func @transform_1(%arg0: i32, %arg1: i32, %arg2: i32) -> (i32, i32) {
    %c0_i32 = arith.constant 0 : i32
    return %arg2, %arg1 : i32, i32
  }
  func.func @transform_2(%arg0: i32, %arg1: i32, %arg2: i32) -> (i32, i32) {
    %c0_i32 = arith.constant 0 : i32
    %c0_i32_0 = arith.constant 0 : i32
    return %c0_i32, %arg1 : i32, i32
  }
  func.func @transform_3(%arg0: i32, %arg1: i32, %arg2: i32) -> (i32, i32) {
    %c0_i32 = arith.constant 0 : i32
    return %arg0, %arg1 : i32, i32
  }
}

module attributes {stable_mosaic.version = 11 : i64} {
  func.func @kernel(%arg0: i32, %arg1: i32, %arg2: i32, %arg3: memref<32x2304xbf16, #tpu.memory_space<vmem>>, %arg4: memref<2304x128xbf16, #tpu.memory_space<vmem>>, %arg5: memref<1x128xf32, #tpu.memory_space<vmem>>, %arg6: memref<32x128xf32, #tpu.memory_space<vmem>>, %arg7: memref<32x128xf32, #tpu.memory_space<vmem>>) attributes {dimension_semantics = [#tpu.dimension_semantics<parallel>, #tpu.dimension_semantics<parallel>, #tpu.dimension_semantics<arbitrary>], iteration_bounds = array<i64: 1, 4, 1>, scalar_prefetch = 0 : i64, scratch_operands = 1 : i64, tpu.core_type = #tpu.core_type<tc>, window_params = [{transform_indices = @transform_0, window_bounds = array<i64: 32, 2304>}, {transform_indices = @transform_1, window_bounds = array<i64: 2304, 128>}, {transform_indices = @transform_2, window_bounds = array<i64: 1, 128>}, {transform_indices = @transform_3, window_bounds = array<i64: 32, 128>}]} {
    %c0_i32 = arith.constant 0 : i32
    %0 = arith.cmpi eq, %arg2, %c0_i32 : i32
    %1 = arith.extui %0 : i1 to i32
    %c0_i32_0 = arith.constant 0 : i32
    %2 = arith.cmpi ne, %1, %c0_i32_0 : i32
    scf.if %2 {
      %cst_10 = arith.constant 0.000000e+00 : f32
      %12 = vector.broadcast %cst_10 : f32 to vector<32x128xf32>
      %c0_11 = arith.constant 0 : index
      %c0_12 = arith.constant 0 : index
      %13 = vector.load %arg7[%c0_11, %c0_12] : memref<32x128xf32, #tpu.memory_space<vmem>>, vector<32x128xf32>
      tpu.vector_store %arg7[%c0_11, %c0_12], %12 {strides = array<i32>} : memref<32x128xf32, #tpu.memory_space<vmem>>, vector<32x128xf32>,
    } else {
    }
    %c0 = arith.constant 0 : index
    %c0_1 = arith.constant 0 : index
    %3 = vector.load %arg7[%c0, %c0_1] : memref<32x128xf32, #tpu.memory_space<vmem>>, vector<32x128xf32>
    %c0_2 = arith.constant 0 : index
    %c0_3 = arith.constant 0 : index
    %4 = vector.load %arg3[%c0_2, %c0_3] : memref<32x2304xbf16, #tpu.memory_space<vmem>>, vector<32x2304xbf16>
    %c0_4 = arith.constant 0 : index
    %c0_5 = arith.constant 0 : index
    %5 = vector.load %arg4[%c0_4, %c0_5] : memref<2304x128xbf16, #tpu.memory_space<vmem>>, vector<2304x128xbf16>
    %cst = arith.constant dense<0.000000e+00> : vector<32x128xf32>
    %6 = tpu.matmul %4, %5, %cst {dimension_numbers = #tpu.dot_dimension_numbers<[1], [0], [0], [1], [0, 0, 1, 1], [], []>} : vector<32x2304xbf16>, vector<2304x128xbf16>, vector<32x128xf32> -> vector<32x128xf32>
    %7 = arith.addf %3, %6 : vector<32x128xf32>
    %c0_6 = arith.constant 0 : index
    %c0_7 = arith.constant 0 : index
    %8 = vector.load %arg7[%c0_6, %c0_7] : memref<32x128xf32, #tpu.memory_space<vmem>>, vector<32x128xf32>
    tpu.vector_store %arg7[%c0_6, %c0_7], %7 {strides = array<i32>} : memref<32x128xf32, #tpu.memory_space<vmem>>, vector<32x128xf32>,
    %c0_i32_8 = arith.constant 0 : i32
    %9 = arith.cmpi eq, %arg2, %c0_i32_8 : i32
    %10 = arith.extui %9 : i1 to i32
    %c0_i32_9 = arith.constant 0 : i32
    %11 = arith.cmpi ne, %10, %c0_i32_9 : i32
    scf.if %11 {
      %c0_10 = arith.constant 0 : index
      %c0_11 = arith.constant 0 : index
      %12 = vector.load %arg7[%c0_10, %c0_11] : memref<32x128xf32, #tpu.memory_space<vmem>>, vector<32x128xf32>
      %c0_12 = arith.constant 0 : index
      %c0_13 = arith.constant 0 : index
      %13 = vector.load %arg5[%c0_12, %c0_13] : memref<1x128xf32, #tpu.memory_space<vmem>>, vector<1x128xf32>
      %14 = vector.broadcast %13 : vector<1x128xf32> to vector<32x128xf32>
      %15 = arith.addf %12, %14 : vector<32x128xf32>
      %cst_14 = arith.constant 0.00999999977 : f32
      %16 = vector.broadcast %cst_14 : f32 to vector<32x128xf32>
      %17 = arith.mulf %16, %15 : vector<32x128xf32>
      %18 = arith.maximumf %15, %17 : vector<32x128xf32>
      %c0_15 = arith.constant 0 : index
      %c0_16 = arith.constant 0 : index
      %19 = vector.load %arg6[%c0_15, %c0_16] : memref<32x128xf32, #tpu.memory_space<vmem>>, vector<32x128xf32>
      tpu.vector_store %arg6[%c0_15, %c0_16], %18 {strides = array<i32>} : memref<32x128xf32, #tpu.memory_space<vmem>>, vector<32x128xf32>,
    } else {
    }
    return
  }
  func.func @transform_0(%arg0: i32, %arg1: i32, %arg2: i32) -> (i32, i32) {
    %c0_i32 = arith.constant 0 : i32
    return %arg0, %arg2 : i32, i32
  }
  func.func @transform_1(%arg0: i32, %arg1: i32, %arg2: i32) -> (i32, i32) {
    %c0_i32 = arith.constant 0 : i32
    return %arg2, %arg1 : i32, i32
  }
  func.func @transform_2(%arg0: i32, %arg1: i32, %arg2: i32) -> (i32, i32) {
    %c0_i32 = arith.constant 0 : i32
    %c0_i32_0 = arith.constant 0 : i32
    return %c0_i32, %arg1 : i32, i32
  }
  func.func @transform_3(%arg0: i32, %arg1: i32, %arg2: i32) -> (i32, i32) {
    %c0_i32 = arith.constant 0 : i32
    return %arg0, %arg1 : i32, i32
  }
}

module attributes {stable_mosaic.version = 11 : i64} {
  func.func @kernel(%arg0: i32, %arg1: i32, %arg2: i32, %arg3: memref<8x4096xbf16, #tpu.memory_space<vmem>>, %arg4: memref<4096x128xbf16, #tpu.memory_space<vmem>>, %arg5: memref<1x128xf32, #tpu.memory_space<vmem>>, %arg6: memref<8x128xf32, #tpu.memory_space<vmem>>, %arg7: memref<8x128xf32, #tpu.memory_space<vmem>>) attributes {dimension_semantics = [#tpu.dimension_semantics<parallel>, #tpu.dimension_semantics<parallel>, #tpu.dimension_semantics<arbitrary>], iteration_bounds = array<i64: 1, 1, 2>, scalar_prefetch = 0 : i64, scratch_operands = 1 : i64, tpu.core_type = #tpu.core_type<tc>, window_params = [{transform_indices = @transform_0, window_bounds = array<i64: 8, 4096>}, {transform_indices = @transform_1, window_bounds = array<i64: 4096, 128>}, {transform_indices = @transform_2, window_bounds = array<i64: 1, 128>}, {transform_indices = @transform_3, window_bounds = array<i64: 8, 128>}]} {
    %c0_i32 = arith.constant 0 : i32
    %0 = arith.cmpi eq, %arg2, %c0_i32 : i32
    %1 = arith.extui %0 : i1 to i32
    %c0_i32_0 = arith.constant 0 : i32
    %2 = arith.cmpi ne, %1, %c0_i32_0 : i32
    scf.if %2 {
      %cst_9 = arith.constant 0.000000e+00 : f32
      %12 = vector.broadcast %cst_9 : f32 to vector<8x128xf32>
      %c0_10 = arith.constant 0 : index
      %c0_11 = arith.constant 0 : index
      %13 = vector.load %arg7[%c0_10, %c0_11] : memref<8x128xf32, #tpu.memory_space<vmem>>, vector<8x128xf32>
      tpu.vector_store %arg7[%c0_10, %c0_11], %12 {strides = array<i32>} : memref<8x128xf32, #tpu.memory_space<vmem>>, vector<8x128xf32>,
    } else {
    }
    %c0 = arith.constant 0 : index
    %c0_1 = arith.constant 0 : index
    %3 = vector.load %arg7[%c0, %c0_1] : memref<8x128xf32, #tpu.memory_space<vmem>>, vector<8x128xf32>
    %c0_2 = arith.constant 0 : index
    %c0_3 = arith.constant 0 : index
    %4 = vector.load %arg3[%c0_2, %c0_3] : memref<8x4096xbf16, #tpu.memory_space<vmem>>, vector<8x4096xbf16>
    %c0_4 = arith.constant 0 : index
    %c0_5 = arith.constant 0 : index
    %5 = vector.load %arg4[%c0_4, %c0_5] : memref<4096x128xbf16, #tpu.memory_space<vmem>>, vector<4096x128xbf16>
    %cst = arith.constant dense<0.000000e+00> : vector<8x128xf32>
    %6 = tpu.matmul %4, %5, %cst {dimension_numbers = #tpu.dot_dimension_numbers<[1], [0], [0], [1], [0, 0, 1, 1], [], []>} : vector<8x4096xbf16>, vector<4096x128xbf16>, vector<8x128xf32> -> vector<8x128xf32>
    %7 = arith.addf %3, %6 : vector<8x128xf32>
    %c0_6 = arith.constant 0 : index
    %c0_7 = arith.constant 0 : index
    %8 = vector.load %arg7[%c0_6, %c0_7] : memref<8x128xf32, #tpu.memory_space<vmem>>, vector<8x128xf32>
    tpu.vector_store %arg7[%c0_6, %c0_7], %7 {strides = array<i32>} : memref<8x128xf32, #tpu.memory_space<vmem>>, vector<8x128xf32>,
    %c1_i32 = arith.constant 1 : i32
    %9 = arith.cmpi eq, %arg2, %c1_i32 : i32
    %10 = arith.extui %9 : i1 to i32
    %c0_i32_8 = arith.constant 0 : i32
    %11 = arith.cmpi ne, %10, %c0_i32_8 : i32
    scf.if %11 {
      %c0_9 = arith.constant 0 : index
      %c0_10 = arith.constant 0 : index
      %12 = vector.load %arg7[%c0_9, %c0_10] : memref<8x128xf32, #tpu.memory_space<vmem>>, vector<8x128xf32>
      %c0_11 = arith.constant 0 : index
      %c0_12 = arith.constant 0 : index
      %13 = vector.load %arg5[%c0_11, %c0_12] : memref<1x128xf32, #tpu.memory_space<vmem>>, vector<1x128xf32>
      %14 = vector.broadcast %13 : vector<1x128xf32> to vector<8x128xf32>
      %15 = arith.addf %12, %14 : vector<8x128xf32>
      %c0_13 = arith.constant 0 : index
      %c0_14 = arith.constant 0 : index
      %16 = vector.load %arg6[%c0_13, %c0_14] : memref<8x128xf32, #tpu.memory_space<vmem>>, vector<8x128xf32>
      tpu.vector_store %arg6[%c0_13, %c0_14], %15 {strides = array<i32>} : memref<8x128xf32, #tpu.memory_space<vmem>>, vector<8x128xf32>,
    } else {
    }
    return
  }
  func.func @transform_0(%arg0: i32, %arg1: i32, %arg2: i32) -> (i32, i32) {
    %c0_i32 = arith.constant 0 : i32
    return %arg0, %arg2 : i32, i32
  }
  func.func @transform_1(%arg0: i32, %arg1: i32, %arg2: i32) -> (i32, i32) {
    %c0_i32 = arith.constant 0 : i32
    return %arg2, %arg1 : i32, i32
  }
  func.func @transform_2(%arg0: i32, %arg1: i32, %arg2: i32) -> (i32, i32) {
    %c0_i32 = arith.constant 0 : i32
    %c0_i32_0 = arith.constant 0 : i32
    return %c0_i32, %arg1 : i32, i32
  }
  func.func @transform_3(%arg0: i32, %arg1: i32, %arg2: i32) -> (i32, i32) {
    %c0_i32 = arith.constant 0 : i32
    return %arg0, %arg1 : i32, i32
  }
}

</mosaic_0001>

<bundles_post_ra>
// kernel: discriminator_forward.4
= control target key start
LH: loop header
LB: loop body
LE: loop exit
PB: predicated region body
PF: predicated region fallthrough
CT: control target
= control target key end

     0   :  { %8 = vsyncpa [#allocation4], 0  ;;  %s983_s12 = smov 0   ;;  %s985_s13 = smov 0   ;;  %s1115_s0 = inlined_call_operand.vmem [shape: bf16[512,128], index: 0, kind: input, shape index: {}]   ;;  %s1116_s1 = inlined_call_operand.vmem [shape: bf16[128,128], index: 1, kind: input, shape index: {}]   ;;  %s1117_s2 = inlined_call_operand.hbm [shape: f32[1,128], index: 2, kind: input, shape index: {}]   ;;  %s1118_s3 = inlined_call_operand.vmem [shape: f32[512,128], index: 3, kind: output, shape index: {}]  }
   0x1   :  { %s987_s14 = smov 0  }
   0x2 LB: > { %s762_s15 = sadd.s32 4294967295, %s960_s14   ;;  %s33_s16 = sadd.s32 1, %s956_s13  ;;  %s960_s14 = sphi %s987_s14, %s14_s14   ;;  %s956_s13 = sphi %s985_s13, %s1122_s13   ;;  %s952_s12 = sphi %s983_s12, %s1121_s12  }
   0x3   : > { %p35_p0 = scmp.ge.s32.totalorder %s33_s16, 4  ;;  %p764_p1 = scmp.ge.s32.totalorder %s960_s14, 1 }
   0x4   : > { %p148_p2 = scmp.lt.s32.totalorder %s960_s14, 5  ;;  %p1008_p4 = scmp.eq.s32.totalorder %s762_s15, 0 }
   0x5   : > { %s1124_s16 = smov (%p35_p0, %s33_s16), 0  ;;  %s962_s19 = smov [#allocation3]  }
   0x6   : > { %p1004_p3 = pnand %p764_p1, %p148_p2  ;;  %s175_s20 = sshll.u32 %s962_s19, 4  ;;  %s176_s20 = int_to_ptr.vmem [resolvable:$true] %s175_s20 }
   0x7   : > { %s919_s21 = scalar_lea.vmem %s176_s20, 16  ;;  %s926_s22 = scalar_lea.vmem %s176_s20, 32 }
   0x8   : > { %p861_p5 = pneg %p1004_p3  ;;  %p920_p8 = scmp.ne.s32.totalorder %s176_s20, %s919_s21 }
   0x9   : > { %p927_p11 = scmp.lt.s32.totalorder %s176_s20, %s176_s20  ;;  %p928_p12 = scmp.lt.s32.totalorder %s926_s22, %s919_s21 }
   0xa   : > { %p862_p6 = pnand %p1008_p4, %p861_p5 }
   0xb   : > { %p929_p13 = por %p928_p12, %p927_p11 }
   0xc   : > { %p910_p7 = pneg %p862_p6 }
   0xe   : > { %p922_p9 = pnand %p920_p8, %p910_p7 }
  0x10   : > { %p923_p10 = pneg %p922_p9 }
  0x12   : > { %p930_p0 = pnand %p929_p13, %p923_p10 }
  0x14   : > { %933 = shalt.err (!%p930_p0)
}
  0x15   : > { %864 = dma.hbm_to_vmem [thread:$0]  (!%p862_p6), %s1117_s2, 16, %s176_s20, [#allocation4]  }
  0x16   : > { %200 = sbr.rel (%p1004_p3) target bundleno = 275 (0x113), region = 32 }
  0x1b   : > { %947 = dma.done.wait (%p1008_p4), [#allocation4], 16  }
  0x1c   : > { %949 = vsyncadd (%p1008_p4), [#allocation4], 4294967280  ;;  %s770_s25 = sshll.u32 %s952_s12, 4  ;;  %v892_v0 = vld [vmem:[%s1116_s1 + $0x38] sm:$0xff]   ;;  %v893_v1 = vld [vmem:[%s1116_s1 + $0x30] sm:$0xff]  }
  0x1d   : > { %p239_p1 = scmp.lt.s32.totalorder %s770_s25, 63  ;;  %809 = vmatprep.subr.bf16.mxu0 %v892_v0  ;;  %841 = vmatprep.subr.bf16.mxu1 %v892_v0  ;;  %v894_v2 = vld [vmem:[%s1116_s1 + $0x28] sm:$0xff]   ;;  %v895_v3 = vld [vmem:[%s1116_s1 + $0x20] sm:$0xff]   ;;  %v896_v6 = vld [vmem:[%s1116_s1 + $0x18] sm:$0xff]  }
  0x1e   : > { %810 = vmatpush3.bf16.msra.mxu0 %v892_v0  ;;  %849 = vmatpush3.bf16.msra.mxu1 %v892_v0  ;;  %v897_v7 = vld [vmem:[%s1116_s1 + $0x10] sm:$0xff]   ;;  %v898_v8 = vld [vmem:[%s1116_s1 + $0x8] sm:$0xff]   ;;  %v899_v9 = vld [vmem:[%s1116_s1] sm:$0xff]  }
  0x1f   : > { %s1126_s25 = smov (!%p239_p1, %s770_s25), 63  ;;  %811 = vmatprep.subr.bf16.mxu0 %v893_v1  ;;  %842 = vmatprep.subr.bf16.mxu1 %v893_v1  ;;  %v1066_v16 = vld [vmem:[#allocation3] ss:$0 sm:$0xff] }
  0x20   : > { %s771_s30 = sshll.u32 %s1126_s25, 2  ;;  %s773_s22 = sshll.u32 %s1126_s25, 3 }
  0x21   : > { %s1041_s8 = scalar_lea.vmem %s1115_s0, %s771_s30  ;;  %s1076_s26 = scalar_lea.vmem %s1118_s3, %s773_s22 }
  0x22   : > { %812 = vmatpush3.bf16.msra.mxu0 %v893_v1  ;;  %850 = vmatpush3.bf16.msra.mxu1 %v893_v1  ;;  %v900_v4 = vld [vmem:[%s1041_s8] sm:$0xff]   ;;  %v902_v10 = vld [vmem:[%s1041_s8 + $0x8] sm:$0xff]   ;;  %v904_v12 = vld [vmem:[%s1041_s8 + $0x10] sm:$0xff]  }
  0x23   : > { %813 = vmatprep.subr.bf16.mxu0 %v894_v2  ;;  %843 = vmatprep.subr.bf16.mxu1 %v894_v2  ;;  %v901_v5 = vld [vmem:[%s1041_s8 + $0x20] sm:$0xff]   ;;  %v903_v11 = vld [vmem:[%s1041_s8 + $0x28] sm:$0xff]   ;;  %v905_v13 = vld [vmem:[%s1041_s8 + $0x30] sm:$0xff]  }
  0x24   : > { %825 = vmatprep.mubr.bf16.mxu0 %v900_v4  ;;  %833 = vmatprep.mubr.bf16.mxu1 %v901_v5  ;;  %v906_v14 = vld [vmem:[%s1041_s8 + $0x18] sm:$0xff]  }
  0x25   : > { %v907_v15 = vld [vmem:[%s1041_s8 + $0x38] sm:$0xff]  }
  0x26   : > { %814 = vmatpush3.bf16.msra.mxu0 %v894_v2  ;;  %851 = vmatpush3.bf16.msra.mxu1 %v894_v2 }
  0x27   : > { %815 = vmatprep.subr.bf16.mxu0 %v895_v3  ;;  %844 = vmatprep.subr.bf16.mxu1 %v895_v3 }
  0x2a   : > { %816 = vmatpush3.bf16.msra.mxu0 %v895_v3  ;;  %852 = vmatpush3.bf16.msra.mxu1 %v895_v3 }
  0x2b   : > { %817 = vmatprep.subr.bf16.mxu0 %v896_v6  ;;  %845 = vmatprep.subr.bf16.mxu1 %v896_v6 }
  0x2e   : > { %818 = vmatpush3.bf16.msra.mxu0 %v896_v6  ;;  %853 = vmatpush3.bf16.msra.mxu1 %v896_v6 }
  0x2f   : > { %819 = vmatprep.subr.bf16.mxu0 %v897_v7  ;;  %846 = vmatprep.subr.bf16.mxu1 %v897_v7 }
  0x32   : > { %820 = vmatpush3.bf16.msra.mxu0 %v897_v7  ;;  %854 = vmatpush3.bf16.msra.mxu1 %v897_v7 }
  0x33   : > { %821 = vmatprep.subr.bf16.mxu0 %v898_v8  ;;  %847 = vmatprep.subr.bf16.mxu1 %v898_v8 }
  0x36   : > { %822 = vmatpush3.bf16.msra.mxu0 %v898_v8  ;;  %855 = vmatpush3.bf16.msra.mxu1 %v898_v8 }
  0x37   : > { %823 = vmatprep.subr.bf16.mxu0 %v899_v9  ;;  %848 = vmatprep.subr.bf16.mxu1 %v899_v9 }
  0x3a   : > { %824 = vmatpush3.bf16.msra.mxu0 %v899_v9  ;;  %856 = vmatpush3.bf16.msra.mxu1 %v899_v9 }
  0x3d   : > { %826 = vmatmul.mubr.bf16.vlgmr.msra.gmra.mxu0 %v902_v10  ;;  %834 = vmatmul.mubr.bf16.vlgmr.msra.gmra.mxu1 %v903_v11 }
  0x3e   : > { %829 = vmatprep.mubr.bf16.mxu0 %v904_v12  ;;  %837 = vmatprep.mubr.bf16.mxu1 %v905_v13 }
  0x45   : > { %830 = vmatmul.mubr.bf16.gmra.mxu0 %v906_v14  ;;  %838 = vmatmul.mubr.bf16.gmra.mxu1 %v907_v15 }
  0xfd   : > { %v827_v17 = vpop.f32.mrf.mxu0  ;;  %v835_v18 = vpop.f32.mrf.mxu1 }
  0xfe   : > { %v587_v19 = vadd.f32 %v827_v17, %v1066_v16  ;;  %v595_v20 = vadd.f32 %v835_v18, %v1066_v16 }
  0xff   : > { %v464_v21 = vpop.f32.mrf.mxu0  ;;  %v496_v22 = vpop.f32.mrf.mxu1 }
 0x100   : > { %v603_v23 = vmul.f32 0.01, %v587_v19  ;;  %v611_v24 = vmul.f32 0.01, %v595_v20  ;;  %v585_v25 = vadd.f32 %v1066_v16, %v464_v21  ;;  %v593_v26 = vadd.f32 %v1066_v16, %v496_v22 }
 0x101   : > { %v828_v27 = vpop.f32.mrf.mxu0  ;;  %v836_v28 = vpop.f32.mrf.mxu1 }
 0x102   : > { %v619_v29 = vmax.f32 %v587_v19, %v603_v23  ;;  %v627_v30 = vmax.f32 %v595_v20, %v611_v24  ;;  %v601_v31 = vmul.f32 0.01, %v585_v25  ;;  %v609_v32 = vmul.f32 0.01, %v593_v26 }
 0x103   : > { %v588_v33 = vadd.f32 %v828_v27, %v1066_v16  ;;  %v596_v34 = vadd.f32 %v836_v28, %v1066_v16  ;;  %v467_v35 = vpop.f32.mrf.mxu0  ;;  %v499_v36 = vpop.f32.mrf.mxu1 }
 0x104   : > { %635 = vst [vmem:[%s1076_s26 + $0x10] sm:$0xff] %v619_v29  ;;  %643 = vst [vmem:[%s1076_s26 + $0x50] sm:$0xff] %v627_v30  ;;  %v617_v37 = vmax.f32 %v585_v25, %v601_v31  ;;  %v625_v38 = vmax.f32 %v593_v26, %v609_v32  ;;  %v586_v39 = vadd.f32 %v1066_v16, %v467_v35 }
 0x105   : > { %v594_v40 = vadd.f32 %v1066_v16, %v499_v36  ;;  %v604_v41 = vmul.f32 0.01, %v588_v33  ;;  %v612_v42 = vmul.f32 0.01, %v596_v34  ;;  %v831_v43 = vpop.f32.mrf.mxu0  ;;  %v839_v44 = vpop.f32.mrf.mxu1 }
 0x106   : > { %633 = vst [vmem:[%s1076_s26] sm:$0xff] %v617_v37  ;;  %641 = vst [vmem:[%s1076_s26 + $0x40] sm:$0xff] %v625_v38  ;;  %v602_v45 = vmul.f32 0.01, %v586_v39  ;;  %v591_v47 = vadd.f32 %v831_v43, %v1066_v16  ;;  %v599_v48 = vadd.f32 %v839_v44, %v1066_v16 }
 0x107   : > { %v610_v46 = vmul.f32 0.01, %v594_v40  ;;  %v620_v49 = vmax.f32 %v588_v33, %v604_v41  ;;  %v628_v50 = vmax.f32 %v596_v34, %v612_v42  ;;  %v480_v51 = vpop.f32.mrf.mxu0  ;;  %v512_v52 = vpop.f32.mrf.mxu1 }
 0x108   : > { %v618_v53 = vmax.f32 %v586_v39, %v602_v45  ;;  %v607_v55 = vmul.f32 0.01, %v591_v47  ;;  %v615_v56 = vmul.f32 0.01, %v599_v48  ;;  %v589_v57 = vadd.f32 %v1066_v16, %v480_v51 }
 0x109   : > { %v626_v54 = vmax.f32 %v594_v40, %v610_v46  ;;  %636 = vst [vmem:[%s1076_s26 + $0x18] sm:$0xff] %v620_v49  ;;  %644 = vst [vmem:[%s1076_s26 + $0x58] sm:$0xff] %v628_v50  ;;  %v597_v58 = vadd.f32 %v1066_v16, %v512_v52  ;;  %v832_v59 = vpop.f32.mrf.mxu0  ;;  %v840_v60 = vpop.f32.mrf.mxu1 }
 0x10a   : > { %634 = vst [vmem:[%s1076_s26 + $0x8] sm:$0xff] %v618_v53  ;;  %v623_v61 = vmax.f32 %v591_v47, %v607_v55  ;;  %v631_v62 = vmax.f32 %v599_v48, %v615_v56  ;;  %v592_v63 = vadd.f32 %v832_v59, %v1066_v16  ;;  %v600_v0 = vadd.f32 %v840_v60, %v1066_v16 }
 0x10b   : > { %642 = vst [vmem:[%s1076_s26 + $0x48] sm:$0xff] %v626_v54  ;;  %v605_v1 = vmul.f32 0.01, %v589_v57  ;;  %v613_v2 = vmul.f32 0.01, %v597_v58  ;;  %v483_v3 = vpop.f32.mrf.mxu0  ;;  %v515_v4 = vpop.f32.mrf.mxu1 }
 0x10c   : > { %639 = vst [vmem:[%s1076_s26 + $0x30] sm:$0xff] %v623_v61  ;;  %647 = vst [vmem:[%s1076_s26 + $0x70] sm:$0xff] %v631_v62  ;;  %v608_v5 = vmul.f32 0.01, %v592_v63  ;;  %v616_v6 = vmul.f32 0.01, %v600_v0  ;;  %v590_v7 = vadd.f32 %v1066_v16, %v483_v3  ;;  %v598_v8 = vadd.f32 %v1066_v16, %v515_v4 }
 0x10d   : > { %v621_v9 = vmax.f32 %v589_v57, %v605_v1  ;;  %v629_v10 = vmax.f32 %v597_v58, %v613_v2 }
 0x10e   : > { %v624_v11 = vmax.f32 %v592_v63, %v608_v5  ;;  %v632_v12 = vmax.f32 %v600_v0, %v616_v6  ;;  %v606_v13 = vmul.f32 0.01, %v590_v7  ;;  %v614_v14 = vmul.f32 0.01, %v598_v8 }
 0x10f   : > { %637 = vst [vmem:[%s1076_s26 + $0x20] sm:$0xff] %v621_v9  ;;  %645 = vst [vmem:[%s1076_s26 + $0x60] sm:$0xff] %v629_v10 }
 0x110   : > { %640 = vst [vmem:[%s1076_s26 + $0x38] sm:$0xff] %v624_v11  ;;  %648 = vst [vmem:[%s1076_s26 + $0x78] sm:$0xff] %v632_v12  ;;  %v622_v15 = vmax.f32 %v590_v7, %v606_v13  ;;  %v630_v17 = vmax.f32 %v598_v8, %v614_v14 }
 0x112   : > { %638 = vst [vmem:[%s1076_s26 + $0x28] sm:$0xff] %v622_v15  ;;  %646 = vst [vmem:[%s1076_s26 + $0x68] sm:$0xff] %v630_v17 }
 0x113 PF: > { %s14_s14 = sadd.s32 1, %s960_s14   ;;  %s1121_s12 = smov %s956_s13 }
 0x114   : > { %p11_p2 = scmp.ge.s32.totalorder %s14_s14, 6   ;;  %s1122_s13 = smov %s1124_s16 }
 0x116   :  { %13 = sbr.rel (!%p11_p2) target bundleno = 2 (0x2), region = 79 }
 0x11b   :  { %677 = vsyncpa [#allocation4], 1 }
 0x11c   :  { %679 = vsyncpa [#allocation4 + $0x1], 1 }

// kernel: discriminator_forward.5
= control target key start
LH: loop header
LB: loop body
LE: loop exit
PB: predicated region body
PF: predicated region fallthrough
CT: control target
= control target key end

     0   :  { %s3493_s12 = smov 0   ;;  %s3495_s13 = smov 0   ;;  %s4333_s0 = inlined_call_operand.vmem [shape: bf16[128,1152], index: 0, kind: input, shape index: {}]   ;;  %s4334_s1 = inlined_call_operand.vmem [shape: bf16[1152,256], index: 1, kind: input, shape index: {}]   ;;  %s4335_s2 = inlined_call_operand.vmem [shape: f32[1,256], index: 2, kind: input, shape index: {}]   ;;  %s4336_s3 = inlined_call_operand.vmem [shape: f32[128,256], index: 3, kind: output, shape index: {}]  }
   0x1   :  { %s3497_s14 = smov 0   ;;  %s3499_s15 = smov 0  }
   0x2   :  { %s3501_s16 = smov 0  }
   0x3 LB: > { %s28_s17 = sadd.s32 1, %s3467_s15  ;;  %s2738_s18 = sadd.s32 4294967295, %s3471_s16   ;;  %s3471_s16 = sphi %s3501_s16, %s13_s16   ;;  %s3467_s15 = sphi %s3499_s15, %s4367_s15   ;;  %s3463_s14 = sphi %s3497_s14, %s4366_s14   ;;  %s3459_s13 = sphi %s3495_s13, %s4365_s13   ;;  %s3455_s12 = sphi %s3493_s12, %s4364_s12  }
   0x4   : > { %p30_p0 = scmp.ge.s32.totalorder %s28_s17, 2  ;;  %p76_p1 = scmp.ne.s32.totalorder %s3459_s13, %s3455_s12 }
   0x5   : > { %p77_p2 = scmp.eq.s32.totalorder %s3471_s16, 0  ;;  %p134_p4 = scmp.eq.s32.totalorder %s2738_s18, 1 }
   0x6   : > { %s4369_s17 = smov (%p30_p0, %s28_s17), 0  ;;  %s69_s20 = sadd.s32 1, %s3459_s13 }
   0x7   : > { %p78_p3 = por %p77_p2, %p76_p1  ;;  %s65_s19 = ssub.s32 %s3467_s15, %s4369_s17 }
   0x8   : > { %p67_p5 = scmp.eq.s32.totalorder %s65_s19, 0  ;;  %p3528_p6 = por %p134_p4, %p76_p1 }
   0x9   : > { %p2742_p7 = scmp.ge.s32.totalorder %s3471_s16, 2 }
   0xa   : > { %s3533_s22 = scalar_select %p67_p5, %s3459_s13, %s69_s20  }
   0xb   : > { %171 = sbr.rel (%p2742_p7) target bundleno = 116 (0x74), region = 20 }
  0x10   : > { %174 = sbr.rel (!%p78_p3) target bundleno = 116 (0x74), region = 24  ;;  %s176_s23 = sand.u32 (%p78_p3), 1, %s3459_s13  }
  0x11   : > { %s2743_s24 = sshll.u32 (%p78_p3), %s3467_s15, 2  ;;  %s3215_s25 = smul.u32 (%p78_p3), 576, %s176_s23 }
  0x12   : > { %s3541_s28 = scalar_lea.vmem (%p78_p3), %s4334_s1, %s2743_s24 }
  0x13   : > { %v200_v0 = vld [vmem:[%s3541_s28] sm:$0xf] (%p78_p3)  ;;  %v202_v1 = vld [vmem:[%s3541_s28 + $0x8] sm:$0xf] (%p78_p3)  ;;  %v204_v2 = vld [vmem:[%s3541_s28 + $0x10] sm:$0xf] (%p78_p3) }
  0x14   : > { %v206_v3 = vld [vmem:[%s3541_s28 + $0x18] sm:$0xf] (%p78_p3)  ;;  %v208_v4 = vld [vmem:[%s3541_s28 + $0x20] sm:$0xf] (%p78_p3)  ;;  %s3548_s29 = scalar_lea.vmem (%p78_p3), [#allocation3], %s3215_s25 }
  0x15   : > { %201 = vst [vmem:[%s3548_s29] sm:$0xf] %v200_v0  ;;  %203 = vst [vmem:[%s3548_s29 + $0x4] sm:$0xf] %v202_v1  ;;  %v210_v5 = vld [vmem:[%s3541_s28 + $0x28] sm:$0xf] }
  0x16   : > { %205 = vst [vmem:[%s3548_s29 + $0x8] sm:$0xf] %v204_v2  ;;  %207 = vst [vmem:[%s3548_s29 + $0xc] sm:$0xf] %v206_v3  ;;  %v212_v6 = vld [vmem:[%s3541_s28 + $0x30] sm:$0xf] }
  0x17   : > { %209 = vst [vmem:[%s3548_s29 + $0x10] sm:$0xf] %v208_v4  ;;  %v214_v7 = vld [vmem:[%s3541_s28 + $0x38] sm:$0xf]  ;;  %211 = vst [vmem:[%s3548_s29 + $0x14] sm:$0xf] %v210_v5 }
  0x18   : > { %213 = vst [vmem:[%s3548_s29 + $0x18] sm:$0xf] %v212_v6  ;;  %215 = vst [vmem:[%s3548_s29 + $0x1c] sm:$0xf] %v214_v7  ;;  %v216_v8 = vld [vmem:[%s3541_s28 + $0x40] sm:$0xf] }
  0x19   : > { %v218_v9 = vld [vmem:[%s3541_s28 + $0x48] sm:$0xf]  ;;  %v220_v10 = vld [vmem:[%s3541_s28 + $0x50] sm:$0xf]  ;;  %217 = vst [vmem:[%s3548_s29 + $0x20] sm:$0xf] %v216_v8 }
  0x1a   : > { %219 = vst [vmem:[%s3548_s29 + $0x24] sm:$0xf] %v218_v9  ;;  %221 = vst [vmem:[%s3548_s29 + $0x28] sm:$0xf] %v220_v10  ;;  %v222_v11 = vld [vmem:[%s3541_s28 + $0x58] sm:$0xf] }
  0x1b   : > { %v224_v12 = vld [vmem:[%s3541_s28 + $0x60] sm:$0xf]  ;;  %v226_v13 = vld [vmem:[%s3541_s28 + $0x68] sm:$0xf]  ;;  %223 = vst [vmem:[%s3548_s29 + $0x2c] sm:$0xf] %v222_v11 }
  0x1c   : > { %225 = vst [vmem:[%s3548_s29 + $0x30] sm:$0xf] %v224_v12  ;;  %227 = vst [vmem:[%s3548_s29 + $0x34] sm:$0xf] %v226_v13  ;;  %v228_v14 = vld [vmem:[%s3541_s28 + $0x70] sm:$0xf] }
  0x1d   : > { %v230_v15 = vld [vmem:[%s3541_s28 + $0x78] sm:$0xf]  ;;  %v232_v16 = vld [vmem:[%s3541_s28 + $0x80] sm:$0xf]  ;;  %229 = vst [vmem:[%s3548_s29 + $0x38] sm:$0xf] %v228_v14 }
  0x1e   : > { %231 = vst [vmem:[%s3548_s29 + $0x3c] sm:$0xf] %v230_v15  ;;  %233 = vst [vmem:[%s3548_s29 + $0x40] sm:$0xf] %v232_v16  ;;  %v234_v17 = vld [vmem:[%s3541_s28 + $0x88] sm:$0xf] }
  0x1f   : > { %v236_v18 = vld [vmem:[%s3541_s28 + $0x90] sm:$0xf]  ;;  %v238_v19 = vld [vmem:[%s3541_s28 + $0x98] sm:$0xf]  ;;  %235 = vst [vmem:[%s3548_s29 + $0x44] sm:$0xf] %v234_v17 }
  0x20   : > { %237 = vst [vmem:[%s3548_s29 + $0x48] sm:$0xf] %v236_v18  ;;  %239 = vst [vmem:[%s3548_s29 + $0x4c] sm:$0xf] %v238_v19  ;;  %v240_v20 = vld [vmem:[%s3541_s28 + $0xa0] sm:$0xf] }
  0x21   : > { %v242_v21 = vld [vmem:[%s3541_s28 + $0xa8] sm:$0xf]  ;;  %v244_v22 = vld [vmem:[%s3541_s28 + $0xb0] sm:$0xf]  ;;  %241 = vst [vmem:[%s3548_s29 + $0x50] sm:$0xf] %v240_v20 }
  0x22   : > { %243 = vst [vmem:[%s3548_s29 + $0x54] sm:$0xf] %v242_v21  ;;  %245 = vst [vmem:[%s3548_s29 + $0x58] sm:$0xf] %v244_v22  ;;  %v246_v23 = vld [vmem:[%s3541_s28 + $0xb8] sm:$0xf] }
  0x23   : > { %v248_v24 = vld [vmem:[%s3541_s28 + $0xc0] sm:$0xf]  ;;  %v250_v25 = vld [vmem:[%s3541_s28 + $0xc8] sm:$0xf]  ;;  %247 = vst [vmem:[%s3548_s29 + $0x5c] sm:$0xf] %v246_v23 }
  0x24   : > { %249 = vst [vmem:[%s3548_s29 + $0x60] sm:$0xf] %v248_v24  ;;  %251 = vst [vmem:[%s3548_s29 + $0x64] sm:$0xf] %v250_v25  ;;  %v252_v26 = vld [vmem:[%s3541_s28 + $0xd0] sm:$0xf] }
  0x25   : > { %v254_v27 = vld [vmem:[%s3541_s28 + $0xd8] sm:$0xf]  ;;  %v256_v28 = vld [vmem:[%s3541_s28 + $0xe0] sm:$0xf]  ;;  %253 = vst [vmem:[%s3548_s29 + $0x68] sm:$0xf] %v252_v26 }
  0x26   : > { %255 = vst [vmem:[%s3548_s29 + $0x6c] sm:$0xf] %v254_v27  ;;  %257 = vst [vmem:[%s3548_s29 + $0x70] sm:$0xf] %v256_v28  ;;  %v258_v29 = vld [vmem:[%s3541_s28 + $0xe8] sm:$0xf] }
  0x27   : > { %v260_v30 = vld [vmem:[%s3541_s28 + $0xf0] sm:$0xf]  ;;  %v262_v31 = vld [vmem:[%s3541_s28 + $0xf8] sm:$0xf]  ;;  %259 = vst [vmem:[%s3548_s29 + $0x74] sm:$0xf] %v258_v29 }
  0x28   : > { %261 = vst [vmem:[%s3548_s29 + $0x78] sm:$0xf] %v260_v30  ;;  %263 = vst [vmem:[%s3548_s29 + $0x7c] sm:$0xf] %v262_v31  ;;  %v264_v32 = vld [vmem:[%s3541_s28 + $0x100] sm:$0xf] }
  0x29   : > { %v266_v33 = vld [vmem:[%s3541_s28 + $0x108] sm:$0xf]  ;;  %v268_v34 = vld [vmem:[%s3541_s28 + $0x110] sm:$0xf]  ;;  %265 = vst [vmem:[%s3548_s29 + $0x80] sm:$0xf] %v264_v32 }
  0x2a   : > { %267 = vst [vmem:[%s3548_s29 + $0x84] sm:$0xf] %v266_v33  ;;  %269 = vst [vmem:[%s3548_s29 + $0x88] sm:$0xf] %v268_v34  ;;  %v270_v35 = vld [vmem:[%s3541_s28 + $0x118] sm:$0xf] }
  0x2b   : > { %v272_v36 = vld [vmem:[%s3541_s28 + $0x120] sm:$0xf]  ;;  %v274_v37 = vld [vmem:[%s3541_s28 + $0x128] sm:$0xf]  ;;  %271 = vst [vmem:[%s3548_s29 + $0x8c] sm:$0xf] %v270_v35 }
  0x2c   : > { %273 = vst [vmem:[%s3548_s29 + $0x90] sm:$0xf] %v272_v36  ;;  %275 = vst [vmem:[%s3548_s29 + $0x94] sm:$0xf] %v274_v37  ;;  %v276_v38 = vld [vmem:[%s3541_s28 + $0x130] sm:$0xf] }
  0x2d   : > { %v278_v39 = vld [vmem:[%s3541_s28 + $0x138] sm:$0xf]  ;;  %v280_v40 = vld [vmem:[%s3541_s28 + $0x140] sm:$0xf]  ;;  %277 = vst [vmem:[%s3548_s29 + $0x98] sm:$0xf] %v276_v38 }
  0x2e   : > { %279 = vst [vmem:[%s3548_s29 + $0x9c] sm:$0xf] %v278_v39  ;;  %281 = vst [vmem:[%s3548_s29 + $0xa0] sm:$0xf] %v280_v40  ;;  %v282_v41 = vld [vmem:[%s3541_s28 + $0x148] sm:$0xf] }
  0x2f   : > { %v284_v42 = vld [vmem:[%s3541_s28 + $0x150] sm:$0xf]  ;;  %v286_v43 = vld [vmem:[%s3541_s28 + $0x158] sm:$0xf]  ;;  %283 = vst [vmem:[%s3548_s29 + $0xa4] sm:$0xf] %v282_v41 }
  0x30   : > { %285 = vst [vmem:[%s3548_s29 + $0xa8] sm:$0xf] %v284_v42  ;;  %287 = vst [vmem:[%s3548_s29 + $0xac] sm:$0xf] %v286_v43  ;;  %v288_v44 = vld [vmem:[%s3541_s28 + $0x160] sm:$0xf] }
  0x31   : > { %v290_v45 = vld [vmem:[%s3541_s28 + $0x168] sm:$0xf]  ;;  %v292_v46 = vld [vmem:[%s3541_s28 + $0x170] sm:$0xf]  ;;  %289 = vst [vmem:[%s3548_s29 + $0xb0] sm:$0xf] %v288_v44 }
  0x32   : > { %291 = vst [vmem:[%s3548_s29 + $0xb4] sm:$0xf] %v290_v45  ;;  %293 = vst [vmem:[%s3548_s29 + $0xb8] sm:$0xf] %v292_v46  ;;  %v294_v47 = vld [vmem:[%s3541_s28 + $0x178] sm:$0xf] }
  0x33   : > { %v296_v48 = vld [vmem:[%s3541_s28 + $0x180] sm:$0xf]  ;;  %v298_v49 = vld [vmem:[%s3541_s28 + $0x188] sm:$0xf]  ;;  %295 = vst [vmem:[%s3548_s29 + $0xbc] sm:$0xf] %v294_v47 }
  0x34   : > { %297 = vst [vmem:[%s3548_s29 + $0xc0] sm:$0xf] %v296_v48  ;;  %299 = vst [vmem:[%s3548_s29 + $0xc4] sm:$0xf] %v298_v49  ;;  %v300_v50 = vld [vmem:[%s3541_s28 + $0x190] sm:$0xf] }
  0x35   : > { %v302_v51 = vld [vmem:[%s3541_s28 + $0x198] sm:$0xf]  ;;  %v304_v52 = vld [vmem:[%s3541_s28 + $0x1a0] sm:$0xf]  ;;  %301 = vst [vmem:[%s3548_s29 + $0xc8] sm:$0xf] %v300_v50 }
  0x36   : > { %303 = vst [vmem:[%s3548_s29 + $0xcc] sm:$0xf] %v302_v51  ;;  %305 = vst [vmem:[%s3548_s29 + $0xd0] sm:$0xf] %v304_v52  ;;  %v306_v53 = vld [vmem:[%s3541_s28 + $0x1a8] sm:$0xf] }
  0x37   : > { %v308_v54 = vld [vmem:[%s3541_s28 + $0x1b0] sm:$0xf]  ;;  %v310_v55 = vld [vmem:[%s3541_s28 + $0x1b8] sm:$0xf]  ;;  %307 = vst [vmem:[%s3548_s29 + $0xd4] sm:$0xf] %v306_v53 }
  0x38   : > { %309 = vst [vmem:[%s3548_s29 + $0xd8] sm:$0xf] %v308_v54  ;;  %311 = vst [vmem:[%s3548_s29 + $0xdc] sm:$0xf] %v310_v55  ;;  %v312_v56 = vld [vmem:[%s3541_s28 + $0x1c0] sm:$0xf] }
  0x39   : > { %v314_v57 = vld [vmem:[%s3541_s28 + $0x1c8] sm:$0xf]  ;;  %v316_v58 = vld [vmem:[%s3541_s28 + $0x1d0] sm:$0xf]  ;;  %313 = vst [vmem:[%s3548_s29 + $0xe0] sm:$0xf] %v312_v56 }
  0x3a   : > { %315 = vst [vmem:[%s3548_s29 + $0xe4] sm:$0xf] %v314_v57  ;;  %317 = vst [vmem:[%s3548_s29 + $0xe8] sm:$0xf] %v316_v58  ;;  %v318_v59 = vld [vmem:[%s3541_s28 + $0x1d8] sm:$0xf] }
  0x3b   : > { %v320_v60 = vld [vmem:[%s3541_s28 + $0x1e0] sm:$0xf]  ;;  %v322_v61 = vld [vmem:[%s3541_s28 + $0x1e8] sm:$0xf]  ;;  %319 = vst [vmem:[%s3548_s29 + $0xec] sm:$0xf] %v318_v59 }
  0x3c   : > { %321 = vst [vmem:[%s3548_s29 + $0xf0] sm:$0xf] %v320_v60  ;;  %323 = vst [vmem:[%s3548_s29 + $0xf4] sm:$0xf] %v322_v61  ;;  %v324_v62 = vld [vmem:[%s3541_s28 + $0x1f0] sm:$0xf] }
  0x3d   : > { %v326_v63 = vld [vmem:[%s3541_s28 + $0x1f8] sm:$0xf]  ;;  %v328_v0 = vld [vmem:[%s3541_s28 + $0x200] sm:$0xf]  ;;  %325 = vst [vmem:[%s3548_s29 + $0xf8] sm:$0xf] %v324_v62 }
  0x3e   : > { %327 = vst [vmem:[%s3548_s29 + $0xfc] sm:$0xf] %v326_v63  ;;  %329 = vst [vmem:[%s3548_s29 + $0x100] sm:$0xf] %v328_v0  ;;  %v330_v1 = vld [vmem:[%s3541_s28 + $0x208] sm:$0xf] }
  0x3f   : > { %v332_v2 = vld [vmem:[%s3541_s28 + $0x210] sm:$0xf]  ;;  %v334_v3 = vld [vmem:[%s3541_s28 + $0x218] sm:$0xf]  ;;  %331 = vst [vmem:[%s3548_s29 + $0x104] sm:$0xf] %v330_v1 }
  0x40   : > { %333 = vst [vmem:[%s3548_s29 + $0x108] sm:$0xf] %v332_v2  ;;  %335 = vst [vmem:[%s3548_s29 + $0x10c] sm:$0xf] %v334_v3  ;;  %v336_v4 = vld [vmem:[%s3541_s28 + $0x220] sm:$0xf] }
  0x41   : > { %v338_v5 = vld [vmem:[%s3541_s28 + $0x228] sm:$0xf]  ;;  %v340_v6 = vld [vmem:[%s3541_s28 + $0x230] sm:$0xf]  ;;  %337 = vst [vmem:[%s3548_s29 + $0x110] sm:$0xf] %v336_v4 }
  0x42   : > { %339 = vst [vmem:[%s3548_s29 + $0x114] sm:$0xf] %v338_v5  ;;  %341 = vst [vmem:[%s3548_s29 + $0x118] sm:$0xf] %v340_v6  ;;  %v342_v7 = vld [vmem:[%s3541_s28 + $0x238] sm:$0xf] }
  0x43   : > { %v344_v8 = vld [vmem:[%s3541_s28 + $0x240] sm:$0xf]  ;;  %v346_v9 = vld [vmem:[%s3541_s28 + $0x248] sm:$0xf]  ;;  %343 = vst [vmem:[%s3548_s29 + $0x11c] sm:$0xf] %v342_v7 }
  0x44   : > { %345 = vst [vmem:[%s3548_s29 + $0x120] sm:$0xf] %v344_v8  ;;  %347 = vst [vmem:[%s3548_s29 + $0x124] sm:$0xf] %v346_v9  ;;  %v348_v10 = vld [vmem:[%s3541_s28 + $0x250] sm:$0xf] }
  0x45   : > { %v350_v11 = vld [vmem:[%s3541_s28 + $0x258] sm:$0xf]  ;;  %v352_v12 = vld [vmem:[%s3541_s28 + $0x260] sm:$0xf]  ;;  %349 = vst [vmem:[%s3548_s29 + $0x128] sm:$0xf] %v348_v10 }
  0x46   : > { %351 = vst [vmem:[%s3548_s29 + $0x12c] sm:$0xf] %v350_v11  ;;  %353 = vst [vmem:[%s3548_s29 + $0x130] sm:$0xf] %v352_v12  ;;  %v354_v13 = vld [vmem:[%s3541_s28 + $0x268] sm:$0xf] }
  0x47   : > { %v356_v14 = vld [vmem:[%s3541_s28 + $0x270] sm:$0xf]  ;;  %v358_v15 = vld [vmem:[%s3541_s28 + $0x278] sm:$0xf]  ;;  %355 = vst [vmem:[%s3548_s29 + $0x134] sm:$0xf] %v354_v13 }
  0x48   : > { %357 = vst [vmem:[%s3548_s29 + $0x138] sm:$0xf] %v356_v14  ;;  %359 = vst [vmem:[%s3548_s29 + $0x13c] sm:$0xf] %v358_v15  ;;  %v360_v16 = vld [vmem:[%s3541_s28 + $0x280] sm:$0xf] }
  0x49   : > { %v362_v17 = vld [vmem:[%s3541_s28 + $0x288] sm:$0xf]  ;;  %v364_v18 = vld [vmem:[%s3541_s28 + $0x290] sm:$0xf]  ;;  %361 = vst [vmem:[%s3548_s29 + $0x140] sm:$0xf] %v360_v16 }
  0x4a   : > { %363 = vst [vmem:[%s3548_s29 + $0x144] sm:$0xf] %v362_v17  ;;  %365 = vst [vmem:[%s3548_s29 + $0x148] sm:$0xf] %v364_v18  ;;  %v366_v19 = vld [vmem:[%s3541_s28 + $0x298] sm:$0xf] }
  0x4b   : > { %v368_v20 = vld [vmem:[%s3541_s28 + $0x2a0] sm:$0xf]  ;;  %v370_v21 = vld [vmem:[%s3541_s28 + $0x2a8] sm:$0xf]  ;;  %367 = vst [vmem:[%s3548_s29 + $0x14c] sm:$0xf] %v366_v19 }
  0x4c   : > { %369 = vst [vmem:[%s3548_s29 + $0x150] sm:$0xf] %v368_v20  ;;  %371 = vst [vmem:[%s3548_s29 + $0x154] sm:$0xf] %v370_v21  ;;  %v372_v22 = vld [vmem:[%s3541_s28 + $0x2b0] sm:$0xf] }
  0x4d   : > { %v374_v23 = vld [vmem:[%s3541_s28 + $0x2b8] sm:$0xf]  ;;  %v376_v24 = vld [vmem:[%s3541_s28 + $0x2c0] sm:$0xf]  ;;  %373 = vst [vmem:[%s3548_s29 + $0x158] sm:$0xf] %v372_v22 }
  0x4e   : > { %375 = vst [vmem:[%s3548_s29 + $0x15c] sm:$0xf] %v374_v23  ;;  %377 = vst [vmem:[%s3548_s29 + $0x160] sm:$0xf] %v376_v24  ;;  %v378_v25 = vld [vmem:[%s3541_s28 + $0x2c8] sm:$0xf] }
  0x4f   : > { %v380_v26 = vld [vmem:[%s3541_s28 + $0x2d0] sm:$0xf]  ;;  %v382_v27 = vld [vmem:[%s3541_s28 + $0x2d8] sm:$0xf]  ;;  %379 = vst [vmem:[%s3548_s29 + $0x164] sm:$0xf] %v378_v25 }
  0x50   : > { %381 = vst [vmem:[%s3548_s29 + $0x168] sm:$0xf] %v380_v26  ;;  %383 = vst [vmem:[%s3548_s29 + $0x16c] sm:$0xf] %v382_v27  ;;  %v384_v28 = vld [vmem:[%s3541_s28 + $0x2e0] sm:$0xf] }
  0x51   : > { %v386_v29 = vld [vmem:[%s3541_s28 + $0x2e8] sm:$0xf]  ;;  %v388_v30 = vld [vmem:[%s3541_s28 + $0x2f0] sm:$0xf]  ;;  %385 = vst [vmem:[%s3548_s29 + $0x170] sm:$0xf] %v384_v28 }
  0x52   : > { %387 = vst [vmem:[%s3548_s29 + $0x174] sm:$0xf] %v386_v29  ;;  %389 = vst [vmem:[%s3548_s29 + $0x178] sm:$0xf] %v388_v30  ;;  %v390_v31 = vld [vmem:[%s3541_s28 + $0x2f8] sm:$0xf] }
  0x53   : > { %v392_v32 = vld [vmem:[%s3541_s28 + $0x300] sm:$0xf]  ;;  %v394_v33 = vld [vmem:[%s3541_s28 + $0x308] sm:$0xf]  ;;  %391 = vst [vmem:[%s3548_s29 + $0x17c] sm:$0xf] %v390_v31 }
  0x54   : > { %393 = vst [vmem:[%s3548_s29 + $0x180] sm:$0xf] %v392_v32  ;;  %395 = vst [vmem:[%s3548_s29 + $0x184] sm:$0xf] %v394_v33  ;;  %v396_v34 = vld [vmem:[%s3541_s28 + $0x310] sm:$0xf] }
  0x55   : > { %v398_v35 = vld [vmem:[%s3541_s28 + $0x318] sm:$0xf]  ;;  %v400_v36 = vld [vmem:[%s3541_s28 + $0x320] sm:$0xf]  ;;  %397 = vst [vmem:[%s3548_s29 + $0x188] sm:$0xf] %v396_v34 }
  0x56   : > { %399 = vst [vmem:[%s3548_s29 + $0x18c] sm:$0xf] %v398_v35  ;;  %401 = vst [vmem:[%s3548_s29 + $0x190] sm:$0xf] %v400_v36  ;;  %v402_v37 = vld [vmem:[%s3541_s28 + $0x328] sm:$0xf] }
  0x57   : > { %v404_v38 = vld [vmem:[%s3541_s28 + $0x330] sm:$0xf]  ;;  %v406_v39 = vld [vmem:[%s3541_s28 + $0x338] sm:$0xf]  ;;  %403 = vst [vmem:[%s3548_s29 + $0x194] sm:$0xf] %v402_v37 }
  0x58   : > { %405 = vst [vmem:[%s3548_s29 + $0x198] sm:$0xf] %v404_v38  ;;  %407 = vst [vmem:[%s3548_s29 + $0x19c] sm:$0xf] %v406_v39  ;;  %v408_v40 = vld [vmem:[%s3541_s28 + $0x340] sm:$0xf] }
  0x59   : > { %v410_v41 = vld [vmem:[%s3541_s28 + $0x348] sm:$0xf]  ;;  %v412_v42 = vld [vmem:[%s3541_s28 + $0x350] sm:$0xf]  ;;  %409 = vst [vmem:[%s3548_s29 + $0x1a0] sm:$0xf] %v408_v40 }
  0x5a   : > { %411 = vst [vmem:[%s3548_s29 + $0x1a4] sm:$0xf] %v410_v41  ;;  %413 = vst [vmem:[%s3548_s29 + $0x1a8] sm:$0xf] %v412_v42  ;;  %v414_v43 = vld [vmem:[%s3541_s28 + $0x358] sm:$0xf] }
  0x5b   : > { %v416_v44 = vld [vmem:[%s3541_s28 + $0x360] sm:$0xf]  ;;  %v418_v45 = vld [vmem:[%s3541_s28 + $0x368] sm:$0xf]  ;;  %415 = vst [vmem:[%s3548_s29 + $0x1ac] sm:$0xf] %v414_v43 }
  0x5c   : > { %417 = vst [vmem:[%s3548_s29 + $0x1b0] sm:$0xf] %v416_v44  ;;  %419 = vst [vmem:[%s3548_s29 + $0x1b4] sm:$0xf] %v418_v45  ;;  %v420_v46 = vld [vmem:[%s3541_s28 + $0x370] sm:$0xf] }
  0x5d   : > { %v422_v47 = vld [vmem:[%s3541_s28 + $0x378] sm:$0xf]  ;;  %v424_v48 = vld [vmem:[%s3541_s28 + $0x380] sm:$0xf]  ;;  %421 = vst [vmem:[%s3548_s29 + $0x1b8] sm:$0xf] %v420_v46 }
  0x5e   : > { %423 = vst [vmem:[%s3548_s29 + $0x1bc] sm:$0xf] %v422_v47  ;;  %425 = vst [vmem:[%s3548_s29 + $0x1c0] sm:$0xf] %v424_v48  ;;  %v426_v49 = vld [vmem:[%s3541_s28 + $0x388] sm:$0xf] }
  0x5f   : > { %v428_v50 = vld [vmem:[%s3541_s28 + $0x390] sm:$0xf]  ;;  %v430_v51 = vld [vmem:[%s3541_s28 + $0x398] sm:$0xf]  ;;  %427 = vst [vmem:[%s3548_s29 + $0x1c4] sm:$0xf] %v426_v49 }
  0x60   : > { %429 = vst [vmem:[%s3548_s29 + $0x1c8] sm:$0xf] %v428_v50  ;;  %431 = vst [vmem:[%s3548_s29 + $0x1cc] sm:$0xf] %v430_v51  ;;  %v432_v52 = vld [vmem:[%s3541_s28 + $0x3a0] sm:$0xf] }
  0x61   : > { %v434_v53 = vld [vmem:[%s3541_s28 + $0x3a8] sm:$0xf]  ;;  %v436_v54 = vld [vmem:[%s3541_s28 + $0x3b0] sm:$0xf]  ;;  %433 = vst [vmem:[%s3548_s29 + $0x1d0] sm:$0xf] %v432_v52 }
  0x62   : > { %435 = vst [vmem:[%s3548_s29 + $0x1d4] sm:$0xf] %v434_v53  ;;  %437 = vst [vmem:[%s3548_s29 + $0x1d8] sm:$0xf] %v436_v54  ;;  %v438_v55 = vld [vmem:[%s3541_s28 + $0x3b8] sm:$0xf] }
  0x63   : > { %v440_v56 = vld [vmem:[%s3541_s28 + $0x3c0] sm:$0xf]  ;;  %v442_v57 = vld [vmem:[%s3541_s28 + $0x3c8] sm:$0xf]  ;;  %439 = vst [vmem:[%s3548_s29 + $0x1dc] sm:$0xf] %v438_v55 }
  0x64   : > { %441 = vst [vmem:[%s3548_s29 + $0x1e0] sm:$0xf] %v440_v56  ;;  %443 = vst [vmem:[%s3548_s29 + $0x1e4] sm:$0xf] %v442_v57  ;;  %v444_v58 = vld [vmem:[%s3541_s28 + $0x3d0] sm:$0xf] }
  0x65   : > { %v446_v59 = vld [vmem:[%s3541_s28 + $0x3d8] sm:$0xf]  ;;  %v448_v60 = vld [vmem:[%s3541_s28 + $0x3e0] sm:$0xf]  ;;  %445 = vst [vmem:[%s3548_s29 + $0x1e8] sm:$0xf] %v444_v58 }
  0x66   : > { %447 = vst [vmem:[%s3548_s29 + $0x1ec] sm:$0xf] %v446_v59  ;;  %449 = vst [vmem:[%s3548_s29 + $0x1f0] sm:$0xf] %v448_v60  ;;  %v450_v61 = vld [vmem:[%s3541_s28 + $0x3e8] sm:$0xf] }
  0x67   : > { %v452_v62 = vld [vmem:[%s3541_s28 + $0x3f0] sm:$0xf]  ;;  %v454_v63 = vld [vmem:[%s3541_s28 + $0x3f8] sm:$0xf]  ;;  %451 = vst [vmem:[%s3548_s29 + $0x1f4] sm:$0xf] %v450_v61 }
  0x68   : > { %453 = vst [vmem:[%s3548_s29 + $0x1f8] sm:$0xf] %v452_v62  ;;  %455 = vst [vmem:[%s3548_s29 + $0x1fc] sm:$0xf] %v454_v63  ;;  %v456_v0 = vld [vmem:[%s3541_s28 + $0x400] sm:$0xf] }
  0x69   : > { %v458_v1 = vld [vmem:[%s3541_s28 + $0x408] sm:$0xf]  ;;  %v460_v2 = vld [vmem:[%s3541_s28 + $0x410] sm:$0xf]  ;;  %457 = vst [vmem:[%s3548_s29 + $0x200] sm:$0xf] %v456_v0 }
  0x6a   : > { %459 = vst [vmem:[%s3548_s29 + $0x204] sm:$0xf] %v458_v1  ;;  %461 = vst [vmem:[%s3548_s29 + $0x208] sm:$0xf] %v460_v2  ;;  %v462_v3 = vld [vmem:[%s3541_s28 + $0x418] sm:$0xf] }
  0x6b   : > { %v464_v4 = vld [vmem:[%s3541_s28 + $0x420] sm:$0xf]  ;;  %v466_v5 = vld [vmem:[%s3541_s28 + $0x428] sm:$0xf]  ;;  %463 = vst [vmem:[%s3548_s29 + $0x20c] sm:$0xf] %v462_v3 }
  0x6c   : > { %465 = vst [vmem:[%s3548_s29 + $0x210] sm:$0xf] %v464_v4  ;;  %467 = vst [vmem:[%s3548_s29 + $0x214] sm:$0xf] %v466_v5  ;;  %v468_v6 = vld [vmem:[%s3541_s28 + $0x430] sm:$0xf] }
  0x6d   : > { %v470_v7 = vld [vmem:[%s3541_s28 + $0x438] sm:$0xf]  ;;  %v472_v8 = vld [vmem:[%s3541_s28 + $0x440] sm:$0xf]  ;;  %469 = vst [vmem:[%s3548_s29 + $0x218] sm:$0xf] %v468_v6 }
  0x6e   : > { %471 = vst [vmem:[%s3548_s29 + $0x21c] sm:$0xf] %v470_v7  ;;  %473 = vst [vmem:[%s3548_s29 + $0x220] sm:$0xf] %v472_v8  ;;  %v474_v9 = vld [vmem:[%s3541_s28 + $0x448] sm:$0xf] }
  0x6f   : > { %v476_v10 = vld [vmem:[%s3541_s28 + $0x450] sm:$0xf]  ;;  %v478_v11 = vld [vmem:[%s3541_s28 + $0x458] sm:$0xf]  ;;  %475 = vst [vmem:[%s3548_s29 + $0x224] sm:$0xf] %v474_v9 }
  0x70   : > { %477 = vst [vmem:[%s3548_s29 + $0x228] sm:$0xf] %v476_v10  ;;  %479 = vst [vmem:[%s3548_s29 + $0x22c] sm:$0xf] %v478_v11  ;;  %v480_v12 = vld [vmem:[%s3541_s28 + $0x460] sm:$0xf] }
  0x71   : > { %v482_v13 = vld [vmem:[%s3541_s28 + $0x468] sm:$0xf]  ;;  %v484_v14 = vld [vmem:[%s3541_s28 + $0x470] sm:$0xf]  ;;  %481 = vst [vmem:[%s3548_s29 + $0x230] sm:$0xf] %v480_v12 }
  0x72   : > { %483 = vst [vmem:[%s3548_s29 + $0x234] sm:$0xf] %v482_v13  ;;  %485 = vst [vmem:[%s3548_s29 + $0x238] sm:$0xf] %v484_v14  ;;  %v486_v15 = vld [vmem:[%s3541_s28 + $0x478] sm:$0xf] }
  0x73   : > { %487 = vst [vmem:[%s3548_s29 + $0x23c] sm:$0xf] %v486_v15 }
  0x74 PF: > { %p2744_p8 = scmp.ge.s32.totalorder %s3471_s16, 1  ;;  %p804_p9 = scmp.lt.s32.totalorder %s3471_s16, 3 }
  0x76   : > { %p805_p10 = pnand %p2744_p8, %p804_p9 }
  0x78   : > { %808 = sbr.rel (%p805_p10) target bundleno = 516 (0x204), region = 69 }
  0x7d   : > { %s811_s30 = sand.u32 1, %s3455_s12   ;;  %v3291_v16 = vld [vmem:[%s4333_s0 + $0x4] ss:$36 sps:$4 sm:$0xff]   ;;  %v3294_v17 = vld [vmem:[%s4333_s0 + $0xc] ss:$36 sps:$4 sm:$0xff]   ;;  %p859_p11 = scmp.lt.s32.totalorder %s3463_s14, 1 }
  0x7e   : > { %s3216_s4 = smul.u32 576, %s811_s30  ;;  %1956 = vmatprep.mubr.bf16.mxu0 %v3291_v16  ;;  %2053 = vmatprep.mubr.bf16.mxu1 %v3294_v17  ;;  %v3289_v48 = vld [vmem:[%s4333_s0] ss:$36 sps:$4 sm:$0xff]   ;;  %v3292_v50 = vld [vmem:[%s4333_s0 + $0x8] ss:$36 sps:$4 sm:$0xff]   ;;  %s2745_s23 = sshll.u32 %s811_s30, 7 }
  0x7f   : > { %v3299_v52 = vld [vmem:[%s4333_s0 + $0x4c] ss:$36 sps:$4 sm:$0xff]   ;;  %v3301_v57 = vld [vmem:[%s4333_s0 + $0x54] ss:$36 sps:$4 sm:$0xff]   ;;  %v3311_v1 = vld [vmem:[%s4333_s0 + $0x9c] ss:$36 sps:$4 sm:$0xff]  }
  0x80   : > { %s3844_s9 = scalar_lea.vmem [#allocation3], %s3216_s4  ;;  %v3303_v58 = vld [vmem:[%s4333_s0 + $0x48] ss:$36 sps:$4 sm:$0xff]   ;;  %v3304_v59 = vld [vmem:[%s4333_s0 + $0x50] ss:$36 sps:$4 sm:$0xff]   ;;  %s4264_s12 = scalar_lea.vmem [#allocation4], %s2745_s23 }
  0x81   : > { %v3257_v18 = vld [vmem:[%s3844_s9 + $0x78] sm:$0xff]   ;;  %v3261_v22 = vld [vmem:[%s3844_s9 + $0x70] sm:$0xff]   ;;  %v3265_v26 = vld [vmem:[%s3844_s9 + $0x68] sm:$0xff]   ;;  %s4210_s11 = scalar_select %p859_p11, %s3463_s14, 1 }
  0x82   : > { %v3258_v19 = vld [vmem:[%s3844_s9 + $0xf8] sm:$0xff]   ;;  %2895 = vmatprep.subr.bf16.mxu0 %v3257_v18  ;;  %v3262_v23 = vld [vmem:[%s3844_s9 + $0xf0] sm:$0xff]   ;;  %v3266_v27 = vld [vmem:[%s3844_s9 + $0xe8] sm:$0xff]   ;;  %s2892_s30 = sshll.u32 (%p3528_p6), %s3463_s14, 3 }
  0x83   : > { %v3259_v20 = vld [vmem:[%s3844_s9 + $0x38] sm:$0xff]   ;;  %2959 = vmatprep.subr.bf16.mxu1 %v3258_v19  ;;  %v3263_v24 = vld [vmem:[%s3844_s9 + $0x30] sm:$0xff]   ;;  %v3267_v28 = vld [vmem:[%s3844_s9 + $0x28] sm:$0xff]   ;;  %s861_s20 = scalar_lea.vmem %s4335_s2, %s4210_s11  ;;  %s2542_s26 = scalar_lea.vmem (%p3528_p6), %s4336_s3, %s2892_s30 }
  0x84   : > { %v3260_v21 = vld [vmem:[%s3844_s9 + $0xb8] sm:$0xff]   ;;  %2896 = vmatpush3.bf16.msra.mxu0 %v3259_v20  ;;  %v3264_v25 = vld [vmem:[%s3844_s9 + $0xb0] sm:$0xff]   ;;  %v3268_v29 = vld [vmem:[%s3844_s9 + $0xa8] sm:$0xff]  }
  0x85   : > { %2960 = vmatpush3.bf16.msra.mxu1 %v3260_v21  ;;  %2897 = vmatprep.subr.bf16.mxu0 %v3261_v22  ;;  %v3269_v30 = vld [vmem:[%s3844_s9 + $0x60] sm:$0xff]   ;;  %v3273_v34 = vld [vmem:[%s3844_s9 + $0x58] sm:$0xff]   ;;  %v3277_v38 = vld [vmem:[%s3844_s9 + $0x50] sm:$0xff]  }
  0x86   : > { %2961 = vmatprep.subr.bf16.mxu1 %v3262_v23  ;;  %v3270_v31 = vld [vmem:[%s3844_s9 + $0xe0] sm:$0xff]   ;;  %v3274_v35 = vld [vmem:[%s3844_s9 + $0xd8] sm:$0xff]   ;;  %v3278_v39 = vld [vmem:[%s3844_s9 + $0xd0] sm:$0xff]  }
  0x87   : > { %v3271_v32 = vld [vmem:[%s3844_s9 + $0x20] sm:$0xff]   ;;  %v3275_v36 = vld [vmem:[%s3844_s9 + $0x18] sm:$0xff]   ;;  %v3279_v40 = vld [vmem:[%s3844_s9 + $0x10] sm:$0xff]  }
  0x88   : > { %2898 = vmatpush3.bf16.msra.mxu0 %v3263_v24  ;;  %v3272_v33 = vld [vmem:[%s3844_s9 + $0xa0] sm:$0xff]   ;;  %v3276_v37 = vld [vmem:[%s3844_s9 + $0x98] sm:$0xff]   ;;  %v3280_v41 = vld [vmem:[%s3844_s9 + $0x90] sm:$0xff]  }
  0x89   : > { %2962 = vmatpush3.bf16.msra.mxu1 %v3264_v25  ;;  %2899 = vmatprep.subr.bf16.mxu0 %v3265_v26  ;;  %v3281_v42 = vld [vmem:[%s3844_s9 + $0x48] sm:$0xff]   ;;  %v3285_v46 = vld [vmem:[%s3844_s9 + $0x40] sm:$0xff]   ;;  %v3295_v53 = vld [vmem:[%s3844_s9 + $0x178] sm:$0xff]  }
  0x8a   : > { %2963 = vmatprep.subr.bf16.mxu1 %v3266_v27  ;;  %v3282_v43 = vld [vmem:[%s3844_s9 + $0xc8] sm:$0xff]   ;;  %v3286_v47 = vld [vmem:[%s3844_s9 + $0xc0] sm:$0xff]   ;;  %v3296_v54 = vld [vmem:[%s3844_s9 + $0x1f8] sm:$0xff]  }
  0x8b   : > { %v3283_v44 = vld [vmem:[%s3844_s9 + $0x8] sm:$0xff]   ;;  %v3287_v49 = vld [vmem:[%s3844_s9] sm:$0xff]   ;;  %v3297_v55 = vld [vmem:[%s3844_s9 + $0x138] sm:$0xff]  }
  0x8c   : > { %2900 = vmatpush3.bf16.msra.mxu0 %v3267_v28  ;;  %v3284_v45 = vld [vmem:[%s3844_s9 + $0x88] sm:$0xff]   ;;  %v3288_v51 = vld [vmem:[%s3844_s9 + $0x80] sm:$0xff]   ;;  %v3298_v56 = vld [vmem:[%s3844_s9 + $0x1b8] sm:$0xff]  }
  0x8d   : > { %2964 = vmatpush3.bf16.msra.mxu1 %v3268_v29  ;;  %2901 = vmatprep.subr.bf16.mxu0 %v3269_v30  ;;  %v3305_v60 = vld [vmem:[%s3844_s9 + $0x170] sm:$0xff]   ;;  %v3315_v2 = vld [vmem:[%s3844_s9 + $0x168] sm:$0xff]   ;;  %v3314_v5 = vld [vmem:[%s4333_s0 + $0x98] ss:$36 sps:$4 sm:$0xff]  }
  0x8e   : > { %2965 = vmatprep.subr.bf16.mxu1 %v3270_v31  ;;  %v3306_v61 = vld [vmem:[%s3844_s9 + $0x1f0] sm:$0xff]   ;;  %v3316_v4 = vld [vmem:[%s3844_s9 + $0x1e8] sm:$0xff]   ;;  %v3319_v8 = vld [vmem:[%s4333_s0 + $0xdc] ss:$36 sps:$4 sm:$0xff]  }
  0x8f   : > { %v3307_v62 = vld [vmem:[%s3844_s9 + $0x130] sm:$0xff]   ;;  %v3317_v6 = vld [vmem:[%s3844_s9 + $0x128] sm:$0xff]   ;;  %v3325_v10 = vld [vmem:[%s3844_s9 + $0x160] sm:$0xff]  }
  0x90   : > { %2902 = vmatpush3.bf16.msra.mxu0 %v3271_v32  ;;  %v3308_v63 = vld [vmem:[%s3844_s9 + $0x1b0] sm:$0xff]   ;;  %v3318_v7 = vld [vmem:[%s3844_s9 + $0x1a8] sm:$0xff]   ;;  %v3326_v11 = vld [vmem:[%s3844_s9 + $0x1e0] sm:$0xff]  }
  0x91   : > { %2966 = vmatpush3.bf16.msra.mxu1 %v3272_v33  ;;  %2903 = vmatprep.subr.bf16.mxu0 %v3273_v34  ;;  %v3309_v0 = vld [vmem:[%s4333_s0 + $0x94] ss:$36 sps:$4 sm:$0xff]   ;;  %v3321_v9 = vld [vmem:[%s4333_s0 + $0xe4] ss:$36 sps:$4 sm:$0xff]   ;;  %v3331_v17 = vld [vmem:[%s4333_s0 + $0x12c] ss:$36 sps:$4 sm:$0xff]  }
  0x92   : > { %2967 = vmatprep.subr.bf16.mxu1 %v3274_v35  ;;  %v3313_v3 = vld [vmem:[%s4333_s0 + $0x90] ss:$36 sps:$4 sm:$0xff]   ;;  %v3327_v12 = vld [vmem:[%s3844_s9 + $0x120] sm:$0xff]   ;;  %v3323_v14 = vld [vmem:[%s4333_s0 + $0xd8] ss:$36 sps:$4 sm:$0xff]  }
  0x93   : > { %v3328_v13 = vld [vmem:[%s3844_s9 + $0x1a0] sm:$0xff]   ;;  %v3335_v18 = vld [vmem:[%s3844_s9 + $0x158] sm:$0xff]   ;;  %v3334_v23 = vld [vmem:[%s4333_s0 + $0x128] ss:$36 sps:$4 sm:$0xff]  }
  0x94   : > { %2904 = vmatpush3.bf16.msra.mxu0 %v3275_v36  ;;  %v3324_v15 = vld [vmem:[%s4333_s0 + $0xe0] ss:$36 sps:$4 sm:$0xff]   ;;  %v3336_v19 = vld [vmem:[%s3844_s9 + $0x1d8] sm:$0xff]   ;;  %v3339_v24 = vld [vmem:[%s4333_s0 + $0x16c] ss:$36 sps:$4 sm:$0xff]  }
  0x95   : > { %2968 = vmatpush3.bf16.msra.mxu1 %v3276_v37  ;;  %2905 = vmatprep.subr.bf16.mxu0 %v3277_v38  ;;  %v3329_v16 = vld [vmem:[%s4333_s0 + $0x124] ss:$36 sps:$4 sm:$0xff]   ;;  %v3337_v20 = vld [vmem:[%s3844_s9 + $0x118] sm:$0xff]   ;;  %v3345_v26 = vld [vmem:[%s3844_s9 + $0x150] sm:$0xff]  }
  0x96   : > { %2969 = vmatprep.subr.bf16.mxu1 %v3278_v39  ;;  %v3338_v21 = vld [vmem:[%s3844_s9 + $0x198] sm:$0xff]   ;;  %v3333_v22 = vld [vmem:[%s4333_s0 + $0x120] ss:$36 sps:$4 sm:$0xff]   ;;  %v3346_v27 = vld [vmem:[%s3844_s9 + $0x1d0] sm:$0xff]  }
  0x97   : > { %v3341_v25 = vld [vmem:[%s4333_s0 + $0x174] ss:$36 sps:$4 sm:$0xff]   ;;  %v3343_v30 = vld [vmem:[%s4333_s0 + $0x168] ss:$36 sps:$4 sm:$0xff]   ;;  %v3351_v33 = vld [vmem:[%s4333_s0 + $0x1bc] ss:$36 sps:$4 sm:$0xff]  }
  0x98   : > { %2906 = vmatpush3.bf16.msra.mxu0 %v3279_v40  ;;  %v3347_v28 = vld [vmem:[%s3844_s9 + $0x110] sm:$0xff]   ;;  %v3355_v34 = vld [vmem:[%s3844_s9 + $0x148] sm:$0xff]   ;;  %v3354_v39 = vld [vmem:[%s4333_s0 + $0x1b8] ss:$36 sps:$4 sm:$0xff]  }
  0x99   : > { %2970 = vmatpush3.bf16.msra.mxu1 %v3280_v41  ;;  %2907 = vmatprep.subr.bf16.mxu0 %v3281_v42  ;;  %v3348_v29 = vld [vmem:[%s3844_s9 + $0x190] sm:$0xff]   ;;  %v3356_v35 = vld [vmem:[%s3844_s9 + $0x1c8] sm:$0xff]   ;;  %v3359_v40 = vld [vmem:[%s4333_s0 + $0x1fc] ss:$36 sps:$4 sm:$0xff]  }
  0x9a   : > { %2971 = vmatprep.subr.bf16.mxu1 %v3282_v43  ;;  %v3344_v31 = vld [vmem:[%s4333_s0 + $0x170] ss:$36 sps:$4 sm:$0xff]   ;;  %v3357_v36 = vld [vmem:[%s3844_s9 + $0x108] sm:$0xff]   ;;  %v3365_v41 = vld [vmem:[%s3844_s9 + $0x140] sm:$0xff]  }
  0x9b   : > { %v3349_v32 = vld [vmem:[%s4333_s0 + $0x1b4] ss:$36 sps:$4 sm:$0xff]   ;;  %v3358_v37 = vld [vmem:[%s3844_s9 + $0x188] sm:$0xff]   ;;  %v3366_v43 = vld [vmem:[%s3844_s9 + $0x1c0] sm:$0xff]  }
  0x9c   : > { %2908 = vmatpush3.bf16.msra.mxu0 %v3283_v44  ;;  %v3353_v38 = vld [vmem:[%s4333_s0 + $0x1b0] ss:$36 sps:$4 sm:$0xff]   ;;  %v3361_v42 = vld [vmem:[%s4333_s0 + $0x204] ss:$36 sps:$4 sm:$0xff]  }
  0x9d   : > { %2972 = vmatpush3.bf16.msra.mxu1 %v3284_v45  ;;  %2909 = vmatprep.subr.bf16.mxu0 %v3285_v46  ;;  %v3367_v44 = vld [vmem:[%s3844_s9 + $0x100] sm:$0xff]   ;;  %v3375_v46 = vld [vmem:[%s3844_s9 + $0x238] sm:$0xff]  }
  0x9e   : > { %2973 = vmatprep.subr.bf16.mxu1 %v3286_v47  ;;  %v3368_v45 = vld [vmem:[%s3844_s9 + $0x180] sm:$0xff]   ;;  %v3363_v47 = vld [vmem:[%s4333_s0 + $0x1f8] ss:$36 sps:$4 sm:$0xff]  }
  0xa0   : > { %2910 = vmatpush3.bf16.msra.mxu0 %v3287_v49  ;;  %v3371_v49 = vld [vmem:[%s4333_s0 + $0x14] ss:$36 sps:$4 sm:$0xff]  }
  0xa1   : > { %2974 = vmatpush3.bf16.msra.mxu1 %v3288_v51  ;;  %3023 = vmatprep.subr.bf16.mxu0 %v3295_v53  ;;  %v3369_v51 = vld [vmem:[%s4333_s0 + $0x10] ss:$36 sps:$4 sm:$0xff]   ;;  %v3376_v53 = vld [vmem:[%s4333_s0 + $0x5c] ss:$36 sps:$4 sm:$0xff]  }
  0xa2   : > { %3087 = vmatprep.subr.bf16.mxu1 %v3296_v54  ;;  %v3378_v54 = vld [vmem:[%s4333_s0 + $0x64] ss:$36 sps:$4 sm:$0xff]  }
  0xa3   : > { %1957 = vmatmul.mubr.bf16.vlgmr.msra.gmra.mxu0 %v3289_v48  ;;  %v3364_v48 = vld [vmem:[%s4333_s0 + $0x200] ss:$36 sps:$4 sm:$0xff]  }
  0xa4   : > { %2054 = vmatmul.mubr.bf16.vlgmr.msra.gmra.mxu1 %v3292_v50  ;;  %3024 = vmatpush3.bf16.msra.mxu0 %v3297_v55  ;;  %v3374_v50 = vld [vmem:[%s4333_s0 + $0x1c] ss:$36 sps:$4 sm:$0xff]   ;;  %v3382_v55 = vld [vmem:[%s3844_s9 + $0x230] sm:$0xff]  }
  0xa5   : > { %3088 = vmatpush3.bf16.msra.mxu1 %v3298_v56  ;;  %1964 = vmatprep.mubr.bf16.mxu0 %v3299_v52  ;;  %v3372_v52 = vld [vmem:[%s4333_s0 + $0x18] ss:$36 sps:$4 sm:$0xff]   ;;  %v3389_v56 = vld [vmem:[%s3844_s9 + $0x228] sm:$0xff]  }
  0xa6   : > { %2061 = vmatprep.mubr.bf16.mxu1 %v3301_v57  ;;  %3025 = vmatprep.subr.bf16.mxu0 %v3305_v60  ;;  %v3380_v57 = vld [vmem:[%s4333_s0 + $0x58] ss:$36 sps:$4 sm:$0xff]   ;;  %v3385_v60 = vld [vmem:[%s4333_s0 + $0xac] ss:$36 sps:$4 sm:$0xff]  }
  0xa7   : > { %3089 = vmatprep.subr.bf16.mxu1 %v3306_v61  ;;  %v3396_v61 = vld [vmem:[%s3844_s9 + $0x220] sm:$0xff]  }
  0xa8   : > { %3026 = vmatpush3.bf16.msra.mxu0 %v3307_v62  ;;  %v3387_v62 = vld [vmem:[%s4333_s0 + $0xa0] ss:$36 sps:$4 sm:$0xff]  }
  0xa9   : > { %3090 = vmatpush3.bf16.msra.mxu1 %v3308_v63  ;;  %3027 = vmatprep.subr.bf16.mxu0 %v3315_v2  ;;  %v3403_v63 = vld [vmem:[%s3844_s9 + $0x218] sm:$0xff]  }
  0xaa   : > { %3091 = vmatprep.subr.bf16.mxu1 %v3316_v4  ;;  %v3392_v2 = vld [vmem:[%s4333_s0 + $0xf4] ss:$36 sps:$4 sm:$0xff]   ;;  %v3417_v4 = vld [vmem:[%s3844_s9 + $0x208] sm:$0xff]  }
  0xab   : > { %1965 = vmatmul.mubr.bf16.gmra.mxu0 %v3303_v58  ;;  %v3381_v58 = vld [vmem:[%s4333_s0 + $0x60] ss:$36 sps:$4 sm:$0xff]  }
  0xac   : > { %2062 = vmatmul.mubr.bf16.gmra.mxu1 %v3304_v59  ;;  %1972 = vmatprep.mubr.bf16.mxu0 %v3309_v0  ;;  %v3383_v59 = vld [vmem:[%s4333_s0 + $0xa4] ss:$36 sps:$4 sm:$0xff]  }
  0xad   : > { %2069 = vmatprep.mubr.bf16.mxu1 %v3311_v1  ;;  %3028 = vmatpush3.bf16.msra.mxu0 %v3317_v6  ;;  %v3388_v0 = vld [vmem:[%s4333_s0 + $0xa8] ss:$36 sps:$4 sm:$0xff]   ;;  %v3395_v6 = vld [vmem:[%s4333_s0 + $0xf0] ss:$36 sps:$4 sm:$0xff]  }
  0xae   : > { %3092 = vmatpush3.bf16.msra.mxu1 %v3318_v7  ;;  %3029 = vmatprep.subr.bf16.mxu0 %v3325_v10  ;;  %v3390_v1 = vld [vmem:[%s4333_s0 + $0xec] ss:$36 sps:$4 sm:$0xff]   ;;  %v3397_v7 = vld [vmem:[%s4333_s0 + $0x134] ss:$36 sps:$4 sm:$0xff]  }
  0xaf   : > { %3093 = vmatprep.subr.bf16.mxu1 %v3326_v11  ;;  %v3401_v10 = vld [vmem:[%s4333_s0 + $0x130] ss:$36 sps:$4 sm:$0xff]   ;;  %v3402_v11 = vld [vmem:[%s4333_s0 + $0x138] ss:$36 sps:$4 sm:$0xff]  }
  0xb1   : > { %3030 = vmatpush3.bf16.msra.mxu0 %v3327_v12  ;;  %v3404_v12 = vld [vmem:[%s4333_s0 + $0x17c] ss:$36 sps:$4 sm:$0xff]  }
  0xb2   : > { %3094 = vmatpush3.bf16.msra.mxu1 %v3328_v13  ;;  %3031 = vmatprep.subr.bf16.mxu0 %v3335_v18  ;;  %v3406_v13 = vld [vmem:[%s4333_s0 + $0x184] ss:$36 sps:$4 sm:$0xff]  }
  0xb3   : > { %1973 = vmatmul.mubr.bf16.gmra.mxu0 %v3313_v3  ;;  %3095 = vmatprep.subr.bf16.mxu1 %v3336_v19  ;;  %v3410_v3 = vld [vmem:[%s3844_s9 + $0x210] sm:$0xff]   ;;  %v3415_v18 = vld [vmem:[%s4333_s0 + $0x1c0] ss:$36 sps:$4 sm:$0xff]   ;;  %v3416_v19 = vld [vmem:[%s4333_s0 + $0x1c8] ss:$36 sps:$4 sm:$0xff]  }
  0xb4   : > { %2070 = vmatmul.mubr.bf16.gmra.mxu1 %v3314_v5  ;;  %1980 = vmatprep.mubr.bf16.mxu0 %v3319_v8  ;;  %v3394_v5 = vld [vmem:[%s4333_s0 + $0xe8] ss:$36 sps:$4 sm:$0xff]   ;;  %v3399_v8 = vld [vmem:[%s4333_s0 + $0x13c] ss:$36 sps:$4 sm:$0xff]  }
  0xb5   : > { %2077 = vmatprep.mubr.bf16.mxu1 %v3321_v9  ;;  %3032 = vmatpush3.bf16.msra.mxu0 %v3337_v20  ;;  %v3424_v9 = vld [vmem:[%s3844_s9 + $0x200] sm:$0xff]   ;;  %v3418_v20 = vld [vmem:[%s4333_s0 + $0x20c] ss:$36 sps:$4 sm:$0xff]  }
  0xb6   : > { %3096 = vmatpush3.bf16.msra.mxu1 %v3338_v21  ;;  %3033 = vmatprep.subr.bf16.mxu0 %v3345_v26  ;;  %v3420_v21 = vld [vmem:[%s4333_s0 + $0x214] ss:$36 sps:$4 sm:$0xff]   ;;  %v3427_v26 = vld [vmem:[%s4333_s0 + $0x68] ss:$36 sps:$4 sm:$0xff]  }
  0xb7   : > { %3097 = vmatprep.subr.bf16.mxu1 %v3346_v27  ;;  %v3428_v27 = vld [vmem:[%s4333_s0 + $0x188] ss:$36 sps:$4 sm:$0xff]  }
  0xb9   : > { %3034 = vmatpush3.bf16.msra.mxu0 %v3347_v28  ;;  %v3429_v28 = vld [vmem:[%s4333_s0 + $0xb0] ss:$36 sps:$4 sm:$0xff]  }
  0xba   : > { %3098 = vmatpush3.bf16.msra.mxu1 %v3348_v29  ;;  %3035 = vmatprep.subr.bf16.mxu0 %v3355_v34  ;;  %v3430_v29 = vld [vmem:[%s4333_s0 + $0x1d0] ss:$36 sps:$4 sm:$0xff]  }
  0xbb   : > { %1981 = vmatmul.mubr.bf16.gmra.mxu0 %v3323_v14  ;;  %3099 = vmatprep.subr.bf16.mxu1 %v3356_v35  ;;  %v3408_v14 = vld [vmem:[%s4333_s0 + $0x178] ss:$36 sps:$4 sm:$0xff]  }
  0xbc   : > { %2078 = vmatmul.mubr.bf16.gmra.mxu1 %v3324_v15  ;;  %1988 = vmatprep.mubr.bf16.mxu0 %v3329_v16  ;;  %v3409_v15 = vld [vmem:[%s4333_s0 + $0x180] ss:$36 sps:$4 sm:$0xff]  }
  0xbd   : > { %2085 = vmatprep.mubr.bf16.mxu1 %v3331_v17  ;;  %3036 = vmatpush3.bf16.msra.mxu0 %v3357_v36  ;;  %v3411_v16 = vld [vmem:[%s4333_s0 + $0x1c4] ss:$36 sps:$4 sm:$0xff]   ;;  %v3413_v17 = vld [vmem:[%s4333_s0 + $0x1cc] ss:$36 sps:$4 sm:$0xff]  }
  0xbe   : > { %3100 = vmatpush3.bf16.msra.mxu1 %v3358_v37  ;;  %3037 = vmatprep.subr.bf16.mxu0 %v3365_v41 }
  0xbf   : > { %3101 = vmatprep.subr.bf16.mxu1 %v3366_v43 }
  0xc1   : > { %3038 = vmatpush3.bf16.msra.mxu0 %v3367_v44 }
  0xc2   : > { %3102 = vmatpush3.bf16.msra.mxu1 %v3368_v45  ;;  %3167 = vmatprep.subr.bf16.mxu0 %v3375_v46 }
  0xc3   : > { %1989 = vmatmul.mubr.bf16.gmra.mxu0 %v3333_v22  ;;  %3199 = vmatprep.subr.bf16.mxu1 %v3375_v46  ;;  %v3422_v22 = vld [vmem:[%s4333_s0 + $0x208] ss:$36 sps:$4 sm:$0xff]  }
  0xc4   : > { %2086 = vmatmul.mubr.bf16.gmra.mxu1 %v3334_v23  ;;  %1996 = vmatprep.mubr.bf16.mxu0 %v3339_v24  ;;  %v3423_v23 = vld [vmem:[%s4333_s0 + $0x210] ss:$36 sps:$4 sm:$0xff]   ;;  %v3425_v24 = vld [vmem:[%s4333_s0 + $0x20] ss:$36 sps:$4 sm:$0xff]  }
  0xc5   : > { %2093 = vmatprep.mubr.bf16.mxu1 %v3341_v25  ;;  %v3426_v25 = vld [vmem:[%s4333_s0 + $0x140] ss:$36 sps:$4 sm:$0xff]  }
  0xcb   : > { %1997 = vmatmul.mubr.bf16.gmra.mxu0 %v3343_v30  ;;  %v3431_v30 = vld [vmem:[%s4333_s0 + $0xf8] ss:$36 sps:$4 sm:$0xff]  }
  0xcc   : > { %2094 = vmatmul.mubr.bf16.gmra.mxu1 %v3344_v31  ;;  %2004 = vmatprep.mubr.bf16.mxu0 %v3349_v32  ;;  %v3432_v31 = vld [vmem:[%s4333_s0 + $0x218] ss:$36 sps:$4 sm:$0xff]  }
  0xcd   : > { %2101 = vmatprep.mubr.bf16.mxu1 %v3351_v33 }
  0xd3   : > { %2005 = vmatmul.mubr.bf16.gmra.mxu0 %v3353_v38 }
  0xd4   : > { %2102 = vmatmul.mubr.bf16.gmra.mxu1 %v3354_v39  ;;  %2012 = vmatprep.mubr.bf16.mxu0 %v3359_v40 }
  0xd5   : > { %2109 = vmatprep.mubr.bf16.mxu1 %v3361_v42 }
  0xdb   : > { %2013 = vmatmul.mubr.bf16.gmra.mxu0 %v3363_v47 }
  0xdc   : > { %2110 = vmatmul.mubr.bf16.gmra.mxu1 %v3364_v48  ;;  %2150 = vmatprep.mubr.bf16.mxu0 %v3371_v49 }
  0xdd   : > { %2247 = vmatprep.mubr.bf16.mxu1 %v3374_v50 }
  0xe3   : > { %2151 = vmatmul.mubr.bf16.vlgmr.msra.gmra.mxu0 %v3369_v51 }
  0xe4   : > { %2248 = vmatmul.mubr.bf16.vlgmr.msra.gmra.mxu1 %v3372_v52  ;;  %3168 = vmatpush3.bf16.msra.mxu0 %v3375_v46 }
  0xe5   : > { %3207 = vmatpush3.bf16.msra.mxu1 %v3375_v46  ;;  %2158 = vmatprep.mubr.bf16.mxu0 %v3376_v53 }
  0xe6   : > { %2255 = vmatprep.mubr.bf16.mxu1 %v3378_v54  ;;  %3169 = vmatprep.subr.bf16.mxu0 %v3382_v55 }
  0xe7   : > { %3200 = vmatprep.subr.bf16.mxu1 %v3382_v55 }
  0xe8   : > { %3170 = vmatpush3.bf16.msra.mxu0 %v3382_v55 }
  0xe9   : > { %3208 = vmatpush3.bf16.msra.mxu1 %v3382_v55  ;;  %3171 = vmatprep.subr.bf16.mxu0 %v3389_v56 }
  0xea   : > { %3201 = vmatprep.subr.bf16.mxu1 %v3389_v56 }
  0xeb   : > { %2159 = vmatmul.mubr.bf16.gmra.mxu0 %v3380_v57 }
  0xec   : > { %2256 = vmatmul.mubr.bf16.gmra.mxu1 %v3381_v58  ;;  %2166 = vmatprep.mubr.bf16.mxu0 %v3383_v59 }
  0xed   : > { %2263 = vmatprep.mubr.bf16.mxu1 %v3385_v60  ;;  %3172 = vmatpush3.bf16.msra.mxu0 %v3389_v56 }
  0xee   : > { %3209 = vmatpush3.bf16.msra.mxu1 %v3389_v56  ;;  %3173 = vmatprep.subr.bf16.mxu0 %v3396_v61 }
  0xef   : > { %3202 = vmatprep.subr.bf16.mxu1 %v3396_v61 }
  0xf1   : > { %3174 = vmatpush3.bf16.msra.mxu0 %v3396_v61 }
  0xf2   : > { %3210 = vmatpush3.bf16.msra.mxu1 %v3396_v61  ;;  %3175 = vmatprep.subr.bf16.mxu0 %v3403_v63 }
  0xf3   : > { %2167 = vmatmul.mubr.bf16.gmra.mxu0 %v3387_v62  ;;  %3203 = vmatprep.subr.bf16.mxu1 %v3403_v63 }
  0xf4   : > { %2264 = vmatmul.mubr.bf16.gmra.mxu1 %v3388_v0  ;;  %2174 = vmatprep.mubr.bf16.mxu0 %v3390_v1 }
  0xf5   : > { %2271 = vmatprep.mubr.bf16.mxu1 %v3392_v2  ;;  %3176 = vmatpush3.bf16.msra.mxu0 %v3403_v63 }
  0xf6   : > { %3211 = vmatpush3.bf16.msra.mxu1 %v3403_v63  ;;  %3177 = vmatprep.subr.bf16.mxu0 %v3410_v3 }
  0xf7   : > { %3204 = vmatprep.subr.bf16.mxu1 %v3410_v3 }
  0xf9   : > { %3178 = vmatpush3.bf16.msra.mxu0 %v3410_v3 }
  0xfa   : > { %3212 = vmatpush3.bf16.msra.mxu1 %v3410_v3  ;;  %3179 = vmatprep.subr.bf16.mxu0 %v3417_v4 }
  0xfb   : > { %2175 = vmatmul.mubr.bf16.gmra.mxu0 %v3394_v5  ;;  %3205 = vmatprep.subr.bf16.mxu1 %v3417_v4 }
  0xfc   : > { %2272 = vmatmul.mubr.bf16.gmra.mxu1 %v3395_v6  ;;  %2182 = vmatprep.mubr.bf16.mxu0 %v3397_v7 }
  0xfd   : > { %2279 = vmatprep.mubr.bf16.mxu1 %v3399_v8  ;;  %3180 = vmatpush3.bf16.msra.mxu0 %v3417_v4 }
  0xfe   : > { %3213 = vmatpush3.bf16.msra.mxu1 %v3417_v4  ;;  %3181 = vmatprep.subr.bf16.mxu0 %v3424_v9 }
  0xff   : > { %3206 = vmatprep.subr.bf16.mxu1 %v3424_v9 }
 0x101   : > { %3182 = vmatpush3.bf16.msra.mxu0 %v3424_v9 }
 0x102   : > { %3214 = vmatpush3.bf16.msra.mxu1 %v3424_v9 }
 0x103   : > { %2183 = vmatmul.mubr.bf16.gmra.mxu0 %v3401_v10 }
 0x104   : > { %2280 = vmatmul.mubr.bf16.gmra.mxu1 %v3402_v11  ;;  %2190 = vmatprep.mubr.bf16.mxu0 %v3404_v12 }
 0x105   : > { %2287 = vmatprep.mubr.bf16.mxu1 %v3406_v13 }
 0x10b   : > { %2191 = vmatmul.mubr.bf16.gmra.mxu0 %v3408_v14 }
 0x10c   : > { %2288 = vmatmul.mubr.bf16.gmra.mxu1 %v3409_v15  ;;  %2198 = vmatprep.mubr.bf16.mxu0 %v3411_v16 }
 0x10d   : > { %2295 = vmatprep.mubr.bf16.mxu1 %v3413_v17 }
 0x113   : > { %2199 = vmatmul.mubr.bf16.gmra.mxu0 %v3415_v18 }
 0x114   : > { %2296 = vmatmul.mubr.bf16.gmra.mxu1 %v3416_v19  ;;  %2206 = vmatprep.mubr.bf16.mxu0 %v3418_v20 }
 0x115   : > { %2303 = vmatprep.mubr.bf16.mxu1 %v3420_v21 }
 0x11b   : > { %2207 = vmatmul.mubr.bf16.gmra.mxu0 %v3422_v22 }
 0x11c   : > { %2304 = vmatmul.mubr.bf16.gmra.mxu1 %v3423_v23  ;;  %3183 = vmatprep.mubr.bf16.mxu0 %v3425_v24 }
 0x11d   : > { %3191 = vmatprep.mubr.bf16.mxu1 %v3426_v25 }
 0x123   : > { %3184 = vmatmul.mubr.bf16.vlgmr.msra.gmra.mxu0 %v3427_v26 }
 0x124   : > { %3192 = vmatmul.mubr.bf16.vlgmr.msra.gmra.mxu1 %v3428_v27  ;;  %3187 = vmatprep.mubr.bf16.mxu0 %v3429_v28 }
 0x125   : > { %3195 = vmatprep.mubr.bf16.mxu1 %v3430_v29 }
 0x12b   : > { %3188 = vmatmul.mubr.bf16.gmra.mxu0 %v3431_v30 }
 0x12c   : > { %3196 = vmatmul.mubr.bf16.gmra.mxu1 %v3432_v31 }
 0x163   : > { %v2911_v32 = vpop.f32.mrf.mxu0 }
 0x164   : > { %v2975_v33 = vpop.f32.mrf.mxu1 }
 0x165   : > { %v2912_v34 = vpop.f32.mrf.mxu0 }
 0x166   : > { %v2913_v35 = vadd.f32 %v2912_v34, %v2911_v32  ;;  %v2976_v36 = vpop.f32.mrf.mxu1 }
 0x167   : > { %v2977_v37 = vadd.f32 %v2976_v36, %v2975_v33  ;;  %v2914_v38 = vpop.f32.mrf.mxu0 }
 0x168   : > { %v2978_v39 = vpop.f32.mrf.mxu1 }
 0x169   : > { %v4128_v40 = vadd.f32 %v2977_v37, %v2913_v35  ;;  %v2915_v41 = vpop.f32.mrf.mxu0 }
 0x16a   : > { %v2916_v42 = vadd.f32 %v2915_v41, %v2914_v38  ;;  %v2979_v43 = vpop.f32.mrf.mxu1 }
 0x16b   : > { %v2980_v44 = vadd.f32 %v2979_v43, %v2978_v39  ;;  %v2917_v45 = vpop.f32.mrf.mxu0 }
 0x16c   : > { %v2981_v46 = vpop.f32.mrf.mxu1 }
 0x16d   : > { %v4130_v47 = vadd.f32 %v2980_v44, %v2916_v42  ;;  %v2918_v48 = vpop.f32.mrf.mxu0 }
 0x16e   : > { %v2919_v49 = vadd.f32 %v2918_v48, %v2917_v45  ;;  %v2982_v50 = vpop.f32.mrf.mxu1 }
 0x16f   : > { %v2983_v51 = vadd.f32 %v2982_v50, %v2981_v46  ;;  %v2920_v52 = vpop.f32.mrf.mxu0 }
 0x170   : > { %v2984_v53 = vpop.f32.mrf.mxu1 }
 0x171   : > { %v4132_v54 = vadd.f32 %v2983_v51, %v2919_v49  ;;  %v2921_v55 = vpop.f32.mrf.mxu0 }
 0x172   : > { %v2922_v56 = vadd.f32 %v2921_v55, %v2920_v52  ;;  %v2985_v57 = vpop.f32.mrf.mxu1 }
 0x173   : > { %v2986_v58 = vadd.f32 %v2985_v57, %v2984_v53  ;;  %v2923_v59 = vpop.f32.mrf.mxu0 }
 0x174   : > { %v2987_v60 = vpop.f32.mrf.mxu1 }
 0x175   : > { %v4134_v61 = vadd.f32 %v2986_v58, %v2922_v56  ;;  %v2924_v62 = vpop.f32.mrf.mxu0 }
 0x176   : > { %v2925_v63 = vadd.f32 %v2924_v62, %v2923_v59  ;;  %v2988_v0 = vpop.f32.mrf.mxu1 }
 0x177   : > { %v2989_v1 = vadd.f32 %v2988_v0, %v2987_v60  ;;  %v2926_v2 = vpop.f32.mrf.mxu0 }
 0x178   : > { %v2990_v3 = vpop.f32.mrf.mxu1 }
 0x179   : > { %v4136_v4 = vadd.f32 %v2989_v1, %v2925_v63  ;;  %v2927_v5 = vpop.f32.mrf.mxu0 }
 0x17a   : > { %v2928_v6 = vadd.f32 %v2927_v5, %v2926_v2  ;;  %v2991_v7 = vpop.f32.mrf.mxu1 }
 0x17b   : > { %v2992_v8 = vadd.f32 %v2991_v7, %v2990_v3  ;;  %v2929_v9 = vpop.f32.mrf.mxu0 }
 0x17c   : > { %v2993_v10 = vpop.f32.mrf.mxu1 }
 0x17d   : > { %v4138_v11 = vadd.f32 %v2992_v8, %v2928_v6  ;;  %v2930_v12 = vpop.f32.mrf.mxu0 }
 0x17e   : > { %v2931_v13 = vadd.f32 %v2930_v12, %v2929_v9  ;;  %v2994_v14 = vpop.f32.mrf.mxu1 }
 0x17f   : > { %v2995_v15 = vadd.f32 %v2994_v14, %v2993_v10  ;;  %v2932_v16 = vpop.f32.mrf.mxu0 }
 0x180   : > { %v2996_v17 = vpop.f32.mrf.mxu1 }
 0x181   : > { %v4140_v18 = vadd.f32 %v2995_v15, %v2931_v13  ;;  %v2933_v19 = vpop.f32.mrf.mxu0 }
 0x182   : > { %v2934_v20 = vadd.f32 %v2933_v19, %v2932_v16  ;;  %v2997_v21 = vpop.f32.mrf.mxu1 }
 0x183   : > { %v2998_v22 = vadd.f32 %v2997_v21, %v2996_v17  ;;  %v2935_v23 = vpop.f32.mrf.mxu0 }
 0x184   : > { %v2999_v24 = vpop.f32.mrf.mxu1 }
 0x185   : > { %v4142_v25 = vadd.f32 %v2998_v22, %v2934_v20  ;;  %v2936_v26 = vpop.f32.mrf.mxu0 }
 0x186   : > { %v2937_v27 = vadd.f32 %v2936_v26, %v2935_v23  ;;  %v3000_v28 = vpop.f32.mrf.mxu1 }
 0x187   : > { %v3001_v29 = vadd.f32 %v3000_v28, %v2999_v24  ;;  %v2938_v30 = vpop.f32.mrf.mxu0 }
 0x188   : > { %v3002_v31 = vpop.f32.mrf.mxu1 }
 0x189   : > { %v4144_v32 = vadd.f32 %v3001_v29, %v2937_v27  ;;  %v2939_v33 = vpop.f32.mrf.mxu0 }
 0x18a   : > { %v2940_v34 = vadd.f32 %v2939_v33, %v2938_v30  ;;  %v3003_v35 = vpop.f32.mrf.mxu1 }
 0x18b   : > { %v3004_v36 = vadd.f32 %v3003_v35, %v3002_v31  ;;  %v2941_v37 = vpop.f32.mrf.mxu0 }
 0x18c   : > { %v3005_v38 = vpop.f32.mrf.mxu1 }
 0x18d   : > { %v4146_v39 = vadd.f32 %v3004_v36, %v2940_v34  ;;  %v2942_v41 = vpop.f32.mrf.mxu0 }
 0x18e   : > { %v2943_v42 = vadd.f32 %v2942_v41, %v2941_v37  ;;  %v3006_v43 = vpop.f32.mrf.mxu1 }
 0x18f   : > { %4338 = vst [vmem:[#allocation5_spill] sm:$0xff] %v4146_v39  ;;  %v3007_v44 = vadd.f32 %v3006_v43, %v3005_v38  ;;  %v2944_v45 = vpop.f32.mrf.mxu0 }
 0x190   : > { %v3008_v46 = vpop.f32.mrf.mxu1 }
 0x191   : > { %v4148_v48 = vadd.f32 %v3007_v44, %v2943_v42  ;;  %v2945_v49 = vpop.f32.mrf.mxu0 }
 0x192   : > { %v2946_v50 = vadd.f32 %v2945_v49, %v2944_v45  ;;  %v3009_v51 = vpop.f32.mrf.mxu1 }
 0x193   : > { %v3010_v52 = vadd.f32 %v3009_v51, %v3008_v46  ;;  %v2947_v53 = vpop.f32.mrf.mxu0 }
 0x194   : > { %v3011_v55 = vpop.f32.mrf.mxu1 }
 0x195   : > { %v4150_v56 = vadd.f32 %v3010_v52, %v2946_v50  ;;  %v2948_v57 = vpop.f32.mrf.mxu0 }
 0x196   : > { %v2949_v58 = vadd.f32 %v2948_v57, %v2947_v53  ;;  %v3012_v59 = vpop.f32.mrf.mxu1 }
 0x197   : > { %4339 = vst [vmem:[#allocation6_spill] sm:$0xff] %v4150_v56  ;;  %v3013_v60 = vadd.f32 %v3012_v59, %v3011_v55  ;;  %v2950_v62 = vpop.f32.mrf.mxu0 }
 0x198   : > { %v3014_v63 = vpop.f32.mrf.mxu1 }
 0x199   : > { %v4152_v0 = vadd.f32 %v3013_v60, %v2949_v58  ;;  %v2951_v1 = vpop.f32.mrf.mxu0 }
 0x19a   : > { %v2952_v2 = vadd.f32 %v2951_v1, %v2950_v62  ;;  %v3015_v3 = vpop.f32.mrf.mxu1 }
 0x19b   : > { %4340 = vst [vmem:[#allocation7_spill] sm:$0xff] %v4152_v0  ;;  %v3016_v5 = vadd.f32 %v3015_v3, %v3014_v63  ;;  %v2953_v6 = vpop.f32.mrf.mxu0 }
 0x19c   : > { %v3017_v7 = vpop.f32.mrf.mxu1 }
 0x19d   : > { %v4154_v8 = vadd.f32 %v3016_v5, %v2952_v2  ;;  %v2954_v9 = vpop.f32.mrf.mxu0 }
 0x19e   : > { %v2955_v10 = vadd.f32 %v2954_v9, %v2953_v6  ;;  %v3018_v12 = vpop.f32.mrf.mxu1 }
 0x19f   : > { %4341 = vst [vmem:[#allocation8_spill] sm:$0xff] %v4154_v8  ;;  %v3019_v13 = vadd.f32 %v3018_v12, %v3017_v7  ;;  %v2956_v14 = vpop.f32.mrf.mxu0 }
 0x1a0   : > { %v3020_v15 = vpop.f32.mrf.mxu1 }
 0x1a1   : > { %v4156_v16 = vadd.f32 %v3019_v13, %v2955_v10  ;;  %v2957_v17 = vpop.f32.mrf.mxu0 }
 0x1a2   : > { %v2958_v19 = vadd.f32 %v2957_v17, %v2956_v14  ;;  %v3021_v20 = vpop.f32.mrf.mxu1 }
 0x1a3   : > { %4342 = vst [vmem:[#allocation9_spill] sm:$0xff] %v4156_v16  ;;  %v3022_v21 = vadd.f32 %v3021_v20, %v3020_v15  ;;  %v3039_v22 = vpop.f32.mrf.mxu0 }
 0x1a4   : > { %v3103_v23 = vpop.f32.mrf.mxu1 }
 0x1a5   : > { %v4158_v24 = vadd.f32 %v3022_v21, %v2958_v19  ;;  %v3040_v26 = vpop.f32.mrf.mxu0 }
 0x1a6   : > { %v3104_v27 = vpop.f32.mrf.mxu1  ;;  %v3041_v21 = vadd.f32 %v3040_v26, %v3039_v22 }
 0x1a7   : > { %4343 = vst [vmem:[#allocation10_spill] sm:$0xff] %v4158_v24  ;;  %v3042_v28 = vpop.f32.mrf.mxu0  ;;  %v3105_v39 = vadd.f32 %v3104_v27, %v3103_v23 }
 0x1a8   : > { %v4160_v29 = vpop.f32.mrf.mxu1 }
 0x1a9   : > { %v3043_v30 = vpop.f32.mrf.mxu0 }
 0x1aa   : > { %v3107_v31 = vpop.f32.mrf.mxu1  ;;  %v3044_v8 = vadd.f32 %v3043_v30, %v3042_v28 }
 0x1ab   : > { %v3045_v33 = vpop.f32.mrf.mxu0 }
 0x1ac   : > { %v4162_v34 = vpop.f32.mrf.mxu1 }
 0x1ad   : > { %v3046_v35 = vpop.f32.mrf.mxu0 }
 0x1ae   : > { %v3110_v36 = vpop.f32.mrf.mxu1 }
 0x1af   : > { %v3048_v37 = vpop.f32.mrf.mxu0 }
 0x1b0   : > { %v3112_v38 = vpop.f32.mrf.mxu1 }
 0x1b1   : > { %v3049_v41 = vpop.f32.mrf.mxu0 }
 0x1b2   : > { %v3113_v42 = vpop.f32.mrf.mxu1 }
 0x1b3   : > { %v3051_v43 = vpop.f32.mrf.mxu0 }
 0x1b4   : > { %v3115_v44 = vpop.f32.mrf.mxu1 }
 0x1b5   : > { %v3052_v45 = vpop.f32.mrf.mxu0 }
 0x1b6   : > { %v3116_v46 = vpop.f32.mrf.mxu1 }
 0x1b7   : > { %v3054_v49 = vpop.f32.mrf.mxu0 }
 0x1b8   : > { %v4164_v50 = vpop.f32.mrf.mxu1 }
 0x1b9   : > { %v3055_v51 = vpop.f32.mrf.mxu0 }
 0x1ba   : > { %v4166_v52 = vpop.f32.mrf.mxu1  ;;  %v3056_v22 = vadd.f32 %v3055_v51, %v3054_v49 }
 0x1bb   : > { %v3057_v53 = vpop.f32.mrf.mxu0 }
 0x1bc   : > { %v4168_v55 = vpop.f32.mrf.mxu1 }
 0x1bd   : > { %v3058_v57 = vpop.f32.mrf.mxu0 }
 0x1be   : > { %v4170_v58 = vpop.f32.mrf.mxu1 }
 0x1bf   : > { %v3060_v59 = vpop.f32.mrf.mxu0 }
 0x1c0   : > { %v4172_v60 = vpop.f32.mrf.mxu1 }
 0x1c1   : > { %v3061_v62 = vpop.f32.mrf.mxu0 }
 0x1c2   : > { %v4174_v63 = vpop.f32.mrf.mxu1 }
 0x1c3   : > { %v3063_v1 = vpop.f32.mrf.mxu0 }
 0x1c4   : > { %v4176_v2 = vpop.f32.mrf.mxu1 }
 0x1c5   : > { %4344 = vst [vmem:[#allocation11_spill] sm:$0xff] %v4176_v2  ;;  %v3064_v3 = vpop.f32.mrf.mxu0 }
 0x1c6   : > { %v4178_v5 = vpop.f32.mrf.mxu1 }
 0x1c7   : > { %4345 = vst [vmem:[#allocation12_spill] sm:$0xff] %v4178_v5  ;;  %v3066_v6 = vpop.f32.mrf.mxu0  ;;  %v3053_v5 = vadd.f32 %v3052_v45, %v3051_v43  ;;  %v3065_v43 = vadd.f32 %v3064_v3, %v3063_v1  ;;  %v3126_v3 = vadd.f32 %v4174_v63, %v4172_v60 }
 0x1c8   : > { %v4180_v7 = vpop.f32.mrf.mxu1 }
 0x1c9   : > { %4346 = vst [vmem:[#allocation13_spill] sm:$0xff] %v4180_v7  ;;  %v3067_v9 = vpop.f32.mrf.mxu0  ;;  %v3047_v7 = vadd.f32 %v3046_v35, %v3045_v33  ;;  %v3059_v33 = vadd.f32 %v3058_v57, %v3057_v53 }
 0x1ca   : > { %v4182_v10 = vpop.f32.mrf.mxu1  ;;  %v3068_v51 = vadd.f32 %v3067_v9, %v3066_v6 }
 0x1cb   : > { %4347 = vst [vmem:[#allocation14_spill] sm:$0xff] %v4182_v10  ;;  %v3069_v12 = vpop.f32.mrf.mxu0  ;;  %v3050_v10 = vadd.f32 %v3049_v41, %v3048_v37  ;;  %v2161_v28 = vadd.f32 %v3047_v7, %v4132_v54  ;;  %v2169_v37 = vadd.f32 %v3053_v5, %v4136_v4  ;;  %v3062_v41 = vadd.f32 %v3061_v62, %v3060_v59  ;;  %v4351_v5 = vld [vmem:[#allocation5_spill] sm:$0xff]  ;;  %v4356_v7 = vld [vmem:[#allocation6_spill] sm:$0xff] }
 0x1cc   : > { %v4184_v13 = vpop.f32.mrf.mxu1  ;;  %v3117_v54 = vadd.f32 %v3116_v46, %v3115_v44  ;;  %v2177_v4 = vadd.f32 %v3059_v33, %v4140_v18  ;;  %v3123_v46 = vadd.f32 %v4170_v58, %v4168_v55  ;;  %v2185_v59 = vadd.f32 %v3065_v43, %v4144_v32 }
 0x1cd   : > { %4348 = vst [vmem:[#allocation15_spill] sm:$0xff] %v4184_v13  ;;  %v3070_v14 = vpop.f32.mrf.mxu0  ;;  %v2153_v13 = vadd.f32 %v3041_v21, %v4128_v40  ;;  %v2164_v30 = vadd.f32 %v3050_v10, %v4134_v61  ;;  %v3108_v40 = vadd.f32 %v3107_v31, %v4160_v29  ;;  %v2172_v61 = vadd.f32 %v3056_v22, %v4138_v11 }
 0x1ce   : > { %v4186_v15 = vpop.f32.mrf.mxu1  ;;  %v3071_v45 = vadd.f32 %v3070_v14, %v3069_v12  ;;  %v4218_v44 = vadd.f32 %v3117_v54, %v2169_v37  ;;  %v4353_v55 = vld [vmem:[#allocation12_spill] sm:$0xff]  ;;  %v2274_v60 = vadd.f32 %v3123_v46, %v2177_v4  ;;  %v4359_v14 = vld [vmem:[#allocation7_spill] sm:$0xff] }
 0x1cf   : > { %4349 = vst [vmem:[#allocation16_spill] sm:$0xff] %v4186_v15  ;;  %v3072_v17 = vpop.f32.mrf.mxu0  ;;  %v2250_v27 = vadd.f32 %v3105_v39, %v2153_v13 }
 0x1d0   : > { %v4188_v19 = vpop.f32.mrf.mxu1  ;;  %v2193_v18 = vadd.f32 %v3071_v45, %v4148_v48  ;;  %v4357_v63 = vld [vmem:[#allocation13_spill] sm:$0xff] }
 0x1d1   : > { %4350 = vst [vmem:[#allocation17_spill] sm:$0xff] %v4188_v19  ;;  %v3073_v20 = vpop.f32.mrf.mxu0  ;;  %v2156_v19 = vadd.f32 %v3044_v8, %v4130_v47  ;;  %v3111_v47 = vadd.f32 %v3110_v36, %v4162_v34  ;;  %v3114_v8 = vadd.f32 %v3113_v42, %v3112_v38  ;;  %v3120_v36 = vadd.f32 %v4166_v52, %v4164_v50 }
 0x1d2   : > { %v4190_v24 = vpop.f32.mrf.mxu1  ;;  %v3074_v31 = vadd.f32 %v3073_v20, %v3072_v17  ;;  %v2180_v38 = vadd.f32 %v3062_v41, %v4142_v25  ;;  %v2188_v50 = vadd.f32 %v3068_v51, %v4351_v5  ;;  %v4358_v12 = vld [vmem:[#allocation14_spill] sm:$0xff] }
 0x1d3   : > { %v3075_v16 = vpop.f32.mrf.mxu0  ;;  %v4212_v29 = vadd.f32 %v3108_v40, %v2156_v19  ;;  %v2258_v57 = vadd.f32 %v3111_v47, %v2161_v28  ;;  %v2261_v34 = vadd.f32 %v3114_v8, %v2164_v30  ;;  %v3132_v13 = vadd.f32 %v4358_v12, %v4357_v63  ;;  %v4361_v28 = vld [vmem:[#allocation8_spill] sm:$0xff]  ;;  %v4362_v47 = vld [vmem:[#allocation9_spill] sm:$0xff] }
 0x1d4   : > { %v4192_v0 = vpop.f32.mrf.mxu1  ;;  %v4354_v58 = vld [vmem:[#allocation15_spill] sm:$0xff]  ;;  %v2196_v9 = vadd.f32 %v3074_v31, %v4356_v7  ;;  %v4241_v20 = vadd.f32 %v3126_v3, %v2180_v38 }
 0x1d5   : > { %v3076_v56 = vpop.f32.mrf.mxu0 }
 0x1d6   : > { %v4195_v2 = vpop.f32.mrf.mxu1  ;;  %v3077_v11 = vadd.f32 %v3076_v56, %v3075_v16  ;;  %v4231_v56 = vadd.f32 %v3120_v36, %v2172_v61  ;;  %v4352_v16 = vld [vmem:[#allocation11_spill] sm:$0xff]  ;;  %v4355_v48 = vld [vmem:[#allocation16_spill] sm:$0xff]  ;;  %v4363_v61 = vld [vmem:[#allocation10_spill] sm:$0xff] }
 0x1d7   : > { %v3078_v15 = vpop.f32.mrf.mxu0  ;;  %v3129_v32 = vadd.f32 %v4353_v55, %v4352_v16  ;;  %v3135_v6 = vadd.f32 %v4355_v48, %v4354_v58  ;;  %v3141_v41 = vadd.f32 %v4195_v2, %v4192_v0 }
 0x1d8   : > { %v4198_v26 = vpop.f32.mrf.mxu1  ;;  %v4360_v21 = vld [vmem:[#allocation17_spill] sm:$0xff] }
 0x1d9   : > { %v3079_v35 = vpop.f32.mrf.mxu0  ;;  %v3138_v22 = vadd.f32 %v4190_v24, %v4360_v21  ;;  %v2290_v40 = vadd.f32 %v3135_v6, %v2193_v18  ;;  %v2282_v37 = vadd.f32 %v3129_v32, %v2185_v59 }
 0x1da   : > { %v3143_v23 = vpop.f32.mrf.mxu1  ;;  %v3080_v62 = vadd.f32 %v3079_v35, %v3078_v15  ;;  %v2201_v15 = vadd.f32 %v3077_v11, %v4359_v14  ;;  %v4246_v35 = vld [vmem:[%s861_s20] ss:$0 sm:$0xff] }
 0x1db   : > { %v3081_v49 = vpop.f32.mrf.mxu0  ;;  %v3144_v54 = vadd.f32 %v3143_v23, %v4198_v26  ;;  %v2293_v31 = vadd.f32 %v3138_v22, %v2196_v9 }
 0x1dc   : > { %v3145_v53 = vpop.f32.mrf.mxu1  ;;  %v2204_v30 = vadd.f32 %v3080_v62, %v4361_v28  ;;  %v2298_v0 = vadd.f32 %v3141_v41, %v2201_v15 }
 0x1dd   : > { %v3082_v39 = vpop.f32.mrf.mxu0 }
 0x1de   : > { %v3146_v42 = vpop.f32.mrf.mxu1  ;;  %v3083_v52 = vadd.f32 %v3082_v39, %v3081_v49  ;;  %v2285_v49 = vadd.f32 %v3132_v13, %v2188_v50  ;;  %v4257_v18 = vadd.f32 %v3144_v54, %v2204_v30 }
 0x1df   : > { %v3084_v1 = vpop.f32.mrf.mxu0  ;;  %v3147_v39 = vadd.f32 %v3146_v42, %v3145_v53 }
 0x1e0   : > { %v3148_v25 = vpop.f32.mrf.mxu1  ;;  %v2209_v8 = vadd.f32 %v3083_v52, %v4362_v47 }
 0x1e1   : > { %v3085_v10 = vpop.f32.mrf.mxu0 }
 0x1e2   : > { %v3086_v17 = vadd.f32 %v3085_v10, %v3084_v1  ;;  %v3149_v19 = vpop.f32.mrf.mxu1  ;;  %v2306_v53 = vadd.f32 %v3147_v39, %v2209_v8 }
 0x1e3   : > { %v3185_v33 = vpop.f32.mrf.mxu0  ;;  %v3150_v2 = vadd.f32 %v3149_v19, %v3148_v25 }
 0x1e4   : > { %v2355_v43 = vadd.f32 %v3185_v33, %v2258_v57  ;;  %v3193_v45 = vpop.f32.mrf.mxu1  ;;  %v2212_v24 = vadd.f32 %v3086_v17, %v4363_v61 }
 0x1e5   : > { %v2387_v51 = vadd.f32 %v3193_v45, %v2290_v40  ;;  %v2346_v4 = vpop.f32.mrf.mxu0 }
 0x1e6   : > { %v2469_v36 = vadd.f32 %v4246_v35, %v2355_v43  ;;  %v2347_v38 = vadd.f32 %v2346_v4, %v2250_v27  ;;  %v2378_v11 = vpop.f32.mrf.mxu1  ;;  %v2309_v50 = vadd.f32 %v3150_v2, %v2212_v24 }
 0x1e7   : > { %v2477_v57 = vadd.f32 %v4246_v35, %v2387_v51  ;;  %v2379_v46 = vadd.f32 %v2378_v11, %v2282_v37  ;;  %v3186_v59 = vpop.f32.mrf.mxu0 }
 0x1e8   : > { %v2485_v26 = vmul.f32 0.01, %v2469_v36  ;;  %v2467_v23 = vadd.f32 %v4246_v35, %v2347_v38  ;;  %v2358_v62 = vadd.f32 %v3186_v59, %v2261_v34  ;;  %v3194_v1 = vpop.f32.mrf.mxu1 }
 0x1e9   : > { %v2493_v42 = vmul.f32 0.01, %v2477_v57  ;;  %v2475_v3 = vadd.f32 %v4246_v35, %v2379_v46  ;;  %v2390_v5 = vadd.f32 %v3194_v1, %v2293_v31  ;;  %v2349_v27 = vpop.f32.mrf.mxu0 }
 0x1ea   : > { %v2501_v52 = vmax.f32 %v2469_v36, %v2485_v26  ;;  %v2483_v25 = vmul.f32 0.01, %v2467_v23  ;;  %v2470_v16 = vadd.f32 %v4246_v35, %v2358_v62  ;;  %v2350_v55 = vadd.f32 %v2349_v27, %v4212_v29  ;;  %v2381_v32 = vpop.f32.mrf.mxu1 }
 0x1eb   : > { %v2509_v58 = vmax.f32 %v2477_v57, %v2493_v42  ;;  %v2491_v48 = vmul.f32 0.01, %v2475_v3  ;;  %v2478_v6 = vadd.f32 %v4246_v35, %v2390_v5  ;;  %v2382_v34 = vadd.f32 %v2381_v32, %v2285_v49  ;;  %v3189_v7 = vpop.f32.mrf.mxu0 }
 0x1ec   : > { %2517 = vst [vmem:[%s4264_s12 + $0x10] sm:$0xff] %v2501_v52  ;;  %v2499_v9 = vmax.f32 %v2467_v23, %v2483_v25  ;;  %v2486_v10 = vmul.f32 0.01, %v2470_v16  ;;  %v2468_v63 = vadd.f32 %v4246_v35, %v2350_v55  ;;  %v2371_v12 = vadd.f32 %v3189_v7, %v2274_v60  ;;  %v3197_v29 = vpop.f32.mrf.mxu1 }
 0x1ed   : > { %2525 = vst [vmem:[%s4264_s12 + $0x50] sm:$0xff] %v2509_v58  ;;  %v2507_v13 = vmax.f32 %v2475_v3, %v2491_v48  ;;  %v2494_v14 = vmul.f32 0.01, %v2478_v6  ;;  %v2476_v15 = vadd.f32 %v4246_v35, %v2382_v34  ;;  %v2403_v17 = vadd.f32 %v3197_v29, %v2306_v53  ;;  %v2362_v19 = vpop.f32.mrf.mxu0 }
 0x1ee   : > { %2515 = vst [vmem:[%s4264_s12] sm:$0xff] %v2499_v9  ;;  %v2502_v21 = vmax.f32 %v2470_v16, %v2486_v10  ;;  %v2484_v22 = vmul.f32 0.01, %v2468_v63  ;;  %v2473_v28 = vadd.f32 %v4246_v35, %v2371_v12  ;;  %v2363_v30 = vadd.f32 %v2362_v19, %v4218_v44  ;;  %v2394_v33 = vpop.f32.mrf.mxu1 }
 0x1ef   : > { %2523 = vst [vmem:[%s4264_s12 + $0x40] sm:$0xff] %v2507_v13  ;;  %v2510_v60 = vmax.f32 %v2478_v6, %v2494_v14  ;;  %v2492_v40 = vmul.f32 0.01, %v2476_v15  ;;  %v2481_v37 = vadd.f32 %v4246_v35, %v2403_v17  ;;  %v2395_v41 = vadd.f32 %v2394_v33, %v2298_v0  ;;  %v3190_v47 = vpop.f32.mrf.mxu0 }
 0x1f0   : > { %2518 = vst [vmem:[%s4264_s12 + $0x18] sm:$0xff] %v2502_v21  ;;  %v2500_v8 = vmax.f32 %v2468_v63, %v2484_v22  ;;  %v2489_v43 = vmul.f32 0.01, %v2473_v28  ;;  %v2471_v45 = vadd.f32 %v4246_v35, %v2363_v30  ;;  %v2374_v49 = vadd.f32 %v3190_v47, %v4241_v20  ;;  %v3198_v54 = vpop.f32.mrf.mxu1 }
 0x1f1   : > { %2526 = vst [vmem:[%s4264_s12 + $0x58] sm:$0xff] %v2510_v60  ;;  %v2508_v44 = vmax.f32 %v2476_v15, %v2492_v40  ;;  %v2497_v61 = vmul.f32 0.01, %v2481_v37  ;;  %v2479_v24 = vadd.f32 %v4246_v35, %v2395_v41  ;;  %v2406_v51 = vadd.f32 %v3198_v54, %v2309_v50  ;;  %v2365_v4 = vpop.f32.mrf.mxu0 }
 0x1f2   : > { %2516 = vst [vmem:[%s4264_s12 + $0x8] sm:$0xff] %v2500_v8  ;;  %v2505_v31 = vmax.f32 %v2473_v28, %v2489_v43  ;;  %v2487_v39 = vmul.f32 0.01, %v2471_v45  ;;  %v2474_v36 = vadd.f32 %v4246_v35, %v2374_v49  ;;  %v2366_v38 = vadd.f32 %v2365_v4, %v4231_v56  ;;  %v2397_v11 = vpop.f32.mrf.mxu1 }
 0x1f3   : > { %2524 = vst [vmem:[%s4264_s12 + $0x48] sm:$0xff] %v2508_v44  ;;  %v2513_v20 = vmax.f32 %v2481_v37, %v2497_v61  ;;  %v2495_v0 = vmul.f32 0.01, %v2479_v24  ;;  %v2482_v2 = vadd.f32 %v4246_v35, %v2406_v51  ;;  %v2398_v57 = vadd.f32 %v2397_v11, %v4257_v18  ;;  %v2605_v50 = vld [vmem:[%s4264_s12 + $0x10] sm:$0xff] (%p3528_p6) }
 0x1f4   : > { %2521 = vst [vmem:[%s4264_s12 + $0x30] sm:$0xff] %v2505_v31  ;;  %v2503_v46 = vmax.f32 %v2471_v45, %v2487_v39  ;;  %v2490_v59 = vmul.f32 0.01, %v2474_v36  ;;  %v2472_v26 = vadd.f32 %v4246_v35, %v2366_v38  ;;  %2606 = vst [vmem:[%s2542_s26 + $0x20] sm:$0xff] (%p3528_p6), %v2605_v50  ;;  %v2621_v6 = vld [vmem:[%s4264_s12 + $0x50] sm:$0xff] (%p3528_p6) }
 0x1f5   : > { %2529 = vst [vmem:[%s4264_s12 + $0x70] sm:$0xff] %v2513_v20  ;;  %v2511_v56 = vmax.f32 %v2479_v24, %v2495_v0  ;;  %v2498_v23 = vmul.f32 0.01, %v2482_v2  ;;  %v2480_v62 = vadd.f32 %v4246_v35, %v2398_v57  ;;  %v2601_v35 = vld [vmem:[%s4264_s12] sm:$0xff] (%p3528_p6)  ;;  %2622 = vst [vmem:[%s2542_s26 + $0xa0] sm:$0xff] (%p3528_p6), %v2621_v6 }
 0x1f6   : > { %2519 = vst [vmem:[%s4264_s12 + $0x20] sm:$0xff] %v2503_v46  ;;  %v2506_v1 = vmax.f32 %v2474_v36, %v2490_v59  ;;  %v2488_v53 = vmul.f32 0.01, %v2472_v26  ;;  %2602 = vst [vmem:[%s2542_s26] sm:$0xff] (%p3528_p6), %v2601_v35  ;;  %v2617_v58 = vld [vmem:[%s4264_s12 + $0x40] sm:$0xff] (%p3528_p6) }
 0x1f7   : > { %2527 = vst [vmem:[%s4264_s12 + $0x60] sm:$0xff] %v2511_v56  ;;  %v2514_v42 = vmax.f32 %v2482_v2, %v2498_v23  ;;  %v2496_v3 = vmul.f32 0.01, %v2480_v62  ;;  %2537 = sbr.rel (!%p3528_p6) target bundleno = 516 (0x204), region = 85  ;;  %v2607_v52 = vld [vmem:[%s4264_s12 + $0x18] sm:$0xff] (%p3528_p6)  ;;  %2618 = vst [vmem:[%s2542_s26 + $0x80] sm:$0xff] (%p3528_p6), %v2617_v58 }
 0x1f8   : > { %2522 = vst [vmem:[%s4264_s12 + $0x38] sm:$0xff] %v2506_v1  ;;  %v2504_v18 = vmax.f32 %v2472_v26, %v2488_v53  ;;  %2608 = vst [vmem:[%s2542_s26 + $0x30] sm:$0xff] (%p3528_p6), %v2607_v52  ;;  %v2623_v34 = vld [vmem:[%s4264_s12 + $0x58] sm:$0xff] (%p3528_p6) }
 0x1f9   : > { %2530 = vst [vmem:[%s4264_s12 + $0x78] sm:$0xff] %v2514_v42  ;;  %v2512_v5 = vmax.f32 %v2480_v62, %v2496_v3  ;;  %v2603_v27 = vld [vmem:[%s4264_s12 + $0x8] sm:$0xff] (%p3528_p6)  ;;  %2624 = vst [vmem:[%s2542_s26 + $0xb0] sm:$0xff] (%p3528_p6), %v2623_v34 }
 0x1fa   : > { %2520 = vst [vmem:[%s4264_s12 + $0x28] sm:$0xff] %v2504_v18  ;;  %2604 = vst [vmem:[%s2542_s26 + $0x10] sm:$0xff] (%p3528_p6), %v2603_v27  ;;  %v2619_v48 = vld [vmem:[%s4264_s12 + $0x48] sm:$0xff] (%p3528_p6) }
 0x1fb   : > { %2528 = vst [vmem:[%s4264_s12 + $0x68] sm:$0xff] %v2512_v5  ;;  %v2613_v55 = vld [vmem:[%s4264_s12 + $0x30] sm:$0xff] (%p3528_p6)  ;;  %2620 = vst [vmem:[%s2542_s26 + $0x90] sm:$0xff] (%p3528_p6), %v2619_v48 }
 0x1fc   : > { %2614 = vst [vmem:[%s2542_s26 + $0x60] sm:$0xff] %v2613_v55  ;;  %v2629_v10 = vld [vmem:[%s4264_s12 + $0x70] sm:$0xff] }
 0x1fd   : > { %v2609_v25 = vld [vmem:[%s4264_s12 + $0x20] sm:$0xff]  ;;  %2630 = vst [vmem:[%s2542_s26 + $0xe0] sm:$0xff] %v2629_v10 }
 0x1fe   : > { %2610 = vst [vmem:[%s2542_s26 + $0x40] sm:$0xff] %v2609_v25  ;;  %v2625_v7 = vld [vmem:[%s4264_s12 + $0x60] sm:$0xff] }
 0x1ff   : > { %v2615_v32 = vld [vmem:[%s4264_s12 + $0x38] sm:$0xff]  ;;  %2626 = vst [vmem:[%s2542_s26 + $0xc0] sm:$0xff] %v2625_v7 }
 0x200   : > { %2616 = vst [vmem:[%s2542_s26 + $0x70] sm:$0xff] %v2615_v32  ;;  %v2631_v63 = vld [vmem:[%s4264_s12 + $0x78] sm:$0xff] }
 0x201   : > { %v2611_v16 = vld [vmem:[%s4264_s12 + $0x28] sm:$0xff]  ;;  %2632 = vst [vmem:[%s2542_s26 + $0xf0] sm:$0xff] %v2631_v63 }
 0x202   : > { %2612 = vst [vmem:[%s2542_s26 + $0x50] sm:$0xff] %v2611_v16  ;;  %v2627_v9 = vld [vmem:[%s4264_s12 + $0x68] sm:$0xff] }
 0x203   : > { %2628 = vst [vmem:[%s2542_s26 + $0xd0] sm:$0xff] %v2627_v9 }
 0x204 PF: > { %s13_s16 = sadd.s32 1, %s3471_s16   ;;  %s4364_s12 = smov %s3459_s13 }
 0x205   : > { %p10_p12 = scmp.ge.s32.totalorder %s13_s16, 4   ;;  %s4365_s13 = smov %s3533_s22 }
 0x206   : > { %s4366_s14 = smov %s3467_s15  ;;  %s4367_s15 = smov %s4369_s17 }
 0x207   :  { %12 = sbr.rel (!%p10_p12) target bundleno = 3 (0x3), region = 160 }

// kernel: discriminator_forward.6
= control target key start
LH: loop header
LB: loop body
LE: loop exit
PB: predicated region body
PF: predicated region fallthrough
CT: control target
= control target key end

     0   :  { %s4219_s12 = smov 0   ;;  %s4221_s13 = smov 0   ;;  %s5158_s0 = inlined_call_operand.vmem [shape: bf16[32,2304], index: 0, kind: input, shape index: {}]   ;;  %s5159_s1 = inlined_call_operand.vmem [shape: bf16[2304,512], index: 1, kind: input, shape index: {}]   ;;  %s5160_s2 = inlined_call_operand.vmem [shape: f32[1,512], index: 2, kind: input, shape index: {}]   ;;  %s5161_s3 = inlined_call_operand.vmem [shape: f32[32,512], index: 3, kind: output, shape index: {}]  }
   0x1   :  { %s4223_s14 = smov 0   ;;  %s4225_s15 = smov 0  }
   0x2   :  { %s4227_s16 = smov 0  }
   0x3 LB: > { %s28_s17 = sadd.s32 1, %s4193_s15  ;;  %s3458_s18 = sadd.s32 4294967295, %s4197_s16   ;;  %s4197_s16 = sphi %s4227_s16, %s13_s16   ;;  %s4193_s15 = sphi %s4225_s15, %s5180_s15   ;;  %s4189_s14 = sphi %s4223_s14, %s5179_s14   ;;  %s4185_s13 = sphi %s4221_s13, %s5178_s13   ;;  %s4181_s12 = sphi %s4219_s12, %s5177_s12  }
   0x4   : > { %p30_p0 = scmp.ge.s32.totalorder %s28_s17, 4  ;;  %p76_p1 = scmp.ne.s32.totalorder %s4185_s13, %s4181_s12 }
   0x5   : > { %p77_p2 = scmp.eq.s32.totalorder %s4197_s16, 0  ;;  %p134_p4 = scmp.eq.s32.totalorder %s3458_s18, 3 }
   0x6   : > { %s5182_s17 = smov (%p30_p0, %s28_s17), 0  ;;  %s69_s20 = sadd.s32 1, %s4185_s13 }
   0x7   : > { %p78_p3 = por %p77_p2, %p76_p1  ;;  %s65_s19 = ssub.s32 %s4193_s15, %s5182_s17 }
   0x8   : > { %p67_p5 = scmp.eq.s32.totalorder %s65_s19, 0  ;;  %p4254_p6 = por %p134_p4, %p76_p1 }
   0x9   : > { %p3462_p7 = scmp.ge.s32.totalorder %s4197_s16, 4 }
   0xa   : > { %s4259_s22 = scalar_select %p67_p5, %s4185_s13, %s69_s20  }
   0xb   : > { %171 = sbr.rel (%p3462_p7) target bundleno = 212 (0xd4), region = 20 }
  0x10   : > { %174 = sbr.rel (!%p78_p3) target bundleno = 212 (0xd4), region = 24  ;;  %s176_s23 = sand.u32 (%p78_p3), 1, %s4185_s13  }
  0x11   : > { %s3463_s24 = sshll.u32 (%p78_p3), %s4193_s15, 2  ;;  %s3919_s25 = smul.u32 (%p78_p3), 1152, %s176_s23 }
  0x12   : > { %s4267_s28 = scalar_lea.vmem (%p78_p3), %s5159_s1, %s3463_s24 }
  0x13   : > { %v200_v0 = vld [vmem:[%s4267_s28] sm:$0xf] (%p78_p3)  ;;  %v202_v1 = vld [vmem:[%s4267_s28 + $0x10] sm:$0xf] (%p78_p3)  ;;  %s4274_s29 = scalar_lea.vmem (%p78_p3), [#allocation3], %s3919_s25 }
  0x14   : > { %v204_v2 = vld [vmem:[%s4267_s28 + $0x20] sm:$0xf] (%p78_p3)  ;;  %v206_v3 = vld [vmem:[%s4267_s28 + $0x30] sm:$0xf] (%p78_p3)  ;;  %201 = vst [vmem:[%s4274_s29] sm:$0xf] (%p78_p3), %v200_v0 }
  0x15   : > { %v208_v4 = vld [vmem:[%s4267_s28 + $0x40] sm:$0xf]  ;;  %203 = vst [vmem:[%s4274_s29 + $0x4] sm:$0xf] %v202_v1  ;;  %205 = vst [vmem:[%s4274_s29 + $0x8] sm:$0xf] %v204_v2 }
  0x16   : > { %207 = vst [vmem:[%s4274_s29 + $0xc] sm:$0xf] %v206_v3  ;;  %209 = vst [vmem:[%s4274_s29 + $0x10] sm:$0xf] %v208_v4  ;;  %v210_v5 = vld [vmem:[%s4267_s28 + $0x50] sm:$0xf] }
  0x17   : > { %v212_v6 = vld [vmem:[%s4267_s28 + $0x60] sm:$0xf]  ;;  %v214_v7 = vld [vmem:[%s4267_s28 + $0x70] sm:$0xf]  ;;  %211 = vst [vmem:[%s4274_s29 + $0x14] sm:$0xf] %v210_v5 }
  0x18   : > { %213 = vst [vmem:[%s4274_s29 + $0x18] sm:$0xf] %v212_v6  ;;  %215 = vst [vmem:[%s4274_s29 + $0x1c] sm:$0xf] %v214_v7  ;;  %v216_v8 = vld [vmem:[%s4267_s28 + $0x80] sm:$0xf] }
  0x19   : > { %v218_v9 = vld [vmem:[%s4267_s28 + $0x90] sm:$0xf]  ;;  %v220_v10 = vld [vmem:[%s4267_s28 + $0xa0] sm:$0xf]  ;;  %217 = vst [vmem:[%s4274_s29 + $0x20] sm:$0xf] %v216_v8 }
  0x1a   : > { %219 = vst [vmem:[%s4274_s29 + $0x24] sm:$0xf] %v218_v9  ;;  %221 = vst [vmem:[%s4274_s29 + $0x28] sm:$0xf] %v220_v10  ;;  %v222_v11 = vld [vmem:[%s4267_s28 + $0xb0] sm:$0xf] }
  0x1b   : > { %v224_v12 = vld [vmem:[%s4267_s28 + $0xc0] sm:$0xf]  ;;  %v226_v13 = vld [vmem:[%s4267_s28 + $0xd0] sm:$0xf]  ;;  %223 = vst [vmem:[%s4274_s29 + $0x2c] sm:$0xf] %v222_v11 }
  0x1c   : > { %225 = vst [vmem:[%s4274_s29 + $0x30] sm:$0xf] %v224_v12  ;;  %227 = vst [vmem:[%s4274_s29 + $0x34] sm:$0xf] %v226_v13  ;;  %v228_v14 = vld [vmem:[%s4267_s28 + $0xe0] sm:$0xf] }
  0x1d   : > { %v230_v15 = vld [vmem:[%s4267_s28 + $0xf0] sm:$0xf]  ;;  %v232_v16 = vld [vmem:[%s4267_s28 + $0x100] sm:$0xf]  ;;  %229 = vst [vmem:[%s4274_s29 + $0x38] sm:$0xf] %v228_v14 }
  0x1e   : > { %231 = vst [vmem:[%s4274_s29 + $0x3c] sm:$0xf] %v230_v15  ;;  %233 = vst [vmem:[%s4274_s29 + $0x40] sm:$0xf] %v232_v16  ;;  %v234_v17 = vld [vmem:[%s4267_s28 + $0x110] sm:$0xf] }
  0x1f   : > { %v236_v18 = vld [vmem:[%s4267_s28 + $0x120] sm:$0xf]  ;;  %v238_v19 = vld [vmem:[%s4267_s28 + $0x130] sm:$0xf]  ;;  %235 = vst [vmem:[%s4274_s29 + $0x44] sm:$0xf] %v234_v17 }
  0x20   : > { %237 = vst [vmem:[%s4274_s29 + $0x48] sm:$0xf] %v236_v18  ;;  %239 = vst [vmem:[%s4274_s29 + $0x4c] sm:$0xf] %v238_v19  ;;  %v240_v20 = vld [vmem:[%s4267_s28 + $0x140] sm:$0xf] }
  0x21   : > { %v242_v21 = vld [vmem:[%s4267_s28 + $0x150] sm:$0xf]  ;;  %v244_v22 = vld [vmem:[%s4267_s28 + $0x160] sm:$0xf]  ;;  %241 = vst [vmem:[%s4274_s29 + $0x50] sm:$0xf] %v240_v20 }
  0x22   : > { %243 = vst [vmem:[%s4274_s29 + $0x54] sm:$0xf] %v242_v21  ;;  %245 = vst [vmem:[%s4274_s29 + $0x58] sm:$0xf] %v244_v22  ;;  %v246_v23 = vld [vmem:[%s4267_s28 + $0x170] sm:$0xf] }
  0x23   : > { %v248_v24 = vld [vmem:[%s4267_s28 + $0x180] sm:$0xf]  ;;  %v250_v25 = vld [vmem:[%s4267_s28 + $0x190] sm:$0xf]  ;;  %247 = vst [vmem:[%s4274_s29 + $0x5c] sm:$0xf] %v246_v23 }
  0x24   : > { %249 = vst [vmem:[%s4274_s29 + $0x60] sm:$0xf] %v248_v24  ;;  %251 = vst [vmem:[%s4274_s29 + $0x64] sm:$0xf] %v250_v25  ;;  %v252_v26 = vld [vmem:[%s4267_s28 + $0x1a0] sm:$0xf] }
  0x25   : > { %v254_v27 = vld [vmem:[%s4267_s28 + $0x1b0] sm:$0xf]  ;;  %v256_v28 = vld [vmem:[%s4267_s28 + $0x1c0] sm:$0xf]  ;;  %253 = vst [vmem:[%s4274_s29 + $0x68] sm:$0xf] %v252_v26 }
  0x26   : > { %255 = vst [vmem:[%s4274_s29 + $0x6c] sm:$0xf] %v254_v27  ;;  %257 = vst [vmem:[%s4274_s29 + $0x70] sm:$0xf] %v256_v28  ;;  %v258_v29 = vld [vmem:[%s4267_s28 + $0x1d0] sm:$0xf] }
  0x27   : > { %v260_v30 = vld [vmem:[%s4267_s28 + $0x1e0] sm:$0xf]  ;;  %v262_v31 = vld [vmem:[%s4267_s28 + $0x1f0] sm:$0xf]  ;;  %259 = vst [vmem:[%s4274_s29 + $0x74] sm:$0xf] %v258_v29 }
  0x28   : > { %261 = vst [vmem:[%s4274_s29 + $0x78] sm:$0xf] %v260_v30  ;;  %263 = vst [vmem:[%s4274_s29 + $0x7c] sm:$0xf] %v262_v31  ;;  %v264_v32 = vld [vmem:[%s4267_s28 + $0x200] sm:$0xf] }
  0x29   : > { %v266_v33 = vld [vmem:[%s4267_s28 + $0x210] sm:$0xf]  ;;  %v268_v34 = vld [vmem:[%s4267_s28 + $0x220] sm:$0xf]  ;;  %265 = vst [vmem:[%s4274_s29 + $0x80] sm:$0xf] %v264_v32 }
  0x2a   : > { %267 = vst [vmem:[%s4274_s29 + $0x84] sm:$0xf] %v266_v33  ;;  %269 = vst [vmem:[%s4274_s29 + $0x88] sm:$0xf] %v268_v34  ;;  %v270_v35 = vld [vmem:[%s4267_s28 + $0x230] sm:$0xf] }
  0x2b   : > { %v272_v36 = vld [vmem:[%s4267_s28 + $0x240] sm:$0xf]  ;;  %v274_v37 = vld [vmem:[%s4267_s28 + $0x250] sm:$0xf]  ;;  %271 = vst [vmem:[%s4274_s29 + $0x8c] sm:$0xf] %v270_v35 }
  0x2c   : > { %273 = vst [vmem:[%s4274_s29 + $0x90] sm:$0xf] %v272_v36  ;;  %275 = vst [vmem:[%s4274_s29 + $0x94] sm:$0xf] %v274_v37  ;;  %v276_v38 = vld [vmem:[%s4267_s28 + $0x260] sm:$0xf] }
  0x2d   : > { %v278_v39 = vld [vmem:[%s4267_s28 + $0x270] sm:$0xf]  ;;  %v280_v40 = vld [vmem:[%s4267_s28 + $0x280] sm:$0xf]  ;;  %277 = vst [vmem:[%s4274_s29 + $0x98] sm:$0xf] %v276_v38 }
  0x2e   : > { %279 = vst [vmem:[%s4274_s29 + $0x9c] sm:$0xf] %v278_v39  ;;  %281 = vst [vmem:[%s4274_s29 + $0xa0] sm:$0xf] %v280_v40  ;;  %v282_v41 = vld [vmem:[%s4267_s28 + $0x290] sm:$0xf] }
  0x2f   : > { %v284_v42 = vld [vmem:[%s4267_s28 + $0x2a0] sm:$0xf]  ;;  %v286_v43 = vld [vmem:[%s4267_s28 + $0x2b0] sm:$0xf]  ;;  %283 = vst [vmem:[%s4274_s29 + $0xa4] sm:$0xf] %v282_v41 }
  0x30   : > { %285 = vst [vmem:[%s4274_s29 + $0xa8] sm:$0xf] %v284_v42  ;;  %287 = vst [vmem:[%s4274_s29 + $0xac] sm:$0xf] %v286_v43  ;;  %v288_v44 = vld [vmem:[%s4267_s28 + $0x2c0] sm:$0xf] }
  0x31   : > { %v290_v45 = vld [vmem:[%s4267_s28 + $0x2d0] sm:$0xf]  ;;  %v292_v46 = vld [vmem:[%s4267_s28 + $0x2e0] sm:$0xf]  ;;  %289 = vst [vmem:[%s4274_s29 + $0xb0] sm:$0xf] %v288_v44 }
  0x32   : > { %291 = vst [vmem:[%s4274_s29 + $0xb4] sm:$0xf] %v290_v45  ;;  %293 = vst [vmem:[%s4274_s29 + $0xb8] sm:$0xf] %v292_v46  ;;  %v294_v47 = vld [vmem:[%s4267_s28 + $0x2f0] sm:$0xf] }
  0x33   : > { %v296_v48 = vld [vmem:[%s4267_s28 + $0x300] sm:$0xf]  ;;  %v298_v49 = vld [vmem:[%s4267_s28 + $0x310] sm:$0xf]  ;;  %295 = vst [vmem:[%s4274_s29 + $0xbc] sm:$0xf] %v294_v47 }
  0x34   : > { %297 = vst [vmem:[%s4274_s29 + $0xc0] sm:$0xf] %v296_v48  ;;  %299 = vst [vmem:[%s4274_s29 + $0xc4] sm:$0xf] %v298_v49  ;;  %v300_v50 = vld [vmem:[%s4267_s28 + $0x320] sm:$0xf] }
  0x35   : > { %v302_v51 = vld [vmem:[%s4267_s28 + $0x330] sm:$0xf]  ;;  %v304_v52 = vld [vmem:[%s4267_s28 + $0x340] sm:$0xf]  ;;  %301 = vst [vmem:[%s4274_s29 + $0xc8] sm:$0xf] %v300_v50 }
  0x36   : > { %303 = vst [vmem:[%s4274_s29 + $0xcc] sm:$0xf] %v302_v51  ;;  %305 = vst [vmem:[%s4274_s29 + $0xd0] sm:$0xf] %v304_v52  ;;  %v306_v53 = vld [vmem:[%s4267_s28 + $0x350] sm:$0xf] }
  0x37   : > { %v308_v54 = vld [vmem:[%s4267_s28 + $0x360] sm:$0xf]  ;;  %v310_v55 = vld [vmem:[%s4267_s28 + $0x370] sm:$0xf]  ;;  %307 = vst [vmem:[%s4274_s29 + $0xd4] sm:$0xf] %v306_v53 }
  0x38   : > { %309 = vst [vmem:[%s4274_s29 + $0xd8] sm:$0xf] %v308_v54  ;;  %311 = vst [vmem:[%s4274_s29 + $0xdc] sm:$0xf] %v310_v55  ;;  %v312_v56 = vld [vmem:[%s4267_s28 + $0x380] sm:$0xf] }
  0x39   : > { %v314_v57 = vld [vmem:[%s4267_s28 + $0x390] sm:$0xf]  ;;  %v316_v58 = vld [vmem:[%s4267_s28 + $0x3a0] sm:$0xf]  ;;  %313 = vst [vmem:[%s4274_s29 + $0xe0] sm:$0xf] %v312_v56 }
  0x3a   : > { %315 = vst [vmem:[%s4274_s29 + $0xe4] sm:$0xf] %v314_v57  ;;  %317 = vst [vmem:[%s4274_s29 + $0xe8] sm:$0xf] %v316_v58  ;;  %v318_v59 = vld [vmem:[%s4267_s28 + $0x3b0] sm:$0xf] }
  0x3b   : > { %v320_v60 = vld [vmem:[%s4267_s28 + $0x3c0] sm:$0xf]  ;;  %v322_v61 = vld [vmem:[%s4267_s28 + $0x3d0] sm:$0xf]  ;;  %319 = vst [vmem:[%s4274_s29 + $0xec] sm:$0xf] %v318_v59 }
  0x3c   : > { %321 = vst [vmem:[%s4274_s29 + $0xf0] sm:$0xf] %v320_v60  ;;  %323 = vst [vmem:[%s4274_s29 + $0xf4] sm:$0xf] %v322_v61  ;;  %v324_v62 = vld [vmem:[%s4267_s28 + $0x3e0] sm:$0xf] }
  0x3d   : > { %v326_v63 = vld [vmem:[%s4267_s28 + $0x3f0] sm:$0xf]  ;;  %v328_v0 = vld [vmem:[%s4267_s28 + $0x400] sm:$0xf]  ;;  %325 = vst [vmem:[%s4274_s29 + $0xf8] sm:$0xf] %v324_v62 }
  0x3e   : > { %327 = vst [vmem:[%s4274_s29 + $0xfc] sm:$0xf] %v326_v63  ;;  %329 = vst [vmem:[%s4274_s29 + $0x100] sm:$0xf] %v328_v0  ;;  %v330_v1 = vld [vmem:[%s4267_s28 + $0x410] sm:$0xf] }
  0x3f   : > { %v332_v2 = vld [vmem:[%s4267_s28 + $0x420] sm:$0xf]  ;;  %v334_v3 = vld [vmem:[%s4267_s28 + $0x430] sm:$0xf]  ;;  %331 = vst [vmem:[%s4274_s29 + $0x104] sm:$0xf] %v330_v1 }
  0x40   : > { %333 = vst [vmem:[%s4274_s29 + $0x108] sm:$0xf] %v332_v2  ;;  %335 = vst [vmem:[%s4274_s29 + $0x10c] sm:$0xf] %v334_v3  ;;  %v336_v4 = vld [vmem:[%s4267_s28 + $0x440] sm:$0xf] }
  0x41   : > { %v338_v5 = vld [vmem:[%s4267_s28 + $0x450] sm:$0xf]  ;;  %v340_v6 = vld [vmem:[%s4267_s28 + $0x460] sm:$0xf]  ;;  %337 = vst [vmem:[%s4274_s29 + $0x110] sm:$0xf] %v336_v4 }
  0x42   : > { %339 = vst [vmem:[%s4274_s29 + $0x114] sm:$0xf] %v338_v5  ;;  %341 = vst [vmem:[%s4274_s29 + $0x118] sm:$0xf] %v340_v6  ;;  %v342_v7 = vld [vmem:[%s4267_s28 + $0x470] sm:$0xf] }
  0x43   : > { %v344_v8 = vld [vmem:[%s4267_s28 + $0x480] sm:$0xf]  ;;  %v346_v9 = vld [vmem:[%s4267_s28 + $0x490] sm:$0xf]  ;;  %343 = vst [vmem:[%s4274_s29 + $0x11c] sm:$0xf] %v342_v7 }
  0x44   : > { %345 = vst [vmem:[%s4274_s29 + $0x120] sm:$0xf] %v344_v8  ;;  %347 = vst [vmem:[%s4274_s29 + $0x124] sm:$0xf] %v346_v9  ;;  %v348_v10 = vld [vmem:[%s4267_s28 + $0x4a0] sm:$0xf] }
  0x45   : > { %v350_v11 = vld [vmem:[%s4267_s28 + $0x4b0] sm:$0xf]  ;;  %v352_v12 = vld [vmem:[%s4267_s28 + $0x4c0] sm:$0xf]  ;;  %349 = vst [vmem:[%s4274_s29 + $0x128] sm:$0xf] %v348_v10 }
  0x46   : > { %351 = vst [vmem:[%s4274_s29 + $0x12c] sm:$0xf] %v350_v11  ;;  %353 = vst [vmem:[%s4274_s29 + $0x130] sm:$0xf] %v352_v12  ;;  %v354_v13 = vld [vmem:[%s4267_s28 + $0x4d0] sm:$0xf] }
  0x47   : > { %v356_v14 = vld [vmem:[%s4267_s28 + $0x4e0] sm:$0xf]  ;;  %v358_v15 = vld [vmem:[%s4267_s28 + $0x4f0] sm:$0xf]  ;;  %355 = vst [vmem:[%s4274_s29 + $0x134] sm:$0xf] %v354_v13 }
  0x48   : > { %357 = vst [vmem:[%s4274_s29 + $0x138] sm:$0xf] %v356_v14  ;;  %359 = vst [vmem:[%s4274_s29 + $0x13c] sm:$0xf] %v358_v15  ;;  %v360_v16 = vld [vmem:[%s4267_s28 + $0x500] sm:$0xf] }
  0x49   : > { %v362_v17 = vld [vmem:[%s4267_s28 + $0x510] sm:$0xf]  ;;  %v364_v18 = vld [vmem:[%s4267_s28 + $0x520] sm:$0xf]  ;;  %361 = vst [vmem:[%s4274_s29 + $0x140] sm:$0xf] %v360_v16 }
  0x4a   : > { %363 = vst [vmem:[%s4274_s29 + $0x144] sm:$0xf] %v362_v17  ;;  %365 = vst [vmem:[%s4274_s29 + $0x148] sm:$0xf] %v364_v18  ;;  %v366_v19 = vld [vmem:[%s4267_s28 + $0x530] sm:$0xf] }
  0x4b   : > { %v368_v20 = vld [vmem:[%s4267_s28 + $0x540] sm:$0xf]  ;;  %v370_v21 = vld [vmem:[%s4267_s28 + $0x550] sm:$0xf]  ;;  %367 = vst [vmem:[%s4274_s29 + $0x14c] sm:$0xf] %v366_v19 }
  0x4c   : > { %369 = vst [vmem:[%s4274_s29 + $0x150] sm:$0xf] %v368_v20  ;;  %371 = vst [vmem:[%s4274_s29 + $0x154] sm:$0xf] %v370_v21  ;;  %v372_v22 = vld [vmem:[%s4267_s28 + $0x560] sm:$0xf] }
  0x4d   : > { %v374_v23 = vld [vmem:[%s4267_s28 + $0x570] sm:$0xf]  ;;  %v376_v24 = vld [vmem:[%s4267_s28 + $0x580] sm:$0xf]  ;;  %373 = vst [vmem:[%s4274_s29 + $0x158] sm:$0xf] %v372_v22 }
  0x4e   : > { %375 = vst [vmem:[%s4274_s29 + $0x15c] sm:$0xf] %v374_v23  ;;  %377 = vst [vmem:[%s4274_s29 + $0x160] sm:$0xf] %v376_v24  ;;  %v378_v25 = vld [vmem:[%s4267_s28 + $0x590] sm:$0xf] }
  0x4f   : > { %v380_v26 = vld [vmem:[%s4267_s28 + $0x5a0] sm:$0xf]  ;;  %v382_v27 = vld [vmem:[%s4267_s28 + $0x5b0] sm:$0xf]  ;;  %379 = vst [vmem:[%s4274_s29 + $0x164] sm:$0xf] %v378_v25 }
  0x50   : > { %381 = vst [vmem:[%s4274_s29 + $0x168] sm:$0xf] %v380_v26  ;;  %383 = vst [vmem:[%s4274_s29 + $0x16c] sm:$0xf] %v382_v27  ;;  %v384_v28 = vld [vmem:[%s4267_s28 + $0x5c0] sm:$0xf] }
  0x51   : > { %v386_v29 = vld [vmem:[%s4267_s28 + $0x5d0] sm:$0xf]  ;;  %v388_v30 = vld [vmem:[%s4267_s28 + $0x5e0] sm:$0xf]  ;;  %385 = vst [vmem:[%s4274_s29 + $0x170] sm:$0xf] %v384_v28 }
  0x52   : > { %387 = vst [vmem:[%s4274_s29 + $0x174] sm:$0xf] %v386_v29  ;;  %389 = vst [vmem:[%s4274_s29 + $0x178] sm:$0xf] %v388_v30  ;;  %v390_v31 = vld [vmem:[%s4267_s28 + $0x5f0] sm:$0xf] }
  0x53   : > { %v392_v32 = vld [vmem:[%s4267_s28 + $0x600] sm:$0xf]  ;;  %v394_v33 = vld [vmem:[%s4267_s28 + $0x610] sm:$0xf]  ;;  %391 = vst [vmem:[%s4274_s29 + $0x17c] sm:$0xf] %v390_v31 }
  0x54   : > { %393 = vst [vmem:[%s4274_s29 + $0x180] sm:$0xf] %v392_v32  ;;  %395 = vst [vmem:[%s4274_s29 + $0x184] sm:$0xf] %v394_v33  ;;  %v396_v34 = vld [vmem:[%s4267_s28 + $0x620] sm:$0xf] }
  0x55   : > { %v398_v35 = vld [vmem:[%s4267_s28 + $0x630] sm:$0xf]  ;;  %v400_v36 = vld [vmem:[%s4267_s28 + $0x640] sm:$0xf]  ;;  %397 = vst [vmem:[%s4274_s29 + $0x188] sm:$0xf] %v396_v34 }
  0x56   : > { %399 = vst [vmem:[%s4274_s29 + $0x18c] sm:$0xf] %v398_v35  ;;  %401 = vst [vmem:[%s4274_s29 + $0x190] sm:$0xf] %v400_v36  ;;  %v402_v37 = vld [vmem:[%s4267_s28 + $0x650] sm:$0xf] }
  0x57   : > { %v404_v38 = vld [vmem:[%s4267_s28 + $0x660] sm:$0xf]  ;;  %v406_v39 = vld [vmem:[%s4267_s28 + $0x670] sm:$0xf]  ;;  %403 = vst [vmem:[%s4274_s29 + $0x194] sm:$0xf] %v402_v37 }
  0x58   : > { %405 = vst [vmem:[%s4274_s29 + $0x198] sm:$0xf] %v404_v38  ;;  %407 = vst [vmem:[%s4274_s29 + $0x19c] sm:$0xf] %v406_v39  ;;  %v408_v40 = vld [vmem:[%s4267_s28 + $0x680] sm:$0xf] }
  0x59   : > { %v410_v41 = vld [vmem:[%s4267_s28 + $0x690] sm:$0xf]  ;;  %v412_v42 = vld [vmem:[%s4267_s28 + $0x6a0] sm:$0xf]  ;;  %409 = vst [vmem:[%s4274_s29 + $0x1a0] sm:$0xf] %v408_v40 }
  0x5a   : > { %411 = vst [vmem:[%s4274_s29 + $0x1a4] sm:$0xf] %v410_v41  ;;  %413 = vst [vmem:[%s4274_s29 + $0x1a8] sm:$0xf] %v412_v42  ;;  %v414_v43 = vld [vmem:[%s4267_s28 + $0x6b0] sm:$0xf] }
  0x5b   : > { %v416_v44 = vld [vmem:[%s4267_s28 + $0x6c0] sm:$0xf]  ;;  %v418_v45 = vld [vmem:[%s4267_s28 + $0x6d0] sm:$0xf]  ;;  %415 = vst [vmem:[%s4274_s29 + $0x1ac] sm:$0xf] %v414_v43 }
  0x5c   : > { %417 = vst [vmem:[%s4274_s29 + $0x1b0] sm:$0xf] %v416_v44  ;;  %419 = vst [vmem:[%s4274_s29 + $0x1b4] sm:$0xf] %v418_v45  ;;  %v420_v46 = vld [vmem:[%s4267_s28 + $0x6e0] sm:$0xf] }
  0x5d   : > { %v422_v47 = vld [vmem:[%s4267_s28 + $0x6f0] sm:$0xf]  ;;  %v424_v48 = vld [vmem:[%s4267_s28 + $0x700] sm:$0xf]  ;;  %421 = vst [vmem:[%s4274_s29 + $0x1b8] sm:$0xf] %v420_v46 }
  0x5e   : > { %423 = vst [vmem:[%s4274_s29 + $0x1bc] sm:$0xf] %v422_v47  ;;  %425 = vst [vmem:[%s4274_s29 + $0x1c0] sm:$0xf] %v424_v48  ;;  %v426_v49 = vld [vmem:[%s4267_s28 + $0x710] sm:$0xf] }
  0x5f   : > { %v428_v50 = vld [vmem:[%s4267_s28 + $0x720] sm:$0xf]  ;;  %v430_v51 = vld [vmem:[%s4267_s28 + $0x730] sm:$0xf]  ;;  %427 = vst [vmem:[%s4274_s29 + $0x1c4] sm:$0xf] %v426_v49 }
  0x60   : > { %429 = vst [vmem:[%s4274_s29 + $0x1c8] sm:$0xf] %v428_v50  ;;  %431 = vst [vmem:[%s4274_s29 + $0x1cc] sm:$0xf] %v430_v51  ;;  %v432_v52 = vld [vmem:[%s4267_s28 + $0x740] sm:$0xf] }
  0x61   : > { %v434_v53 = vld [vmem:[%s4267_s28 + $0x750] sm:$0xf]  ;;  %v436_v54 = vld [vmem:[%s4267_s28 + $0x760] sm:$0xf]  ;;  %433 = vst [vmem:[%s4274_s29 + $0x1d0] sm:$0xf] %v432_v52 }
  0x62   : > { %435 = vst [vmem:[%s4274_s29 + $0x1d4] sm:$0xf] %v434_v53  ;;  %437 = vst [vmem:[%s4274_s29 + $0x1d8] sm:$0xf] %v436_v54  ;;  %v438_v55 = vld [vmem:[%s4267_s28 + $0x770] sm:$0xf] }
  0x63   : > { %v440_v56 = vld [vmem:[%s4267_s28 + $0x780] sm:$0xf]  ;;  %v442_v57 = vld [vmem:[%s4267_s28 + $0x790] sm:$0xf]  ;;  %439 = vst [vmem:[%s4274_s29 + $0x1dc] sm:$0xf] %v438_v55 }
  0x64   : > { %441 = vst [vmem:[%s4274_s29 + $0x1e0] sm:$0xf] %v440_v56  ;;  %443 = vst [vmem:[%s4274_s29 + $0x1e4] sm:$0xf] %v442_v57  ;;  %v444_v58 = vld [vmem:[%s4267_s28 + $0x7a0] sm:$0xf] }
  0x65   : > { %v446_v59 = vld [vmem:[%s4267_s28 + $0x7b0] sm:$0xf]  ;;  %v448_v60 = vld [vmem:[%s4267_s28 + $0x7c0] sm:$0xf]  ;;  %445 = vst [vmem:[%s4274_s29 + $0x1e8] sm:$0xf] %v444_v58 }
  0x66   : > { %447 = vst [vmem:[%s4274_s29 + $0x1ec] sm:$0xf] %v446_v59  ;;  %449 = vst [vmem:[%s4274_s29 + $0x1f0] sm:$0xf] %v448_v60  ;;  %v450_v61 = vld [vmem:[%s4267_s28 + $0x7d0] sm:$0xf] }
  0x67   : > { %v452_v62 = vld [vmem:[%s4267_s28 + $0x7e0] sm:$0xf]  ;;  %v454_v63 = vld [vmem:[%s4267_s28 + $0x7f0] sm:$0xf]  ;;  %451 = vst [vmem:[%s4274_s29 + $0x1f4] sm:$0xf] %v450_v61 }
  0x68   : > { %453 = vst [vmem:[%s4274_s29 + $0x1f8] sm:$0xf] %v452_v62  ;;  %455 = vst [vmem:[%s4274_s29 + $0x1fc] sm:$0xf] %v454_v63  ;;  %v456_v0 = vld [vmem:[%s4267_s28 + $0x800] sm:$0xf] }
  0x69   : > { %v458_v1 = vld [vmem:[%s4267_s28 + $0x810] sm:$0xf]  ;;  %v460_v2 = vld [vmem:[%s4267_s28 + $0x820] sm:$0xf]  ;;  %457 = vst [vmem:[%s4274_s29 + $0x200] sm:$0xf] %v456_v0 }
  0x6a   : > { %459 = vst [vmem:[%s4274_s29 + $0x204] sm:$0xf] %v458_v1  ;;  %461 = vst [vmem:[%s4274_s29 + $0x208] sm:$0xf] %v460_v2  ;;  %v462_v3 = vld [vmem:[%s4267_s28 + $0x830] sm:$0xf] }
  0x6b   : > { %v464_v4 = vld [vmem:[%s4267_s28 + $0x840] sm:$0xf]  ;;  %v466_v5 = vld [vmem:[%s4267_s28 + $0x850] sm:$0xf]  ;;  %463 = vst [vmem:[%s4274_s29 + $0x20c] sm:$0xf] %v462_v3 }
  0x6c   : > { %465 = vst [vmem:[%s4274_s29 + $0x210] sm:$0xf] %v464_v4  ;;  %467 = vst [vmem:[%s4274_s29 + $0x214] sm:$0xf] %v466_v5  ;;  %v468_v6 = vld [vmem:[%s4267_s28 + $0x860] sm:$0xf] }
  0x6d   : > { %v470_v7 = vld [vmem:[%s4267_s28 + $0x870] sm:$0xf]  ;;  %v472_v8 = vld [vmem:[%s4267_s28 + $0x880] sm:$0xf]  ;;  %469 = vst [vmem:[%s4274_s29 + $0x218] sm:$0xf] %v468_v6 }
  0x6e   : > { %471 = vst [vmem:[%s4274_s29 + $0x21c] sm:$0xf] %v470_v7  ;;  %473 = vst [vmem:[%s4274_s29 + $0x220] sm:$0xf] %v472_v8  ;;  %v474_v9 = vld [vmem:[%s4267_s28 + $0x890] sm:$0xf] }
  0x6f   : > { %v476_v10 = vld [vmem:[%s4267_s28 + $0x8a0] sm:$0xf]  ;;  %v478_v11 = vld [vmem:[%s4267_s28 + $0x8b0] sm:$0xf]  ;;  %475 = vst [vmem:[%s4274_s29 + $0x224] sm:$0xf] %v474_v9 }
  0x70   : > { %477 = vst [vmem:[%s4274_s29 + $0x228] sm:$0xf] %v476_v10  ;;  %479 = vst [vmem:[%s4274_s29 + $0x22c] sm:$0xf] %v478_v11  ;;  %v480_v12 = vld [vmem:[%s4267_s28 + $0x8c0] sm:$0xf] }
  0x71   : > { %v482_v13 = vld [vmem:[%s4267_s28 + $0x8d0] sm:$0xf]  ;;  %v484_v14 = vld [vmem:[%s4267_s28 + $0x8e0] sm:$0xf]  ;;  %481 = vst [vmem:[%s4274_s29 + $0x230] sm:$0xf] %v480_v12 }
  0x72   : > { %483 = vst [vmem:[%s4274_s29 + $0x234] sm:$0xf] %v482_v13  ;;  %485 = vst [vmem:[%s4274_s29 + $0x238] sm:$0xf] %v484_v14  ;;  %v486_v15 = vld [vmem:[%s4267_s28 + $0x8f0] sm:$0xf] }
  0x73   : > { %v488_v16 = vld [vmem:[%s4267_s28 + $0x900] sm:$0xf]  ;;  %v490_v17 = vld [vmem:[%s4267_s28 + $0x910] sm:$0xf]  ;;  %487 = vst [vmem:[%s4274_s29 + $0x23c] sm:$0xf] %v486_v15 }
  0x74   : > { %489 = vst [vmem:[%s4274_s29 + $0x240] sm:$0xf] %v488_v16  ;;  %491 = vst [vmem:[%s4274_s29 + $0x244] sm:$0xf] %v490_v17  ;;  %v492_v18 = vld [vmem:[%s4267_s28 + $0x920] sm:$0xf] }
  0x75   : > { %v494_v19 = vld [vmem:[%s4267_s28 + $0x930] sm:$0xf]  ;;  %v496_v20 = vld [vmem:[%s4267_s28 + $0x940] sm:$0xf]  ;;  %493 = vst [vmem:[%s4274_s29 + $0x248] sm:$0xf] %v492_v18 }
  0x76   : > { %495 = vst [vmem:[%s4274_s29 + $0x24c] sm:$0xf] %v494_v19  ;;  %497 = vst [vmem:[%s4274_s29 + $0x250] sm:$0xf] %v496_v20  ;;  %v498_v21 = vld [vmem:[%s4267_s28 + $0x950] sm:$0xf] }
  0x77   : > { %v500_v22 = vld [vmem:[%s4267_s28 + $0x960] sm:$0xf]  ;;  %v502_v23 = vld [vmem:[%s4267_s28 + $0x970] sm:$0xf]  ;;  %499 = vst [vmem:[%s4274_s29 + $0x254] sm:$0xf] %v498_v21 }
  0x78   : > { %501 = vst [vmem:[%s4274_s29 + $0x258] sm:$0xf] %v500_v22  ;;  %503 = vst [vmem:[%s4274_s29 + $0x25c] sm:$0xf] %v502_v23  ;;  %v504_v24 = vld [vmem:[%s4267_s28 + $0x980] sm:$0xf] }
  0x79   : > { %v506_v25 = vld [vmem:[%s4267_s28 + $0x990] sm:$0xf]  ;;  %v508_v26 = vld [vmem:[%s4267_s28 + $0x9a0] sm:$0xf]  ;;  %505 = vst [vmem:[%s4274_s29 + $0x260] sm:$0xf] %v504_v24 }
  0x7a   : > { %507 = vst [vmem:[%s4274_s29 + $0x264] sm:$0xf] %v506_v25  ;;  %509 = vst [vmem:[%s4274_s29 + $0x268] sm:$0xf] %v508_v26  ;;  %v510_v27 = vld [vmem:[%s4267_s28 + $0x9b0] sm:$0xf] }
  0x7b   : > { %v512_v28 = vld [vmem:[%s4267_s28 + $0x9c0] sm:$0xf]  ;;  %v514_v29 = vld [vmem:[%s4267_s28 + $0x9d0] sm:$0xf]  ;;  %511 = vst [vmem:[%s4274_s29 + $0x26c] sm:$0xf] %v510_v27 }
  0x7c   : > { %513 = vst [vmem:[%s4274_s29 + $0x270] sm:$0xf] %v512_v28  ;;  %515 = vst [vmem:[%s4274_s29 + $0x274] sm:$0xf] %v514_v29  ;;  %v516_v30 = vld [vmem:[%s4267_s28 + $0x9e0] sm:$0xf] }
  0x7d   : > { %v518_v31 = vld [vmem:[%s4267_s28 + $0x9f0] sm:$0xf]  ;;  %v520_v32 = vld [vmem:[%s4267_s28 + $0xa00] sm:$0xf]  ;;  %517 = vst [vmem:[%s4274_s29 + $0x278] sm:$0xf] %v516_v30 }
  0x7e   : > { %519 = vst [vmem:[%s4274_s29 + $0x27c] sm:$0xf] %v518_v31  ;;  %521 = vst [vmem:[%s4274_s29 + $0x280] sm:$0xf] %v520_v32  ;;  %v522_v33 = vld [vmem:[%s4267_s28 + $0xa10] sm:$0xf] }
  0x7f   : > { %v524_v34 = vld [vmem:[%s4267_s28 + $0xa20] sm:$0xf]  ;;  %v526_v35 = vld [vmem:[%s4267_s28 + $0xa30] sm:$0xf]  ;;  %523 = vst [vmem:[%s4274_s29 + $0x284] sm:$0xf] %v522_v33 }
  0x80   : > { %525 = vst [vmem:[%s4274_s29 + $0x288] sm:$0xf] %v524_v34  ;;  %527 = vst [vmem:[%s4274_s29 + $0x28c] sm:$0xf] %v526_v35  ;;  %v528_v36 = vld [vmem:[%s4267_s28 + $0xa40] sm:$0xf] }
  0x81   : > { %v530_v37 = vld [vmem:[%s4267_s28 + $0xa50] sm:$0xf]  ;;  %v532_v38 = vld [vmem:[%s4267_s28 + $0xa60] sm:$0xf]  ;;  %529 = vst [vmem:[%s4274_s29 + $0x290] sm:$0xf] %v528_v36 }
  0x82   : > { %531 = vst [vmem:[%s4274_s29 + $0x294] sm:$0xf] %v530_v37  ;;  %533 = vst [vmem:[%s4274_s29 + $0x298] sm:$0xf] %v532_v38  ;;  %v534_v39 = vld [vmem:[%s4267_s28 + $0xa70] sm:$0xf] }
  0x83   : > { %v536_v40 = vld [vmem:[%s4267_s28 + $0xa80] sm:$0xf]  ;;  %v538_v41 = vld [vmem:[%s4267_s28 + $0xa90] sm:$0xf]  ;;  %535 = vst [vmem:[%s4274_s29 + $0x29c] sm:$0xf] %v534_v39 }
  0x84   : > { %537 = vst [vmem:[%s4274_s29 + $0x2a0] sm:$0xf] %v536_v40  ;;  %539 = vst [vmem:[%s4274_s29 + $0x2a4] sm:$0xf] %v538_v41  ;;  %v540_v42 = vld [vmem:[%s4267_s28 + $0xaa0] sm:$0xf] }
  0x85   : > { %v542_v43 = vld [vmem:[%s4267_s28 + $0xab0] sm:$0xf]  ;;  %v544_v44 = vld [vmem:[%s4267_s28 + $0xac0] sm:$0xf]  ;;  %541 = vst [vmem:[%s4274_s29 + $0x2a8] sm:$0xf] %v540_v42 }
  0x86   : > { %543 = vst [vmem:[%s4274_s29 + $0x2ac] sm:$0xf] %v542_v43  ;;  %545 = vst [vmem:[%s4274_s29 + $0x2b0] sm:$0xf] %v544_v44  ;;  %v546_v45 = vld [vmem:[%s4267_s28 + $0xad0] sm:$0xf] }
  0x87   : > { %v548_v46 = vld [vmem:[%s4267_s28 + $0xae0] sm:$0xf]  ;;  %v550_v47 = vld [vmem:[%s4267_s28 + $0xaf0] sm:$0xf]  ;;  %547 = vst [vmem:[%s4274_s29 + $0x2b4] sm:$0xf] %v546_v45 }
  0x88   : > { %549 = vst [vmem:[%s4274_s29 + $0x2b8] sm:$0xf] %v548_v46  ;;  %551 = vst [vmem:[%s4274_s29 + $0x2bc] sm:$0xf] %v550_v47  ;;  %v552_v48 = vld [vmem:[%s4267_s28 + $0xb00] sm:$0xf] }
  0x89   : > { %v554_v49 = vld [vmem:[%s4267_s28 + $0xb10] sm:$0xf]  ;;  %v556_v50 = vld [vmem:[%s4267_s28 + $0xb20] sm:$0xf]  ;;  %553 = vst [vmem:[%s4274_s29 + $0x2c0] sm:$0xf] %v552_v48 }
  0x8a   : > { %555 = vst [vmem:[%s4274_s29 + $0x2c4] sm:$0xf] %v554_v49  ;;  %557 = vst [vmem:[%s4274_s29 + $0x2c8] sm:$0xf] %v556_v50  ;;  %v558_v51 = vld [vmem:[%s4267_s28 + $0xb30] sm:$0xf] }
  0x8b   : > { %v560_v52 = vld [vmem:[%s4267_s28 + $0xb40] sm:$0xf]  ;;  %v562_v53 = vld [vmem:[%s4267_s28 + $0xb50] sm:$0xf]  ;;  %559 = vst [vmem:[%s4274_s29 + $0x2cc] sm:$0xf] %v558_v51 }
  0x8c   : > { %561 = vst [vmem:[%s4274_s29 + $0x2d0] sm:$0xf] %v560_v52  ;;  %563 = vst [vmem:[%s4274_s29 + $0x2d4] sm:$0xf] %v562_v53  ;;  %v564_v54 = vld [vmem:[%s4267_s28 + $0xb60] sm:$0xf] }
  0x8d   : > { %v566_v55 = vld [vmem:[%s4267_s28 + $0xb70] sm:$0xf]  ;;  %v568_v56 = vld [vmem:[%s4267_s28 + $0xb80] sm:$0xf]  ;;  %565 = vst [vmem:[%s4274_s29 + $0x2d8] sm:$0xf] %v564_v54 }
  0x8e   : > { %567 = vst [vmem:[%s4274_s29 + $0x2dc] sm:$0xf] %v566_v55  ;;  %569 = vst [vmem:[%s4274_s29 + $0x2e0] sm:$0xf] %v568_v56  ;;  %v570_v57 = vld [vmem:[%s4267_s28 + $0xb90] sm:$0xf] }
  0x8f   : > { %v572_v58 = vld [vmem:[%s4267_s28 + $0xba0] sm:$0xf]  ;;  %v574_v59 = vld [vmem:[%s4267_s28 + $0xbb0] sm:$0xf]  ;;  %571 = vst [vmem:[%s4274_s29 + $0x2e4] sm:$0xf] %v570_v57 }
  0x90   : > { %573 = vst [vmem:[%s4274_s29 + $0x2e8] sm:$0xf] %v572_v58  ;;  %575 = vst [vmem:[%s4274_s29 + $0x2ec] sm:$0xf] %v574_v59  ;;  %v576_v60 = vld [vmem:[%s4267_s28 + $0xbc0] sm:$0xf] }
  0x91   : > { %v578_v61 = vld [vmem:[%s4267_s28 + $0xbd0] sm:$0xf]  ;;  %v580_v62 = vld [vmem:[%s4267_s28 + $0xbe0] sm:$0xf]  ;;  %577 = vst [vmem:[%s4274_s29 + $0x2f0] sm:$0xf] %v576_v60 }
  0x92   : > { %579 = vst [vmem:[%s4274_s29 + $0x2f4] sm:$0xf] %v578_v61  ;;  %581 = vst [vmem:[%s4274_s29 + $0x2f8] sm:$0xf] %v580_v62  ;;  %v582_v63 = vld [vmem:[%s4267_s28 + $0xbf0] sm:$0xf] }
  0x93   : > { %v584_v0 = vld [vmem:[%s4267_s28 + $0xc00] sm:$0xf]  ;;  %v586_v1 = vld [vmem:[%s4267_s28 + $0xc10] sm:$0xf]  ;;  %583 = vst [vmem:[%s4274_s29 + $0x2fc] sm:$0xf] %v582_v63 }
  0x94   : > { %585 = vst [vmem:[%s4274_s29 + $0x300] sm:$0xf] %v584_v0  ;;  %587 = vst [vmem:[%s4274_s29 + $0x304] sm:$0xf] %v586_v1  ;;  %v588_v2 = vld [vmem:[%s4267_s28 + $0xc20] sm:$0xf] }
  0x95   : > { %v590_v3 = vld [vmem:[%s4267_s28 + $0xc30] sm:$0xf]  ;;  %v592_v4 = vld [vmem:[%s4267_s28 + $0xc40] sm:$0xf]  ;;  %589 = vst [vmem:[%s4274_s29 + $0x308] sm:$0xf] %v588_v2 }
  0x96   : > { %591 = vst [vmem:[%s4274_s29 + $0x30c] sm:$0xf] %v590_v3  ;;  %593 = vst [vmem:[%s4274_s29 + $0x310] sm:$0xf] %v592_v4  ;;  %v594_v5 = vld [vmem:[%s4267_s28 + $0xc50] sm:$0xf] }
  0x97   : > { %v596_v6 = vld [vmem:[%s4267_s28 + $0xc60] sm:$0xf]  ;;  %v598_v7 = vld [vmem:[%s4267_s28 + $0xc70] sm:$0xf]  ;;  %595 = vst [vmem:[%s4274_s29 + $0x314] sm:$0xf] %v594_v5 }
  0x98   : > { %597 = vst [vmem:[%s4274_s29 + $0x318] sm:$0xf] %v596_v6  ;;  %599 = vst [vmem:[%s4274_s29 + $0x31c] sm:$0xf] %v598_v7  ;;  %v600_v8 = vld [vmem:[%s4267_s28 + $0xc80] sm:$0xf] }
  0x99   : > { %v602_v9 = vld [vmem:[%s4267_s28 + $0xc90] sm:$0xf]  ;;  %v604_v10 = vld [vmem:[%s4267_s28 + $0xca0] sm:$0xf]  ;;  %601 = vst [vmem:[%s4274_s29 + $0x320] sm:$0xf] %v600_v8 }
  0x9a   : > { %603 = vst [vmem:[%s4274_s29 + $0x324] sm:$0xf] %v602_v9  ;;  %605 = vst [vmem:[%s4274_s29 + $0x328] sm:$0xf] %v604_v10  ;;  %v606_v11 = vld [vmem:[%s4267_s28 + $0xcb0] sm:$0xf] }
  0x9b   : > { %v608_v12 = vld [vmem:[%s4267_s28 + $0xcc0] sm:$0xf]  ;;  %v610_v13 = vld [vmem:[%s4267_s28 + $0xcd0] sm:$0xf]  ;;  %607 = vst [vmem:[%s4274_s29 + $0x32c] sm:$0xf] %v606_v11 }
  0x9c   : > { %609 = vst [vmem:[%s4274_s29 + $0x330] sm:$0xf] %v608_v12  ;;  %611 = vst [vmem:[%s4274_s29 + $0x334] sm:$0xf] %v610_v13  ;;  %v612_v14 = vld [vmem:[%s4267_s28 + $0xce0] sm:$0xf] }
  0x9d   : > { %v614_v15 = vld [vmem:[%s4267_s28 + $0xcf0] sm:$0xf]  ;;  %v616_v16 = vld [vmem:[%s4267_s28 + $0xd00] sm:$0xf]  ;;  %613 = vst [vmem:[%s4274_s29 + $0x338] sm:$0xf] %v612_v14 }
  0x9e   : > { %615 = vst [vmem:[%s4274_s29 + $0x33c] sm:$0xf] %v614_v15  ;;  %617 = vst [vmem:[%s4274_s29 + $0x340] sm:$0xf] %v616_v16  ;;  %v618_v17 = vld [vmem:[%s4267_s28 + $0xd10] sm:$0xf] }
  0x9f   : > { %v620_v18 = vld [vmem:[%s4267_s28 + $0xd20] sm:$0xf]  ;;  %v622_v19 = vld [vmem:[%s4267_s28 + $0xd30] sm:$0xf]  ;;  %619 = vst [vmem:[%s4274_s29 + $0x344] sm:$0xf] %v618_v17 }
  0xa0   : > { %621 = vst [vmem:[%s4274_s29 + $0x348] sm:$0xf] %v620_v18  ;;  %623 = vst [vmem:[%s4274_s29 + $0x34c] sm:$0xf] %v622_v19  ;;  %v624_v20 = vld [vmem:[%s4267_s28 + $0xd40] sm:$0xf] }
  0xa1   : > { %v626_v21 = vld [vmem:[%s4267_s28 + $0xd50] sm:$0xf]  ;;  %v628_v22 = vld [vmem:[%s4267_s28 + $0xd60] sm:$0xf]  ;;  %625 = vst [vmem:[%s4274_s29 + $0x350] sm:$0xf] %v624_v20 }
  0xa2   : > { %627 = vst [vmem:[%s4274_s29 + $0x354] sm:$0xf] %v626_v21  ;;  %629 = vst [vmem:[%s4274_s29 + $0x358] sm:$0xf] %v628_v22  ;;  %v630_v23 = vld [vmem:[%s4267_s28 + $0xd70] sm:$0xf] }
  0xa3   : > { %v632_v24 = vld [vmem:[%s4267_s28 + $0xd80] sm:$0xf]  ;;  %v634_v25 = vld [vmem:[%s4267_s28 + $0xd90] sm:$0xf]  ;;  %631 = vst [vmem:[%s4274_s29 + $0x35c] sm:$0xf] %v630_v23 }
  0xa4   : > { %633 = vst [vmem:[%s4274_s29 + $0x360] sm:$0xf] %v632_v24  ;;  %635 = vst [vmem:[%s4274_s29 + $0x364] sm:$0xf] %v634_v25  ;;  %v636_v26 = vld [vmem:[%s4267_s28 + $0xda0] sm:$0xf] }
  0xa5   : > { %v638_v27 = vld [vmem:[%s4267_s28 + $0xdb0] sm:$0xf]  ;;  %v640_v28 = vld [vmem:[%s4267_s28 + $0xdc0] sm:$0xf]  ;;  %637 = vst [vmem:[%s4274_s29 + $0x368] sm:$0xf] %v636_v26 }
  0xa6   : > { %639 = vst [vmem:[%s4274_s29 + $0x36c] sm:$0xf] %v638_v27  ;;  %641 = vst [vmem:[%s4274_s29 + $0x370] sm:$0xf] %v640_v28  ;;  %v642_v29 = vld [vmem:[%s4267_s28 + $0xdd0] sm:$0xf] }
  0xa7   : > { %v644_v30 = vld [vmem:[%s4267_s28 + $0xde0] sm:$0xf]  ;;  %v646_v31 = vld [vmem:[%s4267_s28 + $0xdf0] sm:$0xf]  ;;  %643 = vst [vmem:[%s4274_s29 + $0x374] sm:$0xf] %v642_v29 }
  0xa8   : > { %645 = vst [vmem:[%s4274_s29 + $0x378] sm:$0xf] %v644_v30  ;;  %647 = vst [vmem:[%s4274_s29 + $0x37c] sm:$0xf] %v646_v31  ;;  %v648_v32 = vld [vmem:[%s4267_s28 + $0xe00] sm:$0xf] }
  0xa9   : > { %v650_v33 = vld [vmem:[%s4267_s28 + $0xe10] sm:$0xf]  ;;  %v652_v34 = vld [vmem:[%s4267_s28 + $0xe20] sm:$0xf]  ;;  %649 = vst [vmem:[%s4274_s29 + $0x380] sm:$0xf] %v648_v32 }
  0xaa   : > { %651 = vst [vmem:[%s4274_s29 + $0x384] sm:$0xf] %v650_v33  ;;  %653 = vst [vmem:[%s4274_s29 + $0x388] sm:$0xf] %v652_v34  ;;  %v654_v35 = vld [vmem:[%s4267_s28 + $0xe30] sm:$0xf] }
  0xab   : > { %v656_v36 = vld [vmem:[%s4267_s28 + $0xe40] sm:$0xf]  ;;  %v658_v37 = vld [vmem:[%s4267_s28 + $0xe50] sm:$0xf]  ;;  %655 = vst [vmem:[%s4274_s29 + $0x38c] sm:$0xf] %v654_v35 }
  0xac   : > { %657 = vst [vmem:[%s4274_s29 + $0x390] sm:$0xf] %v656_v36  ;;  %659 = vst [vmem:[%s4274_s29 + $0x394] sm:$0xf] %v658_v37  ;;  %v660_v38 = vld [vmem:[%s4267_s28 + $0xe60] sm:$0xf] }
  0xad   : > { %v662_v39 = vld [vmem:[%s4267_s28 + $0xe70] sm:$0xf]  ;;  %v664_v40 = vld [vmem:[%s4267_s28 + $0xe80] sm:$0xf]  ;;  %661 = vst [vmem:[%s4274_s29 + $0x398] sm:$0xf] %v660_v38 }
  0xae   : > { %663 = vst [vmem:[%s4274_s29 + $0x39c] sm:$0xf] %v662_v39  ;;  %665 = vst [vmem:[%s4274_s29 + $0x3a0] sm:$0xf] %v664_v40  ;;  %v666_v41 = vld [vmem:[%s4267_s28 + $0xe90] sm:$0xf] }
  0xaf   : > { %v668_v42 = vld [vmem:[%s4267_s28 + $0xea0] sm:$0xf]  ;;  %v670_v43 = vld [vmem:[%s4267_s28 + $0xeb0] sm:$0xf]  ;;  %667 = vst [vmem:[%s4274_s29 + $0x3a4] sm:$0xf] %v666_v41 }
  0xb0   : > { %669 = vst [vmem:[%s4274_s29 + $0x3a8] sm:$0xf] %v668_v42  ;;  %671 = vst [vmem:[%s4274_s29 + $0x3ac] sm:$0xf] %v670_v43  ;;  %v672_v44 = vld [vmem:[%s4267_s28 + $0xec0] sm:$0xf] }
  0xb1   : > { %v674_v45 = vld [vmem:[%s4267_s28 + $0xed0] sm:$0xf]  ;;  %v676_v46 = vld [vmem:[%s4267_s28 + $0xee0] sm:$0xf]  ;;  %673 = vst [vmem:[%s4274_s29 + $0x3b0] sm:$0xf] %v672_v44 }
  0xb2   : > { %675 = vst [vmem:[%s4274_s29 + $0x3b4] sm:$0xf] %v674_v45  ;;  %677 = vst [vmem:[%s4274_s29 + $0x3b8] sm:$0xf] %v676_v46  ;;  %v678_v47 = vld [vmem:[%s4267_s28 + $0xef0] sm:$0xf] }
  0xb3   : > { %v680_v48 = vld [vmem:[%s4267_s28 + $0xf00] sm:$0xf]  ;;  %v682_v49 = vld [vmem:[%s4267_s28 + $0xf10] sm:$0xf]  ;;  %679 = vst [vmem:[%s4274_s29 + $0x3bc] sm:$0xf] %v678_v47 }
  0xb4   : > { %681 = vst [vmem:[%s4274_s29 + $0x3c0] sm:$0xf] %v680_v48  ;;  %683 = vst [vmem:[%s4274_s29 + $0x3c4] sm:$0xf] %v682_v49  ;;  %v684_v50 = vld [vmem:[%s4267_s28 + $0xf20] sm:$0xf] }
  0xb5   : > { %v686_v51 = vld [vmem:[%s4267_s28 + $0xf30] sm:$0xf]  ;;  %v688_v52 = vld [vmem:[%s4267_s28 + $0xf40] sm:$0xf]  ;;  %685 = vst [vmem:[%s4274_s29 + $0x3c8] sm:$0xf] %v684_v50 }
  0xb6   : > { %687 = vst [vmem:[%s4274_s29 + $0x3cc] sm:$0xf] %v686_v51  ;;  %689 = vst [vmem:[%s4274_s29 + $0x3d0] sm:$0xf] %v688_v52  ;;  %v690_v53 = vld [vmem:[%s4267_s28 + $0xf50] sm:$0xf] }
  0xb7   : > { %v692_v54 = vld [vmem:[%s4267_s28 + $0xf60] sm:$0xf]  ;;  %v694_v55 = vld [vmem:[%s4267_s28 + $0xf70] sm:$0xf]  ;;  %691 = vst [vmem:[%s4274_s29 + $0x3d4] sm:$0xf] %v690_v53 }
  0xb8   : > { %693 = vst [vmem:[%s4274_s29 + $0x3d8] sm:$0xf] %v692_v54  ;;  %695 = vst [vmem:[%s4274_s29 + $0x3dc] sm:$0xf] %v694_v55  ;;  %v696_v56 = vld [vmem:[%s4267_s28 + $0xf80] sm:$0xf] }
  0xb9   : > { %v698_v57 = vld [vmem:[%s4267_s28 + $0xf90] sm:$0xf]  ;;  %v700_v58 = vld [vmem:[%s4267_s28 + $0xfa0] sm:$0xf]  ;;  %697 = vst [vmem:[%s4274_s29 + $0x3e0] sm:$0xf] %v696_v56 }
  0xba   : > { %699 = vst [vmem:[%s4274_s29 + $0x3e4] sm:$0xf] %v698_v57  ;;  %701 = vst [vmem:[%s4274_s29 + $0x3e8] sm:$0xf] %v700_v58  ;;  %v702_v59 = vld [vmem:[%s4267_s28 + $0xfb0] sm:$0xf] }
  0xbb   : > { %v704_v60 = vld [vmem:[%s4267_s28 + $0xfc0] sm:$0xf]  ;;  %v706_v61 = vld [vmem:[%s4267_s28 + $0xfd0] sm:$0xf]  ;;  %703 = vst [vmem:[%s4274_s29 + $0x3ec] sm:$0xf] %v702_v59 }
  0xbc   : > { %705 = vst [vmem:[%s4274_s29 + $0x3f0] sm:$0xf] %v704_v60  ;;  %707 = vst [vmem:[%s4274_s29 + $0x3f4] sm:$0xf] %v706_v61  ;;  %v708_v62 = vld [vmem:[%s4267_s28 + $0xfe0] sm:$0xf] }
  0xbd   : > { %v710_v63 = vld [vmem:[%s4267_s28 + $0xff0] sm:$0xf]  ;;  %v712_v0 = vld [vmem:[%s4267_s28 + $0x1000] sm:$0xf]  ;;  %709 = vst [vmem:[%s4274_s29 + $0x3f8] sm:$0xf] %v708_v62 }
  0xbe   : > { %711 = vst [vmem:[%s4274_s29 + $0x3fc] sm:$0xf] %v710_v63  ;;  %713 = vst [vmem:[%s4274_s29 + $0x400] sm:$0xf] %v712_v0  ;;  %v714_v1 = vld [vmem:[%s4267_s28 + $0x1010] sm:$0xf] }
  0xbf   : > { %v716_v2 = vld [vmem:[%s4267_s28 + $0x1020] sm:$0xf]  ;;  %v718_v3 = vld [vmem:[%s4267_s28 + $0x1030] sm:$0xf]  ;;  %715 = vst [vmem:[%s4274_s29 + $0x404] sm:$0xf] %v714_v1 }
  0xc0   : > { %717 = vst [vmem:[%s4274_s29 + $0x408] sm:$0xf] %v716_v2  ;;  %719 = vst [vmem:[%s4274_s29 + $0x40c] sm:$0xf] %v718_v3  ;;  %v720_v4 = vld [vmem:[%s4267_s28 + $0x1040] sm:$0xf] }
  0xc1   : > { %v722_v5 = vld [vmem:[%s4267_s28 + $0x1050] sm:$0xf]  ;;  %v724_v6 = vld [vmem:[%s4267_s28 + $0x1060] sm:$0xf]  ;;  %721 = vst [vmem:[%s4274_s29 + $0x410] sm:$0xf] %v720_v4 }
  0xc2   : > { %723 = vst [vmem:[%s4274_s29 + $0x414] sm:$0xf] %v722_v5  ;;  %725 = vst [vmem:[%s4274_s29 + $0x418] sm:$0xf] %v724_v6  ;;  %v726_v7 = vld [vmem:[%s4267_s28 + $0x1070] sm:$0xf] }
  0xc3   : > { %v728_v8 = vld [vmem:[%s4267_s28 + $0x1080] sm:$0xf]  ;;  %v730_v9 = vld [vmem:[%s4267_s28 + $0x1090] sm:$0xf]  ;;  %727 = vst [vmem:[%s4274_s29 + $0x41c] sm:$0xf] %v726_v7 }
  0xc4   : > { %729 = vst [vmem:[%s4274_s29 + $0x420] sm:$0xf] %v728_v8  ;;  %731 = vst [vmem:[%s4274_s29 + $0x424] sm:$0xf] %v730_v9  ;;  %v732_v10 = vld [vmem:[%s4267_s28 + $0x10a0] sm:$0xf] }
  0xc5   : > { %v734_v11 = vld [vmem:[%s4267_s28 + $0x10b0] sm:$0xf]  ;;  %v736_v12 = vld [vmem:[%s4267_s28 + $0x10c0] sm:$0xf]  ;;  %733 = vst [vmem:[%s4274_s29 + $0x428] sm:$0xf] %v732_v10 }
  0xc6   : > { %735 = vst [vmem:[%s4274_s29 + $0x42c] sm:$0xf] %v734_v11  ;;  %737 = vst [vmem:[%s4274_s29 + $0x430] sm:$0xf] %v736_v12  ;;  %v738_v13 = vld [vmem:[%s4267_s28 + $0x10d0] sm:$0xf] }
  0xc7   : > { %v740_v14 = vld [vmem:[%s4267_s28 + $0x10e0] sm:$0xf]  ;;  %v742_v15 = vld [vmem:[%s4267_s28 + $0x10f0] sm:$0xf]  ;;  %739 = vst [vmem:[%s4274_s29 + $0x434] sm:$0xf] %v738_v13 }
  0xc8   : > { %741 = vst [vmem:[%s4274_s29 + $0x438] sm:$0xf] %v740_v14  ;;  %743 = vst [vmem:[%s4274_s29 + $0x43c] sm:$0xf] %v742_v15  ;;  %v744_v16 = vld [vmem:[%s4267_s28 + $0x1100] sm:$0xf] }
  0xc9   : > { %v746_v17 = vld [vmem:[%s4267_s28 + $0x1110] sm:$0xf]  ;;  %v748_v18 = vld [vmem:[%s4267_s28 + $0x1120] sm:$0xf]  ;;  %745 = vst [vmem:[%s4274_s29 + $0x440] sm:$0xf] %v744_v16 }
  0xca   : > { %747 = vst [vmem:[%s4274_s29 + $0x444] sm:$0xf] %v746_v17  ;;  %749 = vst [vmem:[%s4274_s29 + $0x448] sm:$0xf] %v748_v18  ;;  %v750_v19 = vld [vmem:[%s4267_s28 + $0x1130] sm:$0xf] }
  0xcb   : > { %v752_v20 = vld [vmem:[%s4267_s28 + $0x1140] sm:$0xf]  ;;  %v754_v21 = vld [vmem:[%s4267_s28 + $0x1150] sm:$0xf]  ;;  %751 = vst [vmem:[%s4274_s29 + $0x44c] sm:$0xf] %v750_v19 }
  0xcc   : > { %753 = vst [vmem:[%s4274_s29 + $0x450] sm:$0xf] %v752_v20  ;;  %755 = vst [vmem:[%s4274_s29 + $0x454] sm:$0xf] %v754_v21  ;;  %v756_v22 = vld [vmem:[%s4267_s28 + $0x1160] sm:$0xf] }
  0xcd   : > { %v758_v23 = vld [vmem:[%s4267_s28 + $0x1170] sm:$0xf]  ;;  %v760_v24 = vld [vmem:[%s4267_s28 + $0x1180] sm:$0xf]  ;;  %757 = vst [vmem:[%s4274_s29 + $0x458] sm:$0xf] %v756_v22 }
  0xce   : > { %759 = vst [vmem:[%s4274_s29 + $0x45c] sm:$0xf] %v758_v23  ;;  %761 = vst [vmem:[%s4274_s29 + $0x460] sm:$0xf] %v760_v24  ;;  %v762_v25 = vld [vmem:[%s4267_s28 + $0x1190] sm:$0xf] }
  0xcf   : > { %v764_v26 = vld [vmem:[%s4267_s28 + $0x11a0] sm:$0xf]  ;;  %v766_v27 = vld [vmem:[%s4267_s28 + $0x11b0] sm:$0xf]  ;;  %763 = vst [vmem:[%s4274_s29 + $0x464] sm:$0xf] %v762_v25 }
  0xd0   : > { %765 = vst [vmem:[%s4274_s29 + $0x468] sm:$0xf] %v764_v26  ;;  %767 = vst [vmem:[%s4274_s29 + $0x46c] sm:$0xf] %v766_v27  ;;  %v768_v28 = vld [vmem:[%s4267_s28 + $0x11c0] sm:$0xf] }
  0xd1   : > { %v770_v29 = vld [vmem:[%s4267_s28 + $0x11d0] sm:$0xf]  ;;  %v772_v30 = vld [vmem:[%s4267_s28 + $0x11e0] sm:$0xf]  ;;  %769 = vst [vmem:[%s4274_s29 + $0x470] sm:$0xf] %v768_v28 }
  0xd2   : > { %771 = vst [vmem:[%s4274_s29 + $0x474] sm:$0xf] %v770_v29  ;;  %773 = vst [vmem:[%s4274_s29 + $0x478] sm:$0xf] %v772_v30  ;;  %v774_v31 = vld [vmem:[%s4267_s28 + $0x11f0] sm:$0xf] }
  0xd3   : > { %775 = vst [vmem:[%s4274_s29 + $0x47c] sm:$0xf] %v774_v31 }
  0xd4 PF: > { %p3464_p8 = scmp.ge.s32.totalorder %s4197_s16, 1  ;;  %p1380_p9 = scmp.lt.s32.totalorder %s4197_s16, 5 }
  0xd6   : > { %p1381_p10 = pnand %p3464_p8, %p1380_p9 }
  0xd8   : > { %1384 = sbr.rel (%p1381_p10) target bundleno = 606 (0x25e), region = 69 }
  0xdd   : > { %s1387_s30 = sand.u32 1, %s4181_s12   ;;  %v3995_v32 = vld [vmem:[%s5158_s0 + $0x4] ss:$72 sps:$4 sm:$0xff]   ;;  %v3993_v0 = vld [vmem:[%s5158_s0] ss:$72 sps:$4 sm:$0xff]   ;;  %p1435_p11 = scmp.lt.s32.totalorder %s4189_s14, 3 }
  0xde   : > { %s3920_s4 = smul.u32 1152, %s1387_s30  ;;  %v3998_v33 = vld [vmem:[%s5158_s0 + $0xc] ss:$72 sps:$4 sm:$0xff]   ;;  %2852 = vmatprep.mubr.bf16.mxu0 %v3995_v32  ;;  %v3996_v2 = vld [vmem:[%s5158_s0 + $0x8] ss:$72 sps:$4 sm:$0xff]   ;;  %s3465_s19 = sshll.u32 %s1387_s30, 5 }
  0xdf   : > { %2901 = vmatprep.mubr.bf16.mxu1 %v3998_v33  ;;  %v4019_v4 = vld [vmem:[%s5158_s0 + $0x94] ss:$72 sps:$4 sm:$0xff]   ;;  %v4023_v26 = vld [vmem:[%s5158_s0 + $0x90] ss:$72 sps:$4 sm:$0xff]   ;;  %s1421_s20 = scalar_lea.vmem [#allocation4], %s3465_s19  ;;  %s3648_s12 = sshll.u32 (%p4254_p6), %s4189_s14, 3 }
  0xe0   : > { %s4858_s9 = scalar_lea.vmem [#allocation3], %s3920_s4  ;;  %v4021_v25 = vld [vmem:[%s5158_s0 + $0x9c] ss:$72 sps:$4 sm:$0xff]   ;;  %v4024_v27 = vld [vmem:[%s5158_s0 + $0x98] ss:$72 sps:$4 sm:$0xff]   ;;  %s3310_s24 = scalar_lea.vmem (%p4254_p6), %s5161_s3, %s3648_s12 }
  0xe1   : > { %v3961_v34 = vld [vmem:[%s4858_s9 + $0x78] sm:$0xff]   ;;  %v3965_v38 = vld [vmem:[%s4858_s9 + $0x70] sm:$0xff]   ;;  %v3969_v42 = vld [vmem:[%s4858_s9 + $0x68] sm:$0xff]  }
  0xe2   : > { %v3962_v35 = vld [vmem:[%s4858_s9 + $0xf8] sm:$0xff]   ;;  %3651 = vmatprep.subr.bf16.mxu0 %v3961_v34  ;;  %v3966_v39 = vld [vmem:[%s4858_s9 + $0xf0] sm:$0xff]   ;;  %v3970_v43 = vld [vmem:[%s4858_s9 + $0xe8] sm:$0xff]  }
  0xe3   : > { %v3963_v36 = vld [vmem:[%s4858_s9 + $0x38] sm:$0xff]   ;;  %3679 = vmatprep.subr.bf16.mxu1 %v3962_v35  ;;  %v3967_v40 = vld [vmem:[%s4858_s9 + $0x30] sm:$0xff]   ;;  %v3971_v44 = vld [vmem:[%s4858_s9 + $0x28] sm:$0xff]  }
  0xe4   : > { %v3964_v37 = vld [vmem:[%s4858_s9 + $0xb8] sm:$0xff]   ;;  %3652 = vmatpush3.bf16.msra.mxu0 %v3963_v36  ;;  %v3968_v41 = vld [vmem:[%s4858_s9 + $0xb0] sm:$0xff]   ;;  %v3972_v45 = vld [vmem:[%s4858_s9 + $0xa8] sm:$0xff]  }
  0xe5   : > { %3680 = vmatpush3.bf16.msra.mxu1 %v3964_v37  ;;  %3653 = vmatprep.subr.bf16.mxu0 %v3965_v38  ;;  %v3973_v46 = vld [vmem:[%s4858_s9 + $0x60] sm:$0xff]   ;;  %v3977_v50 = vld [vmem:[%s4858_s9 + $0x58] sm:$0xff]   ;;  %v3981_v54 = vld [vmem:[%s4858_s9 + $0x50] sm:$0xff]  }
  0xe6   : > { %3681 = vmatprep.subr.bf16.mxu1 %v3966_v39  ;;  %v3974_v47 = vld [vmem:[%s4858_s9 + $0xe0] sm:$0xff]   ;;  %v3978_v51 = vld [vmem:[%s4858_s9 + $0xd8] sm:$0xff]   ;;  %v3982_v55 = vld [vmem:[%s4858_s9 + $0xd0] sm:$0xff]  }
  0xe7   : > { %v3975_v48 = vld [vmem:[%s4858_s9 + $0x20] sm:$0xff]   ;;  %v3979_v52 = vld [vmem:[%s4858_s9 + $0x18] sm:$0xff]   ;;  %v3983_v56 = vld [vmem:[%s4858_s9 + $0x10] sm:$0xff]  }
  0xe8   : > { %3654 = vmatpush3.bf16.msra.mxu0 %v3967_v40  ;;  %v3976_v49 = vld [vmem:[%s4858_s9 + $0xa0] sm:$0xff]   ;;  %v3980_v53 = vld [vmem:[%s4858_s9 + $0x98] sm:$0xff]   ;;  %v3984_v57 = vld [vmem:[%s4858_s9 + $0x90] sm:$0xff]  }
  0xe9   : > { %3682 = vmatpush3.bf16.msra.mxu1 %v3968_v41  ;;  %3655 = vmatprep.subr.bf16.mxu0 %v3969_v42  ;;  %v3985_v58 = vld [vmem:[%s4858_s9 + $0x48] sm:$0xff]   ;;  %v3989_v62 = vld [vmem:[%s4858_s9 + $0x40] sm:$0xff]   ;;  %v3999_v5 = vld [vmem:[%s4858_s9 + $0x178] sm:$0xff]  }
  0xea   : > { %3683 = vmatprep.subr.bf16.mxu1 %v3970_v43  ;;  %v3986_v59 = vld [vmem:[%s4858_s9 + $0xc8] sm:$0xff]   ;;  %v3990_v63 = vld [vmem:[%s4858_s9 + $0xc0] sm:$0xff]   ;;  %v4000_v6 = vld [vmem:[%s4858_s9 + $0x1f8] sm:$0xff]  }
  0xeb   : > { %v3987_v60 = vld [vmem:[%s4858_s9 + $0x8] sm:$0xff]   ;;  %v3991_v1 = vld [vmem:[%s4858_s9] sm:$0xff]   ;;  %v4001_v7 = vld [vmem:[%s4858_s9 + $0x138] sm:$0xff]  }
  0xec   : > { %3656 = vmatpush3.bf16.msra.mxu0 %v3971_v44  ;;  %v3988_v61 = vld [vmem:[%s4858_s9 + $0x88] sm:$0xff]   ;;  %v3992_v3 = vld [vmem:[%s4858_s9 + $0x80] sm:$0xff]   ;;  %v4002_v8 = vld [vmem:[%s4858_s9 + $0x1b8] sm:$0xff]  }
  0xed   : > { %3684 = vmatpush3.bf16.msra.mxu1 %v3972_v45  ;;  %3657 = vmatprep.subr.bf16.mxu0 %v3973_v46  ;;  %v4003_v9 = vld [vmem:[%s4858_s9 + $0x170] sm:$0xff]   ;;  %v4007_v13 = vld [vmem:[%s4858_s9 + $0x168] sm:$0xff]   ;;  %v4011_v17 = vld [vmem:[%s4858_s9 + $0x160] sm:$0xff]  }
  0xee   : > { %3685 = vmatprep.subr.bf16.mxu1 %v3974_v47  ;;  %v4004_v10 = vld [vmem:[%s4858_s9 + $0x1f0] sm:$0xff]   ;;  %v4008_v14 = vld [vmem:[%s4858_s9 + $0x1e8] sm:$0xff]   ;;  %v4012_v18 = vld [vmem:[%s4858_s9 + $0x1e0] sm:$0xff]  }
  0xef   : > { %v4005_v11 = vld [vmem:[%s4858_s9 + $0x130] sm:$0xff]   ;;  %v4009_v15 = vld [vmem:[%s4858_s9 + $0x128] sm:$0xff]   ;;  %v4013_v19 = vld [vmem:[%s4858_s9 + $0x120] sm:$0xff]  }
  0xf0   : > { %3658 = vmatpush3.bf16.msra.mxu0 %v3975_v48  ;;  %v4006_v12 = vld [vmem:[%s4858_s9 + $0x1b0] sm:$0xff]   ;;  %v4010_v16 = vld [vmem:[%s4858_s9 + $0x1a8] sm:$0xff]   ;;  %v4014_v20 = vld [vmem:[%s4858_s9 + $0x1a0] sm:$0xff]  }
  0xf1   : > { %3686 = vmatpush3.bf16.msra.mxu1 %v3976_v49  ;;  %3659 = vmatprep.subr.bf16.mxu0 %v3977_v50  ;;  %v4015_v21 = vld [vmem:[%s4858_s9 + $0x158] sm:$0xff]   ;;  %v4025_v28 = vld [vmem:[%s4858_s9 + $0x150] sm:$0xff]   ;;  %v4029_v32 = vld [vmem:[%s4858_s9 + $0x148] sm:$0xff]  }
  0xf2   : > { %3687 = vmatprep.subr.bf16.mxu1 %v3978_v51  ;;  %v4016_v22 = vld [vmem:[%s4858_s9 + $0x1d8] sm:$0xff]   ;;  %v4026_v29 = vld [vmem:[%s4858_s9 + $0x1d0] sm:$0xff]   ;;  %v4030_v33 = vld [vmem:[%s4858_s9 + $0x1c8] sm:$0xff]  }
  0xf3   : > { %v4017_v23 = vld [vmem:[%s4858_s9 + $0x118] sm:$0xff]   ;;  %v4027_v30 = vld [vmem:[%s4858_s9 + $0x110] sm:$0xff]   ;;  %v4031_v34 = vld [vmem:[%s4858_s9 + $0x108] sm:$0xff]  }
  0xf4   : > { %3660 = vmatpush3.bf16.msra.mxu0 %v3979_v52  ;;  %v4018_v24 = vld [vmem:[%s4858_s9 + $0x198] sm:$0xff]   ;;  %v4028_v31 = vld [vmem:[%s4858_s9 + $0x190] sm:$0xff]   ;;  %v4032_v35 = vld [vmem:[%s4858_s9 + $0x188] sm:$0xff]  }
  0xf5   : > { %3688 = vmatpush3.bf16.msra.mxu1 %v3980_v53  ;;  %3661 = vmatprep.subr.bf16.mxu0 %v3981_v54  ;;  %v4033_v36 = vld [vmem:[%s4858_s9 + $0x140] sm:$0xff]   ;;  %v4037_v40 = vld [vmem:[%s5158_s0 + $0x10] ss:$72 sps:$4 sm:$0xff]   ;;  %v4039_v41 = vld [vmem:[%s5158_s0 + $0x14] ss:$72 sps:$4 sm:$0xff]  }
  0xf6   : > { %3689 = vmatprep.subr.bf16.mxu1 %v3982_v55  ;;  %v4034_v37 = vld [vmem:[%s4858_s9 + $0x1c0] sm:$0xff]   ;;  %v4043_v44 = vld [vmem:[%s4858_s9 + $0x278] sm:$0xff]   ;;  %v4047_v48 = vld [vmem:[%s4858_s9 + $0x270] sm:$0xff]  }
  0xf7   : > { %v4035_v38 = vld [vmem:[%s4858_s9 + $0x100] sm:$0xff]   ;;  %v4044_v45 = vld [vmem:[%s4858_s9 + $0x2f8] sm:$0xff]   ;;  %v4048_v49 = vld [vmem:[%s4858_s9 + $0x2f0] sm:$0xff]  }
  0xf8   : > { %3662 = vmatpush3.bf16.msra.mxu0 %v3983_v56  ;;  %v4036_v39 = vld [vmem:[%s4858_s9 + $0x180] sm:$0xff]   ;;  %v4045_v46 = vld [vmem:[%s4858_s9 + $0x238] sm:$0xff]   ;;  %v4049_v50 = vld [vmem:[%s4858_s9 + $0x230] sm:$0xff]  }
  0xf9   : > { %3690 = vmatpush3.bf16.msra.mxu1 %v3984_v57  ;;  %3663 = vmatprep.subr.bf16.mxu0 %v3985_v58  ;;  %v4040_v42 = vld [vmem:[%s5158_s0 + $0x18] ss:$72 sps:$4 sm:$0xff]   ;;  %v4042_v43 = vld [vmem:[%s5158_s0 + $0x1c] ss:$72 sps:$4 sm:$0xff]   ;;  %v4050_v51 = vld [vmem:[%s4858_s9 + $0x2b0] sm:$0xff]  }
  0xfa   : > { %3691 = vmatprep.subr.bf16.mxu1 %v3986_v59  ;;  %v4046_v47 = vld [vmem:[%s4858_s9 + $0x2b8] sm:$0xff]   ;;  %v4051_v52 = vld [vmem:[%s5158_s0 + $0xa4] ss:$72 sps:$4 sm:$0xff]   ;;  %v4053_v53 = vld [vmem:[%s5158_s0 + $0xa0] ss:$72 sps:$4 sm:$0xff]  }
  0xfb   : > { %v4054_v54 = vld [vmem:[%s4858_s9 + $0x268] sm:$0xff]  }
  0xfc   : > { %3664 = vmatpush3.bf16.msra.mxu0 %v3987_v60  ;;  %v4055_v55 = vld [vmem:[%s4858_s9 + $0x2e8] sm:$0xff]   ;;  %v4061_v60 = vld [vmem:[%s4858_s9 + $0x260] sm:$0xff]  }
  0xfd   : > { %3692 = vmatpush3.bf16.msra.mxu1 %v3988_v61  ;;  %3665 = vmatprep.subr.bf16.mxu0 %v3989_v62  ;;  %v4056_v56 = vld [vmem:[%s5158_s0 + $0xac] ss:$72 sps:$4 sm:$0xff]   ;;  %v4060_v59 = vld [vmem:[%s5158_s0 + $0xa8] ss:$72 sps:$4 sm:$0xff]   ;;  %v4062_v61 = vld [vmem:[%s4858_s9 + $0x2e0] sm:$0xff]  }
  0xfe   : > { %3693 = vmatprep.subr.bf16.mxu1 %v3990_v63  ;;  %v4058_v57 = vld [vmem:[%s4858_s9 + $0x228] sm:$0xff]   ;;  %v4063_v62 = vld [vmem:[%s4858_s9 + $0x220] sm:$0xff]  }
  0xff   : > { %v4059_v58 = vld [vmem:[%s4858_s9 + $0x2a8] sm:$0xff]   ;;  %v4064_v63 = vld [vmem:[%s4858_s9 + $0x2a0] sm:$0xff]  }
 0x100   : > { %3666 = vmatpush3.bf16.msra.mxu0 %v3991_v1  ;;  %v4066_v1 = vld [vmem:[%s4858_s9 + $0x2d8] sm:$0xff]  }
 0x101   : > { %3694 = vmatpush3.bf16.msra.mxu1 %v3992_v3  ;;  %3707 = vmatprep.subr.bf16.mxu0 %v3999_v5  ;;  %v4068_v3 = vld [vmem:[%s4858_s9 + $0x298] sm:$0xff]   ;;  %v4070_v5 = vld [vmem:[%s4858_s9 + $0x2d0] sm:$0xff]  }
 0x102   : > { %3735 = vmatprep.subr.bf16.mxu1 %v4000_v6  ;;  %v4071_v6 = vld [vmem:[%s4858_s9 + $0x210] sm:$0xff]  }
 0x103   : > { %2853 = vmatmul.mubr.bf16.vlgmr.msra.gmra.mxu0 %v3993_v0  ;;  %v4065_v0 = vld [vmem:[%s4858_s9 + $0x258] sm:$0xff]  }
 0x104   : > { %2902 = vmatmul.mubr.bf16.vlgmr.msra.gmra.mxu1 %v3996_v2  ;;  %3708 = vmatpush3.bf16.msra.mxu0 %v4001_v7  ;;  %v4067_v2 = vld [vmem:[%s4858_s9 + $0x218] sm:$0xff]   ;;  %v4072_v7 = vld [vmem:[%s4858_s9 + $0x290] sm:$0xff]  }
 0x105   : > { %3736 = vmatpush3.bf16.msra.mxu1 %v4002_v8  ;;  %2860 = vmatprep.mubr.bf16.mxu0 %v4019_v4  ;;  %v4069_v4 = vld [vmem:[%s4858_s9 + $0x250] sm:$0xff]   ;;  %v4073_v8 = vld [vmem:[%s4858_s9 + $0x248] sm:$0xff]  }
 0x106   : > { %3709 = vmatprep.subr.bf16.mxu0 %v4003_v9  ;;  %3737 = vmatprep.subr.bf16.mxu1 %v4004_v10  ;;  %v4074_v9 = vld [vmem:[%s4858_s9 + $0x2c8] sm:$0xff]  }
 0x107   : > { %2909 = vmatprep.mubr.bf16.mxu1 %v4021_v25  ;;  %v4075_v10 = vld [vmem:[%s4858_s9 + $0x208] sm:$0xff]   ;;  %v4092_v25 = vld [vmem:[%s4858_s9 + $0x3f0] sm:$0xff]  }
 0x108   : > { %3710 = vmatpush3.bf16.msra.mxu0 %v4005_v11  ;;  %v4076_v11 = vld [vmem:[%s4858_s9 + $0x288] sm:$0xff]  }
 0x109   : > { %3738 = vmatpush3.bf16.msra.mxu1 %v4006_v12  ;;  %3711 = vmatprep.subr.bf16.mxu0 %v4007_v13  ;;  %v4077_v12 = vld [vmem:[%s4858_s9 + $0x240] sm:$0xff]  }
 0x10a   : > { %3739 = vmatprep.subr.bf16.mxu1 %v4008_v14  ;;  %v4078_v13 = vld [vmem:[%s4858_s9 + $0x2c0] sm:$0xff]  }
 0x10b   : > { %2861 = vmatmul.mubr.bf16.gmra.mxu0 %v4023_v26  ;;  %v4079_v14 = vld [vmem:[%s4858_s9 + $0x200] sm:$0xff]   ;;  %v4093_v26 = vld [vmem:[%s4858_s9 + $0x330] sm:$0xff]  }
 0x10c   : > { %3712 = vmatpush3.bf16.msra.mxu0 %v4009_v15  ;;  %2910 = vmatmul.mubr.bf16.gmra.mxu1 %v4024_v27  ;;  %v4080_v15 = vld [vmem:[%s4858_s9 + $0x280] sm:$0xff]   ;;  %v4094_v27 = vld [vmem:[%s4858_s9 + $0x3b0] sm:$0xff]  }
 0x10d   : > { %3740 = vmatpush3.bf16.msra.mxu1 %v4010_v16  ;;  %3713 = vmatprep.subr.bf16.mxu0 %v4011_v17  ;;  %v4081_v16 = vld [vmem:[%s5158_s0 + $0x20] ss:$72 sps:$4 sm:$0xff]   ;;  %v4083_v17 = vld [vmem:[%s5158_s0 + $0x24] ss:$72 sps:$4 sm:$0xff]  }
 0x10e   : > { %3741 = vmatprep.subr.bf16.mxu1 %v4012_v18  ;;  %2950 = vmatprep.mubr.bf16.mxu0 %v4039_v41  ;;  %v4084_v18 = vld [vmem:[%s5158_s0 + $0x28] ss:$72 sps:$4 sm:$0xff]   ;;  %v4110_v41 = vld [vmem:[%s4858_s9 + $0x3d8] sm:$0xff]  }
 0x10f   : > { %2999 = vmatprep.mubr.bf16.mxu1 %v4042_v43  ;;  %v4112_v43 = vld [vmem:[%s4858_s9 + $0x398] sm:$0xff]  }
 0x110   : > { %3714 = vmatpush3.bf16.msra.mxu0 %v4013_v19  ;;  %v4086_v19 = vld [vmem:[%s5158_s0 + $0x2c] ss:$72 sps:$4 sm:$0xff]  }
 0x111   : > { %3742 = vmatpush3.bf16.msra.mxu1 %v4014_v20  ;;  %3715 = vmatprep.subr.bf16.mxu0 %v4015_v21  ;;  %v4087_v20 = vld [vmem:[%s4858_s9 + $0x378] sm:$0xff]  }
 0x112   : > { %3743 = vmatprep.subr.bf16.mxu1 %v4016_v22  ;;  %v4088_v21 = vld [vmem:[%s4858_s9 + $0x3f8] sm:$0xff]  }
 0x113   : > { %v4089_v22 = vld [vmem:[%s4858_s9 + $0x338] sm:$0xff]  }
 0x114   : > { %3716 = vmatpush3.bf16.msra.mxu0 %v4017_v23  ;;  %v4090_v23 = vld [vmem:[%s4858_s9 + $0x3b8] sm:$0xff]  }
 0x115   : > { %3744 = vmatpush3.bf16.msra.mxu1 %v4018_v24  ;;  %3717 = vmatprep.subr.bf16.mxu0 %v4025_v28  ;;  %v4091_v24 = vld [vmem:[%s4858_s9 + $0x370] sm:$0xff]  }
 0x116   : > { %3745 = vmatprep.subr.bf16.mxu1 %v4026_v29  ;;  %v4095_v28 = vld [vmem:[%s5158_s0 + $0xb4] ss:$72 sps:$4 sm:$0xff]   ;;  %v4097_v29 = vld [vmem:[%s5158_s0 + $0xb0] ss:$72 sps:$4 sm:$0xff]  }
 0x118   : > { %3718 = vmatpush3.bf16.msra.mxu0 %v4027_v30  ;;  %v4098_v30 = vld [vmem:[%s4858_s9 + $0x368] sm:$0xff]  }
 0x119   : > { %3746 = vmatpush3.bf16.msra.mxu1 %v4028_v31  ;;  %3719 = vmatprep.subr.bf16.mxu0 %v4029_v32  ;;  %v4099_v31 = vld [vmem:[%s4858_s9 + $0x3e8] sm:$0xff]   ;;  %v4100_v32 = vld [vmem:[%s5158_s0 + $0xbc] ss:$72 sps:$4 sm:$0xff]  }
 0x11a   : > { %3747 = vmatprep.subr.bf16.mxu1 %v4030_v33  ;;  %v4102_v33 = vld [vmem:[%s4858_s9 + $0x328] sm:$0xff]  }
 0x11c   : > { %3720 = vmatpush3.bf16.msra.mxu0 %v4031_v34  ;;  %v4103_v34 = vld [vmem:[%s4858_s9 + $0x3a8] sm:$0xff]  }
 0x11d   : > { %3748 = vmatpush3.bf16.msra.mxu1 %v4032_v35  ;;  %3721 = vmatprep.subr.bf16.mxu0 %v4033_v36  ;;  %v4104_v35 = vld [vmem:[%s5158_s0 + $0xb8] ss:$72 sps:$4 sm:$0xff]  }
 0x11e   : > { %3749 = vmatprep.subr.bf16.mxu1 %v4034_v37  ;;  %v4105_v36 = vld [vmem:[%s4858_s9 + $0x360] sm:$0xff]  }
 0x11f   : > { %v4106_v37 = vld [vmem:[%s4858_s9 + $0x3e0] sm:$0xff]  }
 0x120   : > { %3722 = vmatpush3.bf16.msra.mxu0 %v4035_v38  ;;  %v4107_v38 = vld [vmem:[%s4858_s9 + $0x320] sm:$0xff]  }
 0x121   : > { %3750 = vmatpush3.bf16.msra.mxu1 %v4036_v39  ;;  %3763 = vmatprep.subr.bf16.mxu0 %v4043_v44  ;;  %v4108_v39 = vld [vmem:[%s4858_s9 + $0x3a0] sm:$0xff]   ;;  %v4113_v44 = vld [vmem:[%s4858_s9 + $0x350] sm:$0xff]  }
 0x122   : > { %3791 = vmatprep.subr.bf16.mxu1 %v4044_v45  ;;  %v4114_v45 = vld [vmem:[%s4858_s9 + $0x3d0] sm:$0xff]  }
 0x123   : > { %2951 = vmatmul.mubr.bf16.vlgmr.msra.gmra.mxu0 %v4037_v40  ;;  %v4109_v40 = vld [vmem:[%s4858_s9 + $0x358] sm:$0xff]  }
 0x124   : > { %3000 = vmatmul.mubr.bf16.vlgmr.msra.gmra.mxu1 %v4040_v42  ;;  %3764 = vmatpush3.bf16.msra.mxu0 %v4045_v46  ;;  %v4111_v42 = vld [vmem:[%s4858_s9 + $0x318] sm:$0xff]   ;;  %v4115_v46 = vld [vmem:[%s4858_s9 + $0x310] sm:$0xff]  }
 0x125   : > { %3792 = vmatpush3.bf16.msra.mxu1 %v4046_v47  ;;  %3765 = vmatprep.subr.bf16.mxu0 %v4047_v48  ;;  %v4116_v47 = vld [vmem:[%s4858_s9 + $0x390] sm:$0xff]   ;;  %v4117_v48 = vld [vmem:[%s4858_s9 + $0x348] sm:$0xff]  }
 0x126   : > { %3793 = vmatprep.subr.bf16.mxu1 %v4048_v49  ;;  %2958 = vmatprep.mubr.bf16.mxu0 %v4051_v52  ;;  %v4118_v49 = vld [vmem:[%s4858_s9 + $0x3c8] sm:$0xff]   ;;  %v4121_v52 = vld [vmem:[%s4858_s9 + $0x340] sm:$0xff]  }
 0x127   : > { %3007 = vmatprep.mubr.bf16.mxu1 %v4056_v56  ;;  %v4125_v56 = vld [vmem:[%s5158_s0 + $0x30] ss:$72 sps:$4 sm:$0xff]  }
 0x128   : > { %3766 = vmatpush3.bf16.msra.mxu0 %v4049_v50  ;;  %v4119_v50 = vld [vmem:[%s4858_s9 + $0x308] sm:$0xff]  }
 0x129   : > { %3794 = vmatpush3.bf16.msra.mxu1 %v4050_v51  ;;  %3767 = vmatprep.subr.bf16.mxu0 %v4054_v54  ;;  %v4120_v51 = vld [vmem:[%s4858_s9 + $0x388] sm:$0xff]   ;;  %v4123_v54 = vld [vmem:[%s4858_s9 + $0x300] sm:$0xff]  }
 0x12a   : > { %3795 = vmatprep.subr.bf16.mxu1 %v4055_v55  ;;  %v4124_v55 = vld [vmem:[%s4858_s9 + $0x380] sm:$0xff]  }
 0x12b   : > { %2959 = vmatmul.mubr.bf16.gmra.mxu0 %v4053_v53  ;;  %v4122_v53 = vld [vmem:[%s4858_s9 + $0x3c0] sm:$0xff]  }
 0x12c   : > { %3768 = vmatpush3.bf16.msra.mxu0 %v4058_v57  ;;  %3008 = vmatmul.mubr.bf16.gmra.mxu1 %v4060_v59  ;;  %v4127_v57 = vld [vmem:[%s5158_s0 + $0x34] ss:$72 sps:$4 sm:$0xff]  }
 0x12d   : > { %3796 = vmatpush3.bf16.msra.mxu1 %v4059_v58  ;;  %3769 = vmatprep.subr.bf16.mxu0 %v4061_v60  ;;  %v4128_v58 = vld [vmem:[%s5158_s0 + $0x38] ss:$72 sps:$4 sm:$0xff]   ;;  %v4130_v59 = vld [vmem:[%s5158_s0 + $0x3c] ss:$72 sps:$4 sm:$0xff]  }
 0x12e   : > { %3797 = vmatprep.subr.bf16.mxu1 %v4062_v61  ;;  %3048 = vmatprep.mubr.bf16.mxu0 %v4083_v17  ;;  %v4131_v60 = vld [vmem:[%s4858_s9 + $0x478] sm:$0xff]   ;;  %v4152_v17 = vld [vmem:[%s4858_s9 + $0x400] sm:$0xff]  }
 0x12f   : > { %3097 = vmatprep.mubr.bf16.mxu1 %v4086_v19  ;;  %v4132_v61 = vld [vmem:[%s4858_s9 + $0x438] sm:$0xff]  }
 0x130   : > { %3770 = vmatpush3.bf16.msra.mxu0 %v4063_v62  ;;  %v4133_v62 = vld [vmem:[%s4858_s9 + $0x470] sm:$0xff]  }
 0x131   : > { %3798 = vmatpush3.bf16.msra.mxu1 %v4064_v63  ;;  %3771 = vmatprep.subr.bf16.mxu0 %v4065_v0  ;;  %v4134_v63 = vld [vmem:[%s4858_s9 + $0x430] sm:$0xff]   ;;  %v4135_v0 = vld [vmem:[%s5158_s0 + $0xc4] ss:$72 sps:$4 sm:$0xff]  }
 0x132   : > { %3799 = vmatprep.subr.bf16.mxu1 %v4066_v1  ;;  %v4137_v1 = vld [vmem:[%s5158_s0 + $0xc0] ss:$72 sps:$4 sm:$0xff]   ;;  %v4156_v19 = vld [vmem:[%s5158_s0 + $0xd0] ss:$72 sps:$4 sm:$0xff]  }
 0x134   : > { %3772 = vmatpush3.bf16.msra.mxu0 %v4067_v2  ;;  %v4138_v2 = vld [vmem:[%s4858_s9 + $0x468] sm:$0xff]  }
 0x135   : > { %3800 = vmatpush3.bf16.msra.mxu1 %v4068_v3  ;;  %3773 = vmatprep.subr.bf16.mxu0 %v4069_v4  ;;  %v4139_v3 = vld [vmem:[%s5158_s0 + $0xcc] ss:$72 sps:$4 sm:$0xff]  }
 0x136   : > { %3801 = vmatprep.subr.bf16.mxu1 %v4070_v5  ;;  %v4141_v4 = vld [vmem:[%s4858_s9 + $0x428] sm:$0xff]  }
 0x137   : > { %v4142_v5 = vld [vmem:[%s5158_s0 + $0xc8] ss:$72 sps:$4 sm:$0xff]  }
 0x138   : > { %3774 = vmatpush3.bf16.msra.mxu0 %v4071_v6  ;;  %v4143_v6 = vld [vmem:[%s4858_s9 + $0x460] sm:$0xff]  }
 0x139   : > { %3802 = vmatpush3.bf16.msra.mxu1 %v4072_v7  ;;  %3775 = vmatprep.subr.bf16.mxu0 %v4073_v8  ;;  %v4144_v7 = vld [vmem:[%s4858_s9 + $0x420] sm:$0xff]   ;;  %v4145_v8 = vld [vmem:[%s4858_s9 + $0x458] sm:$0xff]  }
 0x13a   : > { %3803 = vmatprep.subr.bf16.mxu1 %v4074_v9  ;;  %v4146_v9 = vld [vmem:[%s4858_s9 + $0x418] sm:$0xff]  }
 0x13c   : > { %3776 = vmatpush3.bf16.msra.mxu0 %v4075_v10  ;;  %v4147_v10 = vld [vmem:[%s4858_s9 + $0x450] sm:$0xff]  }
 0x13d   : > { %3804 = vmatpush3.bf16.msra.mxu1 %v4076_v11  ;;  %3777 = vmatprep.subr.bf16.mxu0 %v4077_v12  ;;  %v4148_v11 = vld [vmem:[%s4858_s9 + $0x410] sm:$0xff]   ;;  %v4155_v12 = vld [vmem:[%s5158_s0 + $0x44] ss:$72 sps:$4 sm:$0xff]  }
 0x13e   : > { %3805 = vmatprep.subr.bf16.mxu1 %v4078_v13  ;;  %v4149_v13 = vld [vmem:[%s4858_s9 + $0x448] sm:$0xff]  }
 0x140   : > { %3778 = vmatpush3.bf16.msra.mxu0 %v4079_v14  ;;  %v4158_v14 = vld [vmem:[%s5158_s0 + $0xd4] ss:$72 sps:$4 sm:$0xff]  }
 0x141   : > { %3806 = vmatpush3.bf16.msra.mxu1 %v4080_v15  ;;  %3819 = vmatprep.subr.bf16.mxu0 %v4087_v20  ;;  %v4150_v15 = vld [vmem:[%s4858_s9 + $0x408] sm:$0xff]  }
 0x142   : > { %3847 = vmatprep.subr.bf16.mxu1 %v4088_v21 }
 0x143   : > { %3049 = vmatmul.mubr.bf16.vlgmr.msra.gmra.mxu0 %v4081_v16  ;;  %v4151_v16 = vld [vmem:[%s4858_s9 + $0x440] sm:$0xff]   ;;  %s1436_s9 = scalar_select %p1435_p11, %s4189_s14, 3 }
 0x144   : > { %3098 = vmatmul.mubr.bf16.vlgmr.msra.gmra.mxu1 %v4084_v18  ;;  %3820 = vmatpush3.bf16.msra.mxu0 %v4089_v22  ;;  %v4153_v18 = vld [vmem:[%s5158_s0 + $0x40] ss:$72 sps:$4 sm:$0xff]  }
 0x145   : > { %3848 = vmatpush3.bf16.msra.mxu1 %v4090_v23  ;;  %3821 = vmatprep.subr.bf16.mxu0 %v4091_v24  ;;  %s1437_s18 = scalar_lea.vmem %s5160_s2, %s1436_s9 }
 0x146   : > { %3849 = vmatprep.subr.bf16.mxu1 %v4092_v25  ;;  %3056 = vmatprep.mubr.bf16.mxu0 %v4095_v28 }
 0x147   : > { %3105 = vmatprep.mubr.bf16.mxu1 %v4100_v32 }
 0x148   : > { %3822 = vmatpush3.bf16.msra.mxu0 %v4093_v26 }
 0x149   : > { %3850 = vmatpush3.bf16.msra.mxu1 %v4094_v27  ;;  %3823 = vmatprep.subr.bf16.mxu0 %v4098_v30 }
 0x14a   : > { %3851 = vmatprep.subr.bf16.mxu1 %v4099_v31 }
 0x14b   : > { %3057 = vmatmul.mubr.bf16.gmra.mxu0 %v4097_v29 }
 0x14c   : > { %3824 = vmatpush3.bf16.msra.mxu0 %v4102_v33  ;;  %3106 = vmatmul.mubr.bf16.gmra.mxu1 %v4104_v35 }
 0x14d   : > { %3852 = vmatpush3.bf16.msra.mxu1 %v4103_v34  ;;  %3825 = vmatprep.subr.bf16.mxu0 %v4105_v36 }
 0x14e   : > { %3853 = vmatprep.subr.bf16.mxu1 %v4106_v37  ;;  %3146 = vmatprep.mubr.bf16.mxu0 %v4127_v57 }
 0x14f   : > { %3195 = vmatprep.mubr.bf16.mxu1 %v4130_v59 }
 0x150   : > { %3826 = vmatpush3.bf16.msra.mxu0 %v4107_v38 }
 0x151   : > { %3854 = vmatpush3.bf16.msra.mxu1 %v4108_v39  ;;  %3827 = vmatprep.subr.bf16.mxu0 %v4109_v40 }
 0x152   : > { %3855 = vmatprep.subr.bf16.mxu1 %v4110_v41 }
 0x154   : > { %3828 = vmatpush3.bf16.msra.mxu0 %v4111_v42 }
 0x155   : > { %3856 = vmatpush3.bf16.msra.mxu1 %v4112_v43  ;;  %3829 = vmatprep.subr.bf16.mxu0 %v4113_v44 }
 0x156   : > { %3857 = vmatprep.subr.bf16.mxu1 %v4114_v45 }
 0x158   : > { %3830 = vmatpush3.bf16.msra.mxu0 %v4115_v46 }
 0x159   : > { %3858 = vmatpush3.bf16.msra.mxu1 %v4116_v47  ;;  %3831 = vmatprep.subr.bf16.mxu0 %v4117_v48 }
 0x15a   : > { %3859 = vmatprep.subr.bf16.mxu1 %v4118_v49 }
 0x15c   : > { %3832 = vmatpush3.bf16.msra.mxu0 %v4119_v50 }
 0x15d   : > { %3860 = vmatpush3.bf16.msra.mxu1 %v4120_v51  ;;  %3833 = vmatprep.subr.bf16.mxu0 %v4121_v52 }
 0x15e   : > { %3861 = vmatprep.subr.bf16.mxu1 %v4122_v53 }
 0x160   : > { %3834 = vmatpush3.bf16.msra.mxu0 %v4123_v54 }
 0x161   : > { %3862 = vmatpush3.bf16.msra.mxu1 %v4124_v55  ;;  %3875 = vmatprep.subr.bf16.mxu0 %v4131_v60 }
 0x162   : > { %3903 = vmatprep.subr.bf16.mxu1 %v4131_v60 }
 0x163   : > { %3147 = vmatmul.mubr.bf16.vlgmr.msra.gmra.mxu0 %v4125_v56 }
 0x164   : > { %3196 = vmatmul.mubr.bf16.vlgmr.msra.gmra.mxu1 %v4128_v58  ;;  %3876 = vmatpush3.bf16.msra.mxu0 %v4132_v61 }
 0x165   : > { %3911 = vmatpush3.bf16.msra.mxu1 %v4132_v61  ;;  %3877 = vmatprep.subr.bf16.mxu0 %v4133_v62 }
 0x166   : > { %3904 = vmatprep.subr.bf16.mxu1 %v4133_v62  ;;  %3154 = vmatprep.mubr.bf16.mxu0 %v4135_v0 }
 0x167   : > { %3203 = vmatprep.mubr.bf16.mxu1 %v4139_v3 }
 0x168   : > { %3878 = vmatpush3.bf16.msra.mxu0 %v4134_v63 }
 0x169   : > { %3912 = vmatpush3.bf16.msra.mxu1 %v4134_v63  ;;  %3879 = vmatprep.subr.bf16.mxu0 %v4138_v2 }
 0x16a   : > { %3905 = vmatprep.subr.bf16.mxu1 %v4138_v2 }
 0x16b   : > { %3155 = vmatmul.mubr.bf16.gmra.mxu0 %v4137_v1 }
 0x16c   : > { %3880 = vmatpush3.bf16.msra.mxu0 %v4141_v4  ;;  %3204 = vmatmul.mubr.bf16.gmra.mxu1 %v4142_v5 }
 0x16d   : > { %3913 = vmatpush3.bf16.msra.mxu1 %v4141_v4  ;;  %3881 = vmatprep.subr.bf16.mxu0 %v4143_v6 }
 0x16e   : > { %3906 = vmatprep.subr.bf16.mxu1 %v4143_v6  ;;  %3244 = vmatprep.mubr.bf16.mxu0 %v4155_v12 }
 0x16f   : > { %3252 = vmatprep.mubr.bf16.mxu1 %v4158_v14 }
 0x170   : > { %3882 = vmatpush3.bf16.msra.mxu0 %v4144_v7 }
 0x171   : > { %3914 = vmatpush3.bf16.msra.mxu1 %v4144_v7  ;;  %3883 = vmatprep.subr.bf16.mxu0 %v4145_v8 }
 0x172   : > { %3907 = vmatprep.subr.bf16.mxu1 %v4145_v8 }
 0x174   : > { %3884 = vmatpush3.bf16.msra.mxu0 %v4146_v9 }
 0x175   : > { %3915 = vmatpush3.bf16.msra.mxu1 %v4146_v9  ;;  %3885 = vmatprep.subr.bf16.mxu0 %v4147_v10 }
 0x176   : > { %3908 = vmatprep.subr.bf16.mxu1 %v4147_v10 }
 0x178   : > { %3886 = vmatpush3.bf16.msra.mxu0 %v4148_v11 }
 0x179   : > { %3916 = vmatpush3.bf16.msra.mxu1 %v4148_v11  ;;  %3887 = vmatprep.subr.bf16.mxu0 %v4149_v13 }
 0x17a   : > { %3909 = vmatprep.subr.bf16.mxu1 %v4149_v13 }
 0x17c   : > { %3888 = vmatpush3.bf16.msra.mxu0 %v4150_v15 }
 0x17d   : > { %3917 = vmatpush3.bf16.msra.mxu1 %v4150_v15  ;;  %3889 = vmatprep.subr.bf16.mxu0 %v4151_v16 }
 0x17e   : > { %3910 = vmatprep.subr.bf16.mxu1 %v4151_v16 }
 0x180   : > { %3890 = vmatpush3.bf16.msra.mxu0 %v4152_v17 }
 0x181   : > { %3918 = vmatpush3.bf16.msra.mxu1 %v4152_v17 }
 0x183   : > { %3245 = vmatmul.mubr.bf16.vlgmr.msra.gmra.mxu0 %v4153_v18 }
 0x184   : > { %3253 = vmatmul.mubr.bf16.vlgmr.msra.gmra.mxu1 %v4156_v19 }
 0x1c3   : > { %v3667_v20 = vpop.f32.mrf.mxu0 }
 0x1c4   : > { %v3695_v22 = vpop.f32.mrf.mxu1 }
 0x1c5   : > { %v3668_v21 = vpop.f32.mrf.mxu0 }
 0x1c6   : > { %v3696_v24 = vpop.f32.mrf.mxu1  ;;  %v3669_v9 = vadd.f32 %v3668_v21, %v3667_v20 }
 0x1c7   : > { %v3670_v23 = vpop.f32.mrf.mxu0  ;;  %v3697_v10 = vadd.f32 %v3696_v24, %v3695_v22 }
 0x1c8   : > { %v3698_v27 = vpop.f32.mrf.mxu1 }
 0x1c9   : > { %v3671_v25 = vpop.f32.mrf.mxu0  ;;  %v2904_v17 = vadd.f32 %v3697_v10, %v3669_v9 }
 0x1ca   : > { %v3699_v29 = vpop.f32.mrf.mxu1  ;;  %v3672_v18 = vadd.f32 %v3671_v25, %v3670_v23 }
 0x1cb   : > { %v3673_v26 = vpop.f32.mrf.mxu0  ;;  %v3700_v19 = vadd.f32 %v3699_v29, %v3698_v27 }
 0x1cc   : > { %v3701_v30 = vpop.f32.mrf.mxu1 }
 0x1cd   : > { %v3674_v28 = vpop.f32.mrf.mxu0 }
 0x1ce   : > { %v3702_v32 = vpop.f32.mrf.mxu1  ;;  %v3675_v13 = vadd.f32 %v3674_v28, %v3673_v26  ;;  %v2907_v26 = vadd.f32 %v3700_v19, %v3672_v18  ;;  %v3646_v18 = vld [vmem:[%s1437_s18] ss:$0 sm:$0xff] }
 0x1cf   : > { %v3676_v31 = vpop.f32.mrf.mxu0  ;;  %v3703_v14 = vadd.f32 %v3702_v32, %v3701_v30 }
 0x1d0   : > { %v3704_v35 = vpop.f32.mrf.mxu1 }
 0x1d1   : > { %v3677_v33 = vpop.f32.mrf.mxu0 }
 0x1d2   : > { %v3705_v37 = vpop.f32.mrf.mxu1 }
 0x1e3   : > { %v3723_v34 = vpop.f32.mrf.mxu0 }
 0x1e4   : > { %v3751_v38 = vpop.f32.mrf.mxu1 }
 0x1e5   : > { %v3724_v36 = vpop.f32.mrf.mxu0 }
 0x1e6   : > { %v3752_v40 = vpop.f32.mrf.mxu1  ;;  %v3725_v15 = vadd.f32 %v3724_v36, %v3723_v34 }
 0x1e7   : > { %v3726_v39 = vpop.f32.mrf.mxu0  ;;  %v3753_v28 = vadd.f32 %v3752_v40, %v3751_v38 }
 0x1e8   : > { %v5106_v42 = vpop.f32.mrf.mxu1 }
 0x1e9   : > { %v3727_v41 = vpop.f32.mrf.mxu0  ;;  %5163 = vst [vmem:[#allocation5_spill] sm:$0xff] %v5106_v42  ;;  %v3706_v42 = vadd.f32 %v3705_v37, %v3704_v35 }
 0x1ea   : > { %v5108_v44 = vpop.f32.mrf.mxu1  ;;  %v3728_v20 = vadd.f32 %v3727_v41, %v3726_v39 }
 0x1eb   : > { %v3729_v43 = vpop.f32.mrf.mxu0  ;;  %5164 = vst [vmem:[#allocation6_spill] sm:$0xff] %v5108_v44  ;;  %v3678_v44 = vadd.f32 %v3677_v33, %v3676_v31 }
 0x1ec   : > { %v3757_v46 = vpop.f32.mrf.mxu1  ;;  %v2956_v27 = vadd.f32 %v3728_v20, %v2907_v26 }
 0x1ed   : > { %v3730_v45 = vpop.f32.mrf.mxu0  ;;  %v2915_v34 = vadd.f32 %v3706_v42, %v3678_v44 }
 0x1ee   : > { %v3758_v48 = vpop.f32.mrf.mxu1  ;;  %v3731_v16 = vadd.f32 %v3730_v45, %v3729_v43 }
 0x1ef   : > { %v3732_v47 = vpop.f32.mrf.mxu0  ;;  %v3759_v24 = vadd.f32 %v3758_v48, %v3757_v46 }
 0x1f0   : > { %v3760_v50 = vpop.f32.mrf.mxu1  ;;  %v5170_v33 = vld [vmem:[#allocation5_spill] sm:$0xff] }
 0x1f1   : > { %v3733_v49 = vpop.f32.mrf.mxu0 }
 0x1f2   : > { %v3761_v52 = vpop.f32.mrf.mxu1  ;;  %v5171_v35 = vld [vmem:[#allocation6_spill] sm:$0xff] }
 0x1f3   : > { %v3762_v31 = vadd.f32 %v3761_v52, %v3760_v50  ;;  %v3756_v37 = vadd.f32 %v5171_v35, %v5170_v33 }
 0x203   : > { %v3779_v51 = vpop.f32.mrf.mxu0 }
 0x204   : > { %v3807_v54 = vpop.f32.mrf.mxu1 }
 0x205   : > { %v3780_v53 = vpop.f32.mrf.mxu0 }
 0x206   : > { %v3808_v56 = vpop.f32.mrf.mxu1  ;;  %v3781_v30 = vadd.f32 %v3780_v53, %v3779_v51 }
 0x207   : > { %v3782_v55 = vpop.f32.mrf.mxu0  ;;  %v3809_v42 = vadd.f32 %v3808_v56, %v3807_v54 }
 0x208   : > { %v5110_v58 = vpop.f32.mrf.mxu1 }
 0x209   : > { %v3783_v57 = vpop.f32.mrf.mxu0  ;;  %5165 = vst [vmem:[#allocation7_spill] sm:$0xff] %v5110_v58 }
 0x20a   : > { %v5112_v60 = vpop.f32.mrf.mxu1  ;;  %v3784_v41 = vadd.f32 %v3783_v57, %v3782_v55 }
 0x20b   : > { %v3785_v59 = vpop.f32.mrf.mxu0  ;;  %5166 = vst [vmem:[#allocation8_spill] sm:$0xff] %v5112_v60 }
 0x20c   : > { %v3813_v62 = vpop.f32.mrf.mxu1 }
 0x20d   : > { %v3786_v61 = vpop.f32.mrf.mxu0 }
 0x20e   : > { %v3814_v0 = vpop.f32.mrf.mxu1  ;;  %v3787_v23 = vadd.f32 %v3786_v61, %v3785_v59 }
 0x20f   : > { %v3788_v63 = vpop.f32.mrf.mxu0  ;;  %v3815_v38 = vadd.f32 %v3814_v0, %v3813_v62 }
 0x210   : > { %v3816_v2 = vpop.f32.mrf.mxu1 }
 0x211   : > { %v3789_v1 = vpop.f32.mrf.mxu0 }
 0x212   : > { %v3817_v4 = vpop.f32.mrf.mxu1  ;;  %v3790_v40 = vadd.f32 %v3789_v1, %v3788_v63  ;;  %v5173_v55 = vld [vmem:[#allocation8_spill] sm:$0xff] }
 0x223   : > { %v3835_v3 = vpop.f32.mrf.mxu0 }
 0x224   : > { %v5114_v5 = vpop.f32.mrf.mxu1 }
 0x225   : > { %5167 = vst [vmem:[#allocation9_spill] sm:$0xff] %v5114_v5  ;;  %v3836_v6 = vpop.f32.mrf.mxu0  ;;  %v2912_v5 = vadd.f32 %v3703_v14, %v3675_v13 }
 0x226   : > { %v5116_v7 = vpop.f32.mrf.mxu1  ;;  %v3837_v44 = vadd.f32 %v3836_v6, %v3835_v3 }
 0x227   : > { %5168 = vst [vmem:[#allocation10_spill] sm:$0xff] %v5116_v7  ;;  %v3838_v8 = vpop.f32.mrf.mxu0  ;;  %v2953_v7 = vadd.f32 %v3725_v15, %v2904_v17  ;;  %v2961_v22 = vadd.f32 %v3731_v16, %v2912_v5  ;;  %v3818_v5 = vadd.f32 %v3817_v4, %v3816_v2 }
 0x228   : > { %v5118_v11 = vpop.f32.mrf.mxu1 }
 0x229   : > { %5169 = vst [vmem:[#allocation11_spill] sm:$0xff] %v5118_v11  ;;  %v3839_v12 = vpop.f32.mrf.mxu0  ;;  %v3734_v11 = vadd.f32 %v3733_v49, %v3732_v47  ;;  %v3002_v25 = vadd.f32 %v3753_v28, %v2953_v7  ;;  %v3010_v36 = vadd.f32 %v3759_v24, %v2961_v22  ;;  %v3005_v47 = vadd.f32 %v3756_v37, %v2956_v27  ;;  %v5172_v7 = vld [vmem:[#allocation7_spill] sm:$0xff] }
 0x22a   : > { %v5120_v60 = vpop.f32.mrf.mxu1  ;;  %v3812_v57 = vadd.f32 %v5173_v55, %v5172_v7  ;;  %v3840_v10 = vadd.f32 %v3839_v12, %v3838_v8 }
 0x22b   : > { %v3841_v58 = vpop.f32.mrf.mxu0  ;;  %v2964_v43 = vadd.f32 %v3734_v11, %v2915_v34  ;;  %v3051_v39 = vadd.f32 %v3781_v30, %v3002_v25  ;;  %v3059_v46 = vadd.f32 %v3787_v23, %v3010_v36  ;;  %v3054_v59 = vadd.f32 %v3784_v41, %v3005_v47 }
 0x22c   : > { %v3869_v21 = vpop.f32.mrf.mxu1  ;;  %v5174_v3 = vld [vmem:[#allocation9_spill] sm:$0xff] }
 0x22d   : > { %v3842_v32 = vpop.f32.mrf.mxu0  ;;  %v3013_v49 = vadd.f32 %v3762_v31, %v2964_v43  ;;  %v3100_v53 = vadd.f32 %v3809_v42, %v3051_v39  ;;  %v3108_v52 = vadd.f32 %v3815_v38, %v3059_v46  ;;  %v3103_v1 = vadd.f32 %v3812_v57, %v3054_v59 }
 0x22e   : > { %v3870_v29 = vpop.f32.mrf.mxu1  ;;  %v3843_v51 = vadd.f32 %v3842_v32, %v3841_v58  ;;  %v5175_v58 = vld [vmem:[#allocation10_spill] sm:$0xff] }
 0x22f   : > { %v3844_v45 = vpop.f32.mrf.mxu0  ;;  %v3062_v61 = vadd.f32 %v3790_v40, %v3013_v49  ;;  %v3149_v9 = vadd.f32 %v3837_v44, %v3100_v53  ;;  %v3871_v0 = vadd.f32 %v3870_v29, %v3869_v21  ;;  %v3865_v6 = vadd.f32 %v5175_v58, %v5174_v3 }
 0x230   : > { %v3872_v48 = vpop.f32.mrf.mxu1  ;;  %v3157_v63 = vadd.f32 %v3843_v51, %v3108_v52  ;;  %v3152_v14 = vadd.f32 %v3840_v10, %v3103_v1  ;;  %v5176_v21 = vld [vmem:[#allocation11_spill] sm:$0xff] }
 0x231   : > { %v3845_v50 = vpop.f32.mrf.mxu0  ;;  %v3111_v2 = vadd.f32 %v3818_v5, %v3062_v61  ;;  %v3198_v13 = vadd.f32 %v3865_v6, %v3149_v9  ;;  %v3868_v22 = vadd.f32 %v5120_v60, %v5176_v21 }
 0x232   : > { %v3873_v62 = vpop.f32.mrf.mxu1  ;;  %v3846_v54 = vadd.f32 %v3845_v50, %v3844_v45  ;;  %v3206_v15 = vadd.f32 %v3871_v0, %v3157_v63 }
 0x233   : > { %v3874_v17 = vadd.f32 %v3873_v62, %v3872_v48  ;;  %v3201_v32 = vadd.f32 %v3868_v22, %v3152_v14 }
 0x234   : > { %v3160_v16 = vadd.f32 %v3846_v54, %v3111_v2 }
 0x236   : > { %v3209_v27 = vadd.f32 %v3874_v17, %v3160_v16 }
 0x243   : > { %v3891_v56 = vpop.f32.mrf.mxu0 }
 0x244   : > { %v3897_v11 = vpop.f32.mrf.mxu1 }
 0x245   : > { %v3892_v4 = vpop.f32.mrf.mxu0 }
 0x246   : > { %v3893_v8 = vadd.f32 %v3892_v4, %v3891_v56  ;;  %v3898_v12 = vpop.f32.mrf.mxu1 }
 0x247   : > { %v3899_v19 = vadd.f32 %v3898_v12, %v3897_v11  ;;  %v3894_v20 = vpop.f32.mrf.mxu0 }
 0x248   : > { %v3247_v24 = vadd.f32 %v3893_v8, %v3198_v13  ;;  %v3900_v26 = vpop.f32.mrf.mxu1 }
 0x249   : > { %v3255_v28 = vadd.f32 %v3899_v19, %v3206_v15  ;;  %v3895_v30 = vpop.f32.mrf.mxu0 }
 0x24a   : > { %v3283_v34 = vadd.f32 %v3646_v18, %v3247_v24  ;;  %v3896_v23 = vadd.f32 %v3895_v30, %v3894_v20  ;;  %v3901_v25 = vpop.f32.mrf.mxu1 }
 0x24b   : > { %v3285_v29 = vadd.f32 %v3646_v18, %v3255_v28  ;;  %v3902_v36 = vadd.f32 %v3901_v25, %v3900_v26 }
 0x24c   : > { %v3287_v43 = vmul.f32 0.01, %v3283_v34  ;;  %v3250_v31 = vadd.f32 %v3896_v23, %v3201_v32 }
 0x24d   : > { %v3289_v33 = vmul.f32 0.01, %v3285_v29  ;;  %v3258_v35 = vadd.f32 %v3902_v36, %v3209_v27 }
 0x24e   : > { %v3291_v37 = vmax.f32 %v3283_v34, %v3287_v43  ;;  %v3284_v39 = vadd.f32 %v3646_v18, %v3250_v31 }
 0x24f   : > { %v3293_v60 = vmax.f32 %v3285_v29, %v3289_v33  ;;  %v3286_v41 = vadd.f32 %v3646_v18, %v3258_v35 }
 0x250   : > { %3295 = vst [vmem:[%s1421_s20] sm:$0xff] %v3291_v37  ;;  %v3288_v45 = vmul.f32 0.01, %v3284_v39 }
 0x251   : > { %3297 = vst [vmem:[%s1421_s20 + $0x10] sm:$0xff] %v3293_v60  ;;  %v3290_v46 = vmul.f32 0.01, %v3286_v41  ;;  %3305 = sbr.rel (!%p4254_p6) target bundleno = 606 (0x25e), region = 85 }
 0x252   : > { %v3292_v38 = vmax.f32 %v3284_v39, %v3288_v45 }
 0x253   : > { %v3294_v40 = vmax.f32 %v3286_v41, %v3290_v46 }
 0x254   : > { %3296 = vst [vmem:[%s1421_s20 + $0x8] sm:$0xff] %v3292_v38 }
 0x255   : > { %3298 = vst [vmem:[%s1421_s20 + $0x18] sm:$0xff] %v3294_v40 }
 0x257   : > { %v3345_v47 = vld [vmem:[%s1421_s20] sm:$0xff] }
 0x258   : > { %v3349_v44 = vld [vmem:[%s1421_s20 + $0x10] sm:$0xff]  ;;  %3346 = vst [vmem:[%s3310_s24] sm:$0xff] %v3345_v47 }
 0x259   : > { %3350 = vst [vmem:[%s3310_s24 + $0x40] sm:$0xff] %v3349_v44 }
 0x25b   : > { %v3347_v42 = vld [vmem:[%s1421_s20 + $0x8] sm:$0xff] }
 0x25c   : > { %v3351_v48 = vld [vmem:[%s1421_s20 + $0x18] sm:$0xff]  ;;  %3348 = vst [vmem:[%s3310_s24 + $0x20] sm:$0xff] %v3347_v42 }
 0x25d   : > { %3352 = vst [vmem:[%s3310_s24 + $0x60] sm:$0xff] %v3351_v48 }
 0x25e PF: > { %s13_s16 = sadd.s32 1, %s4197_s16   ;;  %s5177_s12 = smov %s4185_s13 }
 0x25f   : > { %p10_p12 = scmp.ge.s32.totalorder %s13_s16, 6   ;;  %s5178_s13 = smov %s4259_s22 }
 0x260   : > { %s5179_s14 = smov %s4193_s15  ;;  %s5180_s15 = smov %s5182_s17 }
 0x261   :  { %12 = sbr.rel (!%p10_p12) target bundleno = 3 (0x3), region = 160 }

// kernel: discriminator_forward.7
= control target key start
LH: loop header
LB: loop body
LE: loop exit
PB: predicated region body
PF: predicated region fallthrough
CT: control target
= control target key end

     0   :  { %s4216_s12 = smov 0   ;;  %s4218_s13 = smov 0   ;;  %s4540_s0 = inlined_call_operand.vmem [shape: bf16[8,8192], index: 0, kind: input, shape index: {}]   ;;  %s4541_s1 = inlined_call_operand.vmem [shape: bf16[8192,128], index: 1, kind: input, shape index: {}]   ;;  %s4542_s2 = inlined_call_operand.vmem [shape: f32[1,128], index: 2, kind: input, shape index: {}]   ;;  %s4543_s3 = inlined_call_operand.vmem [shape: f32[8,128], index: 3, kind: output, shape index: {}]  }
   0x1   :  { %s4220_s14 = smov 0  }
   0x2 LB: > { %s25_s15 = sadd.s32 1, %s4189_s13  ;;  %p3207_p0 = scmp.ge.s32.totalorder %s4193_s14, 1  ;;  %s4193_s14 = sphi %s4220_s14, %s13_s14   ;;  %s4189_s13 = sphi %s4218_s13, %s4545_s13   ;;  %s4185_s12 = sphi %s4216_s12, %s4544_s12  }
   0x3   : > { %p26_p1 = scmp.ge.s32.totalorder %s25_s15, 2  ;;  %p189_p2 = scmp.lt.s32.totalorder %s4193_s14, 3 }
   0x5   : > { %s4547_s15 = smov (%p26_p1, %s25_s15), 0  ;;  %p190_p3 = pnand %p3207_p0, %p189_p2 }
   0x6   : > { %s3208_s16 = sshll.u32 (!%p190_p3), %s4185_s12, 5  ;;  %s3210_s17 = sshll.u32 (!%p190_p3), %s4185_s12, 9 }
   0x7   : > { %193 = sbr.rel (%p190_p3) target bundleno = 494 (0x1ee), region = 32  ;;  %p233_p4 = scmp.lt.s32.totalorder (!%p190_p3), %s3208_s16, 63 }
   0x8   : > { %p241_p5 = scmp.lt.s32.totalorder (!%p190_p3), %s3210_s17, 1023  ;;  %p3212_p6 = scmp.ne.s32.totalorder (!%p190_p3), %s4185_s12, 0 }
   0xc   : > { %s4549_s16 = smov (!%p233_p4, %s3208_s16), 63  ;;  %s4551_s17 = smov (!%p241_p5, %s3210_s17), 1023 }
   0xd   : > { %s3209_s18 = sshll.u32 %s4549_s16, 2  ;;  %s3211_s22 = sshll.u32 %s4551_s17, 2 }
   0xe   : > { %s4241_s21 = scalar_lea.vmem %s4540_s0, %s3209_s18  ;;  %s4246_s25 = scalar_lea.vmem %s4541_s1, %s3211_s22 }
   0xf   : > { %263 = sbr.rel (%p3212_p6) target bundleno = 22 (0x16), region = 36 }
  0x14   : > { %v4195_v0 = vmov 0.0  }
  0x15   : > { %264 = vst [vmem:[#allocation2] sm:$0xff] %v4195_v0 }
  0x16 PF: > { %v3883_v1 = vld [vmem:[%s4246_s25 + $0x78] sm:$0xff]   ;;  %v3887_v5 = vld [vmem:[%s4246_s25 + $0x70] sm:$0xff]   ;;  %v3891_v9 = vld [vmem:[%s4246_s25 + $0x68] sm:$0xff]   ;;  %p3501_p7 = scmp.ne.s32.totalorder %s4185_s12, 1 }
  0x17   : > { %v3884_v2 = vld [vmem:[%s4246_s25 + $0xf8] sm:$0xff]   ;;  %3506 = vmatprep.subr.bf16.mxu0 %v3883_v1  ;;  %v3888_v6 = vld [vmem:[%s4246_s25 + $0xf0] sm:$0xff]   ;;  %v3892_v10 = vld [vmem:[%s4246_s25 + $0xe8] sm:$0xff]  }
  0x18   : > { %v3885_v3 = vld [vmem:[%s4246_s25 + $0x38] sm:$0xff]   ;;  %3528 = vmatprep.subr.bf16.mxu1 %v3884_v2  ;;  %v3889_v7 = vld [vmem:[%s4246_s25 + $0x30] sm:$0xff]   ;;  %v3893_v11 = vld [vmem:[%s4246_s25 + $0x28] sm:$0xff]  }
  0x19   : > { %v3886_v4 = vld [vmem:[%s4246_s25 + $0xb8] sm:$0xff]   ;;  %3507 = vmatpush3.bf16.msra.mxu0 %v3885_v3  ;;  %v3890_v8 = vld [vmem:[%s4246_s25 + $0xb0] sm:$0xff]   ;;  %v3894_v12 = vld [vmem:[%s4246_s25 + $0xa8] sm:$0xff]  }
  0x1a   : > { %3529 = vmatpush3.bf16.msra.mxu1 %v3886_v4  ;;  %3508 = vmatprep.subr.bf16.mxu0 %v3887_v5  ;;  %v3895_v13 = vld [vmem:[%s4246_s25 + $0x60] sm:$0xff]   ;;  %v3899_v17 = vld [vmem:[%s4246_s25 + $0x58] sm:$0xff]   ;;  %v3903_v21 = vld [vmem:[%s4246_s25 + $0x50] sm:$0xff]  }
  0x1b   : > { %3530 = vmatprep.subr.bf16.mxu1 %v3888_v6  ;;  %v3896_v14 = vld [vmem:[%s4246_s25 + $0xe0] sm:$0xff]   ;;  %v3900_v18 = vld [vmem:[%s4246_s25 + $0xd8] sm:$0xff]   ;;  %v3904_v22 = vld [vmem:[%s4246_s25 + $0xd0] sm:$0xff]  }
  0x1c   : > { %v3897_v15 = vld [vmem:[%s4246_s25 + $0x20] sm:$0xff]   ;;  %v3901_v19 = vld [vmem:[%s4246_s25 + $0x18] sm:$0xff]   ;;  %v3905_v23 = vld [vmem:[%s4246_s25 + $0x10] sm:$0xff]  }
  0x1d   : > { %3509 = vmatpush3.bf16.msra.mxu0 %v3889_v7  ;;  %v3898_v16 = vld [vmem:[%s4246_s25 + $0xa0] sm:$0xff]   ;;  %v3902_v20 = vld [vmem:[%s4246_s25 + $0x98] sm:$0xff]   ;;  %v3906_v24 = vld [vmem:[%s4246_s25 + $0x90] sm:$0xff]  }
  0x1e   : > { %3531 = vmatpush3.bf16.msra.mxu1 %v3890_v8  ;;  %3510 = vmatprep.subr.bf16.mxu0 %v3891_v9  ;;  %v3907_v25 = vld [vmem:[%s4246_s25 + $0x48] sm:$0xff]   ;;  %v3911_v29 = vld [vmem:[%s4246_s25 + $0x40] sm:$0xff]   ;;  %v3919_v39 = vld [vmem:[%s4246_s25 + $0x178] sm:$0xff]  }
  0x1f   : > { %3532 = vmatprep.subr.bf16.mxu1 %v3892_v10  ;;  %v3908_v26 = vld [vmem:[%s4246_s25 + $0xc8] sm:$0xff]   ;;  %v3912_v30 = vld [vmem:[%s4246_s25 + $0xc0] sm:$0xff]   ;;  %v3920_v40 = vld [vmem:[%s4246_s25 + $0x1f8] sm:$0xff]  }
  0x20   : > { %v3909_v27 = vld [vmem:[%s4246_s25 + $0x8] sm:$0xff]   ;;  %v3913_v31 = vld [vmem:[%s4246_s25] sm:$0xff]   ;;  %v3921_v41 = vld [vmem:[%s4246_s25 + $0x138] sm:$0xff]  }
  0x21   : > { %3511 = vmatpush3.bf16.msra.mxu0 %v3893_v11  ;;  %v3910_v28 = vld [vmem:[%s4246_s25 + $0x88] sm:$0xff]   ;;  %v3914_v32 = vld [vmem:[%s4246_s25 + $0x80] sm:$0xff]   ;;  %v3922_v42 = vld [vmem:[%s4246_s25 + $0x1b8] sm:$0xff]  }
  0x22   : > { %3533 = vmatpush3.bf16.msra.mxu1 %v3894_v12  ;;  %3512 = vmatprep.subr.bf16.mxu0 %v3895_v13  ;;  %v266_v33 = vld [vmem:[%s4241_s21] sm:$0xff]  ;;  %v267_v34 = vld [vmem:[%s4241_s21 + $0x8] sm:$0xff]  ;;  %v3923_v43 = vld [vmem:[%s4246_s25 + $0x170] sm:$0xff]  }
  0x23   : > { %3534 = vmatprep.subr.bf16.mxu1 %v3896_v14  ;;  %v3213_v35 = vcombine.low %v266_v33, %v266_v33  ;;  %v3214_v36 = vcombine.high %v266_v33, %v266_v33  ;;  %v3215_v37 = vcombine.low %v267_v34, %v267_v34  ;;  %v3216_v38 = vcombine.high %v267_v34, %v267_v34  ;;  %v3924_v44 = vld [vmem:[%s4246_s25 + $0x1f0] sm:$0xff]   ;;  %v3927_v47 = vld [vmem:[%s4246_s25 + $0x168] sm:$0xff]   ;;  %v3931_v51 = vld [vmem:[%s4246_s25 + $0x160] sm:$0xff]  }
  0x24   : > { %v3925_v45 = vld [vmem:[%s4246_s25 + $0x130] sm:$0xff]   ;;  %v3928_v48 = vld [vmem:[%s4246_s25 + $0x1e8] sm:$0xff]   ;;  %v3932_v52 = vld [vmem:[%s4246_s25 + $0x1e0] sm:$0xff]  }
  0x25   : > { %3513 = vmatpush3.bf16.msra.mxu0 %v3897_v15  ;;  %2474 = vmatprep.mubr.bf16.mxu0 %v3214_v36  ;;  %v3926_v46 = vld [vmem:[%s4246_s25 + $0x1b0] sm:$0xff]   ;;  %v3929_v49 = vld [vmem:[%s4246_s25 + $0x128] sm:$0xff]   ;;  %v3933_v53 = vld [vmem:[%s4246_s25 + $0x120] sm:$0xff]  }
  0x26   : > { %3535 = vmatpush3.bf16.msra.mxu1 %v3898_v16  ;;  %3514 = vmatprep.subr.bf16.mxu0 %v3899_v17  ;;  %v3930_v50 = vld [vmem:[%s4246_s25 + $0x1a8] sm:$0xff]   ;;  %v3934_v54 = vld [vmem:[%s4246_s25 + $0x1a0] sm:$0xff]   ;;  %v3935_v55 = vld [vmem:[%s4246_s25 + $0x158] sm:$0xff]  }
  0x27   : > { %3536 = vmatprep.subr.bf16.mxu1 %v3900_v18  ;;  %2514 = vmatprep.mubr.bf16.mxu1 %v3216_v38  ;;  %v3936_v56 = vld [vmem:[%s4246_s25 + $0x1d8] sm:$0xff]   ;;  %v3939_v59 = vld [vmem:[%s4246_s25 + $0x150] sm:$0xff]   ;;  %v3943_v63 = vld [vmem:[%s4246_s25 + $0x148] sm:$0xff]  }
  0x28   : > { %v3937_v57 = vld [vmem:[%s4246_s25 + $0x118] sm:$0xff]   ;;  %v3940_v60 = vld [vmem:[%s4246_s25 + $0x1d0] sm:$0xff]   ;;  %v3944_v0 = vld [vmem:[%s4246_s25 + $0x1c8] sm:$0xff]  }
  0x29   : > { %3515 = vmatpush3.bf16.msra.mxu0 %v3901_v19  ;;  %v3938_v58 = vld [vmem:[%s4246_s25 + $0x198] sm:$0xff]   ;;  %v3941_v61 = vld [vmem:[%s4246_s25 + $0x110] sm:$0xff]   ;;  %v3945_v1 = vld [vmem:[%s4246_s25 + $0x108] sm:$0xff]  }
  0x2a   : > { %3537 = vmatpush3.bf16.msra.mxu1 %v3902_v20  ;;  %3516 = vmatprep.subr.bf16.mxu0 %v3903_v21  ;;  %v3942_v62 = vld [vmem:[%s4246_s25 + $0x190] sm:$0xff]   ;;  %v3946_v2 = vld [vmem:[%s4246_s25 + $0x188] sm:$0xff]   ;;  %v3947_v3 = vld [vmem:[%s4246_s25 + $0x140] sm:$0xff]  }
  0x2b   : > { %3538 = vmatprep.subr.bf16.mxu1 %v3904_v22  ;;  %v3948_v4 = vld [vmem:[%s4246_s25 + $0x1c0] sm:$0xff]   ;;  %v268_v7 = vld [vmem:[%s4241_s21 + $0x10] sm:$0xff]  ;;  %v269_v10 = vld [vmem:[%s4241_s21 + $0x18] sm:$0xff] }
  0x2c   : > { %v3949_v5 = vld [vmem:[%s4246_s25 + $0x100] sm:$0xff]   ;;  %v3217_v8 = vcombine.low %v268_v7, %v268_v7  ;;  %v3218_v9 = vcombine.high %v268_v7, %v268_v7  ;;  %v3219_v11 = vcombine.low %v269_v10, %v269_v10  ;;  %v3220_v12 = vcombine.high %v269_v10, %v269_v10  ;;  %v3955_v13 = vld [vmem:[%s4246_s25 + $0x278] sm:$0xff]   ;;  %v3959_v17 = vld [vmem:[%s4246_s25 + $0x270] sm:$0xff]  }
  0x2d   : > { %3517 = vmatpush3.bf16.msra.mxu0 %v3905_v23  ;;  %v3950_v6 = vld [vmem:[%s4246_s25 + $0x180] sm:$0xff]   ;;  %v3956_v14 = vld [vmem:[%s4246_s25 + $0x2f8] sm:$0xff]   ;;  %v3960_v18 = vld [vmem:[%s4246_s25 + $0x2f0] sm:$0xff]  }
  0x2e   : > { %3539 = vmatpush3.bf16.msra.mxu1 %v3906_v24  ;;  %3518 = vmatprep.subr.bf16.mxu0 %v3907_v25  ;;  %v3957_v15 = vld [vmem:[%s4246_s25 + $0x238] sm:$0xff]   ;;  %v3961_v19 = vld [vmem:[%s4246_s25 + $0x230] sm:$0xff]   ;;  %v3963_v21 = vld [vmem:[%s4246_s25 + $0x268] sm:$0xff]  }
  0x2f   : > { %3540 = vmatprep.subr.bf16.mxu1 %v3908_v26  ;;  %v3958_v16 = vld [vmem:[%s4246_s25 + $0x2b8] sm:$0xff]   ;;  %v3962_v20 = vld [vmem:[%s4246_s25 + $0x2b0] sm:$0xff]   ;;  %v3964_v22 = vld [vmem:[%s4246_s25 + $0x2e8] sm:$0xff]  }
  0x30   : > { %v3965_v23 = vld [vmem:[%s4246_s25 + $0x228] sm:$0xff]   ;;  %v3967_v25 = vld [vmem:[%s4246_s25 + $0x260] sm:$0xff]   ;;  %v3975_v33 = vld [vmem:[%s4246_s25 + $0x250] sm:$0xff]  }
  0x31   : > { %3519 = vmatpush3.bf16.msra.mxu0 %v3909_v27  ;;  %v3966_v24 = vld [vmem:[%s4246_s25 + $0x2a8] sm:$0xff]   ;;  %v3968_v26 = vld [vmem:[%s4246_s25 + $0x2e0] sm:$0xff]   ;;  %v3976_v34 = vld [vmem:[%s4246_s25 + $0x2d0] sm:$0xff]  }
  0x32   : > { %3541 = vmatpush3.bf16.msra.mxu1 %v3910_v28  ;;  %3520 = vmatprep.subr.bf16.mxu0 %v3911_v29  ;;  %v3969_v27 = vld [vmem:[%s4246_s25 + $0x220] sm:$0xff]   ;;  %v3971_v29 = vld [vmem:[%s4246_s25 + $0x258] sm:$0xff]   ;;  %v3978_v36 = vld [vmem:[%s4246_s25 + $0x290] sm:$0xff]  }
  0x33   : > { %3542 = vmatprep.subr.bf16.mxu1 %v3912_v30  ;;  %v3970_v28 = vld [vmem:[%s4246_s25 + $0x2a0] sm:$0xff]   ;;  %v3972_v30 = vld [vmem:[%s4246_s25 + $0x2d8] sm:$0xff]   ;;  %v3980_v38 = vld [vmem:[%s4246_s25 + $0x2c8] sm:$0xff]  }
  0x34   : > { %v4011_v7 = vld [vmem:[%s4246_s25 + $0x350] sm:$0xff]  }
  0x35   : > { %3521 = vmatpush3.bf16.msra.mxu0 %v3913_v31  ;;  %v3973_v31 = vld [vmem:[%s4246_s25 + $0x218] sm:$0xff]   ;;  %v4014_v10 = vld [vmem:[%s4246_s25 + $0x390] sm:$0xff]  }
  0x36   : > { %3543 = vmatpush3.bf16.msra.mxu1 %v3914_v32  ;;  %3550 = vmatprep.subr.bf16.mxu0 %v3919_v39  ;;  %v3974_v32 = vld [vmem:[%s4246_s25 + $0x298] sm:$0xff]   ;;  %v3981_v39 = vld [vmem:[%s4246_s25 + $0x208] sm:$0xff]  }
  0x37   : > { %3572 = vmatprep.subr.bf16.mxu1 %v3920_v40  ;;  %v3982_v40 = vld [vmem:[%s4246_s25 + $0x288] sm:$0xff]  }
  0x38   : > { %2475 = vmatmul.mubr.bf16.vlgmr.msra.gmra.mxu0 %v3213_v35  ;;  %v3977_v35 = vld [vmem:[%s4246_s25 + $0x210] sm:$0xff]  }
  0x39   : > { %2515 = vmatmul.mubr.bf16.vlgmr.msra.gmra.mxu1 %v3215_v37  ;;  %3551 = vmatpush3.bf16.msra.mxu0 %v3921_v41  ;;  %v3979_v37 = vld [vmem:[%s4246_s25 + $0x248] sm:$0xff]   ;;  %v3983_v41 = vld [vmem:[%s4246_s25 + $0x240] sm:$0xff]  }
  0x3a   : > { %3573 = vmatpush3.bf16.msra.mxu1 %v3922_v42  ;;  %3552 = vmatprep.subr.bf16.mxu0 %v3923_v43  ;;  %v3984_v42 = vld [vmem:[%s4246_s25 + $0x2c0] sm:$0xff]  }
  0x3b   : > { %3574 = vmatprep.subr.bf16.mxu1 %v3924_v44  ;;  %2554 = vmatprep.mubr.bf16.mxu0 %v3218_v9  ;;  %v3985_v43 = vld [vmem:[%s4246_s25 + $0x200] sm:$0xff]   ;;  %v4013_v9 = vld [vmem:[%s4246_s25 + $0x310] sm:$0xff]  }
  0x3c   : > { %2594 = vmatprep.mubr.bf16.mxu1 %v3220_v12  ;;  %v3986_v44 = vld [vmem:[%s4246_s25 + $0x280] sm:$0xff]   ;;  %v4016_v12 = vld [vmem:[%s4246_s25 + $0x3c8] sm:$0xff]  }
  0x3d   : > { %3553 = vmatpush3.bf16.msra.mxu0 %v3925_v45  ;;  %v270_v45 = vld [vmem:[%s4241_s21 + $0x20] sm:$0xff] }
  0x3e   : > { %3575 = vmatpush3.bf16.msra.mxu1 %v3926_v46  ;;  %3554 = vmatprep.subr.bf16.mxu0 %v3927_v47  ;;  %v271_v46 = vld [vmem:[%s4241_s21 + $0x28] sm:$0xff]  ;;  %v3221_v47 = vcombine.low %v270_v45, %v270_v45 }
  0x3f   : > { %3576 = vmatprep.subr.bf16.mxu1 %v3928_v48  ;;  %v3222_v48 = vcombine.high %v270_v45, %v270_v45  ;;  %v4047_v45 = vld [vmem:[%s4246_s25 + $0x450] sm:$0xff]  }
  0x41   : > { %3555 = vmatpush3.bf16.msra.mxu0 %v3929_v49  ;;  %v3223_v49 = vcombine.low %v271_v46, %v271_v46 }
  0x42   : > { %3577 = vmatpush3.bf16.msra.mxu1 %v3930_v50  ;;  %3556 = vmatprep.subr.bf16.mxu0 %v3931_v51  ;;  %v3224_v50 = vcombine.high %v271_v46, %v271_v46  ;;  %v3991_v51 = vld [vmem:[%s4246_s25 + $0x378] sm:$0xff]   ;;  %v4048_v46 = vld [vmem:[%s4246_s25 + $0x4d0] sm:$0xff]  }
  0x43   : > { %3578 = vmatprep.subr.bf16.mxu1 %v3932_v52  ;;  %v3992_v52 = vld [vmem:[%s4246_s25 + $0x3f8] sm:$0xff]  }
  0x45   : > { %3557 = vmatpush3.bf16.msra.mxu0 %v3933_v53  ;;  %v3993_v53 = vld [vmem:[%s4246_s25 + $0x338] sm:$0xff]  }
  0x46   : > { %3579 = vmatpush3.bf16.msra.mxu1 %v3934_v54  ;;  %3558 = vmatprep.subr.bf16.mxu0 %v3935_v55  ;;  %v3994_v54 = vld [vmem:[%s4246_s25 + $0x3b8] sm:$0xff]   ;;  %v3995_v55 = vld [vmem:[%s4246_s25 + $0x370] sm:$0xff]  }
  0x47   : > { %3580 = vmatprep.subr.bf16.mxu1 %v3936_v56  ;;  %v3996_v56 = vld [vmem:[%s4246_s25 + $0x3f0] sm:$0xff]  }
  0x49   : > { %3559 = vmatpush3.bf16.msra.mxu0 %v3937_v57  ;;  %v3997_v57 = vld [vmem:[%s4246_s25 + $0x330] sm:$0xff]  }
  0x4a   : > { %3581 = vmatpush3.bf16.msra.mxu1 %v3938_v58  ;;  %3560 = vmatprep.subr.bf16.mxu0 %v3939_v59  ;;  %v3998_v58 = vld [vmem:[%s4246_s25 + $0x3b0] sm:$0xff]   ;;  %v3999_v59 = vld [vmem:[%s4246_s25 + $0x368] sm:$0xff]  }
  0x4b   : > { %3582 = vmatprep.subr.bf16.mxu1 %v3940_v60  ;;  %v4000_v60 = vld [vmem:[%s4246_s25 + $0x3e8] sm:$0xff]  }
  0x4d   : > { %3561 = vmatpush3.bf16.msra.mxu0 %v3941_v61  ;;  %v4001_v61 = vld [vmem:[%s4246_s25 + $0x328] sm:$0xff]  }
  0x4e   : > { %3583 = vmatpush3.bf16.msra.mxu1 %v3942_v62  ;;  %3562 = vmatprep.subr.bf16.mxu0 %v3943_v63  ;;  %v4002_v62 = vld [vmem:[%s4246_s25 + $0x3a8] sm:$0xff]   ;;  %v4003_v63 = vld [vmem:[%s4246_s25 + $0x360] sm:$0xff]  }
  0x4f   : > { %3584 = vmatprep.subr.bf16.mxu1 %v3944_v0  ;;  %v4004_v0 = vld [vmem:[%s4246_s25 + $0x3e0] sm:$0xff]  }
  0x51   : > { %3563 = vmatpush3.bf16.msra.mxu0 %v3945_v1  ;;  %v4005_v1 = vld [vmem:[%s4246_s25 + $0x320] sm:$0xff]  }
  0x52   : > { %3585 = vmatpush3.bf16.msra.mxu1 %v3946_v2  ;;  %3564 = vmatprep.subr.bf16.mxu0 %v3947_v3  ;;  %v4006_v2 = vld [vmem:[%s4246_s25 + $0x3a0] sm:$0xff]   ;;  %v4007_v3 = vld [vmem:[%s4246_s25 + $0x358] sm:$0xff]  }
  0x53   : > { %3586 = vmatprep.subr.bf16.mxu1 %v3948_v4  ;;  %v4008_v4 = vld [vmem:[%s4246_s25 + $0x3d8] sm:$0xff]  }
  0x55   : > { %3565 = vmatpush3.bf16.msra.mxu0 %v3949_v5  ;;  %v4009_v5 = vld [vmem:[%s4246_s25 + $0x318] sm:$0xff]  }
  0x56   : > { %3587 = vmatpush3.bf16.msra.mxu1 %v3950_v6  ;;  %3594 = vmatprep.subr.bf16.mxu0 %v3955_v13  ;;  %v4010_v6 = vld [vmem:[%s4246_s25 + $0x398] sm:$0xff]   ;;  %v4017_v13 = vld [vmem:[%s4246_s25 + $0x308] sm:$0xff]  }
  0x57   : > { %3616 = vmatprep.subr.bf16.mxu1 %v3956_v14  ;;  %v4018_v14 = vld [vmem:[%s4246_s25 + $0x388] sm:$0xff]  }
  0x58   : > { %2555 = vmatmul.mubr.bf16.vlgmr.msra.gmra.mxu0 %v3217_v8  ;;  %v4012_v8 = vld [vmem:[%s4246_s25 + $0x3d0] sm:$0xff]  }
  0x59   : > { %2595 = vmatmul.mubr.bf16.vlgmr.msra.gmra.mxu1 %v3219_v11  ;;  %3595 = vmatpush3.bf16.msra.mxu0 %v3957_v15  ;;  %v4015_v11 = vld [vmem:[%s4246_s25 + $0x348] sm:$0xff]   ;;  %v4019_v15 = vld [vmem:[%s4246_s25 + $0x340] sm:$0xff]  }
  0x5a   : > { %3617 = vmatpush3.bf16.msra.mxu1 %v3958_v16  ;;  %3596 = vmatprep.subr.bf16.mxu0 %v3959_v17  ;;  %v4020_v16 = vld [vmem:[%s4246_s25 + $0x3c0] sm:$0xff]  }
  0x5b   : > { %3618 = vmatprep.subr.bf16.mxu1 %v3960_v18  ;;  %2634 = vmatprep.mubr.bf16.mxu0 %v3222_v48  ;;  %v4021_v17 = vld [vmem:[%s4246_s25 + $0x300] sm:$0xff]   ;;  %v4050_v48 = vld [vmem:[%s4246_s25 + $0x490] sm:$0xff]  }
  0x5c   : > { %2674 = vmatprep.mubr.bf16.mxu1 %v3224_v50  ;;  %v4022_v18 = vld [vmem:[%s4246_s25 + $0x380] sm:$0xff]   ;;  %v4052_v50 = vld [vmem:[%s4246_s25 + $0x4c8] sm:$0xff]  }
  0x5d   : > { %3597 = vmatpush3.bf16.msra.mxu0 %v3961_v19  ;;  %v272_v19 = vld [vmem:[%s4241_s21 + $0x30] sm:$0xff] }
  0x5e   : > { %3619 = vmatpush3.bf16.msra.mxu1 %v3962_v20  ;;  %3598 = vmatprep.subr.bf16.mxu0 %v3963_v21  ;;  %v273_v20 = vld [vmem:[%s4241_s21 + $0x38] sm:$0xff]  ;;  %v3225_v21 = vcombine.low %v272_v19, %v272_v19 }
  0x5f   : > { %3620 = vmatprep.subr.bf16.mxu1 %v3964_v22  ;;  %v3226_v22 = vcombine.high %v272_v19, %v272_v19  ;;  %v4083_v19 = vld [vmem:[%s4246_s25 + $0x550] sm:$0xff]  }
  0x61   : > { %3599 = vmatpush3.bf16.msra.mxu0 %v3965_v23  ;;  %v3227_v23 = vcombine.low %v273_v20, %v273_v20 }
  0x62   : > { %3621 = vmatpush3.bf16.msra.mxu1 %v3966_v24  ;;  %3600 = vmatprep.subr.bf16.mxu0 %v3967_v25  ;;  %v4027_v24 = vld [vmem:[%s4246_s25 + $0x478] sm:$0xff]   ;;  %v3228_v25 = vcombine.high %v273_v20, %v273_v20  ;;  %v4084_v20 = vld [vmem:[%s4246_s25 + $0x5d0] sm:$0xff]  }
  0x63   : > { %3622 = vmatprep.subr.bf16.mxu1 %v3968_v26  ;;  %v4028_v26 = vld [vmem:[%s4246_s25 + $0x4f8] sm:$0xff]  }
  0x65   : > { %3601 = vmatpush3.bf16.msra.mxu0 %v3969_v27  ;;  %v4029_v27 = vld [vmem:[%s4246_s25 + $0x438] sm:$0xff]  }
  0x66   : > { %3623 = vmatpush3.bf16.msra.mxu1 %v3970_v28  ;;  %3602 = vmatprep.subr.bf16.mxu0 %v3971_v29  ;;  %v4030_v28 = vld [vmem:[%s4246_s25 + $0x4b8] sm:$0xff]   ;;  %v4031_v29 = vld [vmem:[%s4246_s25 + $0x470] sm:$0xff]  }
  0x67   : > { %3624 = vmatprep.subr.bf16.mxu1 %v3972_v30  ;;  %v4032_v30 = vld [vmem:[%s4246_s25 + $0x4f0] sm:$0xff]  }
  0x69   : > { %3603 = vmatpush3.bf16.msra.mxu0 %v3973_v31  ;;  %v4033_v31 = vld [vmem:[%s4246_s25 + $0x430] sm:$0xff]  }
  0x6a   : > { %3625 = vmatpush3.bf16.msra.mxu1 %v3974_v32  ;;  %3604 = vmatprep.subr.bf16.mxu0 %v3975_v33  ;;  %v4034_v32 = vld [vmem:[%s4246_s25 + $0x4b0] sm:$0xff]   ;;  %v4035_v33 = vld [vmem:[%s4246_s25 + $0x468] sm:$0xff]  }
  0x6b   : > { %3626 = vmatprep.subr.bf16.mxu1 %v3976_v34  ;;  %v4036_v34 = vld [vmem:[%s4246_s25 + $0x4e8] sm:$0xff]  }
  0x6d   : > { %3605 = vmatpush3.bf16.msra.mxu0 %v3977_v35  ;;  %v4037_v35 = vld [vmem:[%s4246_s25 + $0x428] sm:$0xff]  }
  0x6e   : > { %3627 = vmatpush3.bf16.msra.mxu1 %v3978_v36  ;;  %3606 = vmatprep.subr.bf16.mxu0 %v3979_v37  ;;  %v4038_v36 = vld [vmem:[%s4246_s25 + $0x4a8] sm:$0xff]   ;;  %v4039_v37 = vld [vmem:[%s4246_s25 + $0x460] sm:$0xff]  }
  0x6f   : > { %3628 = vmatprep.subr.bf16.mxu1 %v3980_v38  ;;  %v4040_v38 = vld [vmem:[%s4246_s25 + $0x4e0] sm:$0xff]  }
  0x71   : > { %3607 = vmatpush3.bf16.msra.mxu0 %v3981_v39  ;;  %v4041_v39 = vld [vmem:[%s4246_s25 + $0x420] sm:$0xff]  }
  0x72   : > { %3629 = vmatpush3.bf16.msra.mxu1 %v3982_v40  ;;  %3608 = vmatprep.subr.bf16.mxu0 %v3983_v41  ;;  %v4042_v40 = vld [vmem:[%s4246_s25 + $0x4a0] sm:$0xff]   ;;  %v4043_v41 = vld [vmem:[%s4246_s25 + $0x458] sm:$0xff]  }
  0x73   : > { %3630 = vmatprep.subr.bf16.mxu1 %v3984_v42  ;;  %v4044_v42 = vld [vmem:[%s4246_s25 + $0x4d8] sm:$0xff]  }
  0x75   : > { %3609 = vmatpush3.bf16.msra.mxu0 %v3985_v43  ;;  %v4045_v43 = vld [vmem:[%s4246_s25 + $0x418] sm:$0xff]  }
  0x76   : > { %3631 = vmatpush3.bf16.msra.mxu1 %v3986_v44  ;;  %3638 = vmatprep.subr.bf16.mxu0 %v3991_v51  ;;  %v4046_v44 = vld [vmem:[%s4246_s25 + $0x498] sm:$0xff]   ;;  %v4053_v51 = vld [vmem:[%s4246_s25 + $0x408] sm:$0xff]  }
  0x77   : > { %3660 = vmatprep.subr.bf16.mxu1 %v3992_v52  ;;  %v4054_v52 = vld [vmem:[%s4246_s25 + $0x488] sm:$0xff]  }
  0x78   : > { %2635 = vmatmul.mubr.bf16.vlgmr.msra.gmra.mxu0 %v3221_v47  ;;  %v4049_v47 = vld [vmem:[%s4246_s25 + $0x410] sm:$0xff]  }
  0x79   : > { %2675 = vmatmul.mubr.bf16.vlgmr.msra.gmra.mxu1 %v3223_v49  ;;  %3639 = vmatpush3.bf16.msra.mxu0 %v3993_v53  ;;  %v4051_v49 = vld [vmem:[%s4246_s25 + $0x448] sm:$0xff]   ;;  %v4055_v53 = vld [vmem:[%s4246_s25 + $0x440] sm:$0xff]  }
  0x7a   : > { %3661 = vmatpush3.bf16.msra.mxu1 %v3994_v54  ;;  %3640 = vmatprep.subr.bf16.mxu0 %v3995_v55  ;;  %v4056_v54 = vld [vmem:[%s4246_s25 + $0x4c0] sm:$0xff]  }
  0x7b   : > { %3662 = vmatprep.subr.bf16.mxu1 %v3996_v56  ;;  %2714 = vmatprep.mubr.bf16.mxu0 %v3226_v22  ;;  %v4057_v55 = vld [vmem:[%s4246_s25 + $0x400] sm:$0xff]   ;;  %v4086_v22 = vld [vmem:[%s4246_s25 + $0x590] sm:$0xff]  }
  0x7c   : > { %2754 = vmatprep.mubr.bf16.mxu1 %v3228_v25  ;;  %v4058_v56 = vld [vmem:[%s4246_s25 + $0x480] sm:$0xff]   ;;  %v4089_v25 = vld [vmem:[%s4246_s25 + $0x508] sm:$0xff]  }
  0x7d   : > { %3641 = vmatpush3.bf16.msra.mxu0 %v3997_v57  ;;  %v274_v57 = vld [vmem:[%s4241_s21 + $0x40] sm:$0xff] }
  0x7e   : > { %3663 = vmatpush3.bf16.msra.mxu1 %v3998_v58  ;;  %3642 = vmatprep.subr.bf16.mxu0 %v3999_v59  ;;  %v3229_v58 = vcombine.low %v274_v57, %v274_v57  ;;  %v3230_v59 = vcombine.high %v274_v57, %v274_v57  ;;  %v4119_v57 = vld [vmem:[%s4246_s25 + $0x650] sm:$0xff]  }
  0x7f   : > { %3664 = vmatprep.subr.bf16.mxu1 %v4000_v60  ;;  %v275_v60 = vld [vmem:[%s4241_s21 + $0x48] sm:$0xff] }
  0x81   : > { %3643 = vmatpush3.bf16.msra.mxu0 %v4001_v61  ;;  %v3231_v61 = vcombine.low %v275_v60, %v275_v60 }
  0x82   : > { %3665 = vmatpush3.bf16.msra.mxu1 %v4002_v62  ;;  %3644 = vmatprep.subr.bf16.mxu0 %v4003_v63  ;;  %v3232_v62 = vcombine.high %v275_v60, %v275_v60  ;;  %v4063_v63 = vld [vmem:[%s4246_s25 + $0x578] sm:$0xff]   ;;  %v4122_v60 = vld [vmem:[%s4246_s25 + $0x690] sm:$0xff]  }
  0x83   : > { %3666 = vmatprep.subr.bf16.mxu1 %v4004_v0  ;;  %v4064_v0 = vld [vmem:[%s4246_s25 + $0x5f8] sm:$0xff]  }
  0x85   : > { %3645 = vmatpush3.bf16.msra.mxu0 %v4005_v1  ;;  %v4065_v1 = vld [vmem:[%s4246_s25 + $0x538] sm:$0xff]  }
  0x86   : > { %3667 = vmatpush3.bf16.msra.mxu1 %v4006_v2  ;;  %3646 = vmatprep.subr.bf16.mxu0 %v4007_v3  ;;  %v4066_v2 = vld [vmem:[%s4246_s25 + $0x5b8] sm:$0xff]   ;;  %v4067_v3 = vld [vmem:[%s4246_s25 + $0x570] sm:$0xff]  }
  0x87   : > { %3668 = vmatprep.subr.bf16.mxu1 %v4008_v4  ;;  %v4068_v4 = vld [vmem:[%s4246_s25 + $0x5f0] sm:$0xff]  }
  0x89   : > { %3647 = vmatpush3.bf16.msra.mxu0 %v4009_v5  ;;  %v4069_v5 = vld [vmem:[%s4246_s25 + $0x530] sm:$0xff]  }
  0x8a   : > { %3669 = vmatpush3.bf16.msra.mxu1 %v4010_v6  ;;  %3648 = vmatprep.subr.bf16.mxu0 %v4011_v7  ;;  %v4070_v6 = vld [vmem:[%s4246_s25 + $0x5b0] sm:$0xff]   ;;  %v4071_v7 = vld [vmem:[%s4246_s25 + $0x568] sm:$0xff]  }
  0x8b   : > { %3670 = vmatprep.subr.bf16.mxu1 %v4012_v8  ;;  %v4072_v8 = vld [vmem:[%s4246_s25 + $0x5e8] sm:$0xff]  }
  0x8d   : > { %3649 = vmatpush3.bf16.msra.mxu0 %v4013_v9  ;;  %v4073_v9 = vld [vmem:[%s4246_s25 + $0x528] sm:$0xff]  }
  0x8e   : > { %3671 = vmatpush3.bf16.msra.mxu1 %v4014_v10  ;;  %3650 = vmatprep.subr.bf16.mxu0 %v4015_v11  ;;  %v4074_v10 = vld [vmem:[%s4246_s25 + $0x5a8] sm:$0xff]   ;;  %v4075_v11 = vld [vmem:[%s4246_s25 + $0x560] sm:$0xff]  }
  0x8f   : > { %3672 = vmatprep.subr.bf16.mxu1 %v4016_v12  ;;  %v4076_v12 = vld [vmem:[%s4246_s25 + $0x5e0] sm:$0xff]  }
  0x91   : > { %3651 = vmatpush3.bf16.msra.mxu0 %v4017_v13  ;;  %v4077_v13 = vld [vmem:[%s4246_s25 + $0x520] sm:$0xff]  }
  0x92   : > { %3673 = vmatpush3.bf16.msra.mxu1 %v4018_v14  ;;  %3652 = vmatprep.subr.bf16.mxu0 %v4019_v15  ;;  %v4078_v14 = vld [vmem:[%s4246_s25 + $0x5a0] sm:$0xff]   ;;  %v4079_v15 = vld [vmem:[%s4246_s25 + $0x558] sm:$0xff]  }
  0x93   : > { %3674 = vmatprep.subr.bf16.mxu1 %v4020_v16  ;;  %v4080_v16 = vld [vmem:[%s4246_s25 + $0x5d8] sm:$0xff]  }
  0x95   : > { %3653 = vmatpush3.bf16.msra.mxu0 %v4021_v17  ;;  %v4081_v17 = vld [vmem:[%s4246_s25 + $0x518] sm:$0xff]  }
  0x96   : > { %3675 = vmatpush3.bf16.msra.mxu1 %v4022_v18  ;;  %3682 = vmatprep.subr.bf16.mxu0 %v4027_v24  ;;  %v4082_v18 = vld [vmem:[%s4246_s25 + $0x598] sm:$0xff]   ;;  %v4088_v24 = vld [vmem:[%s4246_s25 + $0x5c8] sm:$0xff]  }
  0x97   : > { %3704 = vmatprep.subr.bf16.mxu1 %v4028_v26  ;;  %v4090_v26 = vld [vmem:[%s4246_s25 + $0x588] sm:$0xff]  }
  0x98   : > { %2715 = vmatmul.mubr.bf16.vlgmr.msra.gmra.mxu0 %v3225_v21  ;;  %v4085_v21 = vld [vmem:[%s4246_s25 + $0x510] sm:$0xff]  }
  0x99   : > { %2755 = vmatmul.mubr.bf16.vlgmr.msra.gmra.mxu1 %v3227_v23  ;;  %3683 = vmatpush3.bf16.msra.mxu0 %v4029_v27  ;;  %v4087_v23 = vld [vmem:[%s4246_s25 + $0x548] sm:$0xff]   ;;  %v4091_v27 = vld [vmem:[%s4246_s25 + $0x540] sm:$0xff]  }
  0x9a   : > { %3705 = vmatpush3.bf16.msra.mxu1 %v4030_v28  ;;  %3684 = vmatprep.subr.bf16.mxu0 %v4031_v29  ;;  %v4092_v28 = vld [vmem:[%s4246_s25 + $0x5c0] sm:$0xff]  }
  0x9b   : > { %3706 = vmatprep.subr.bf16.mxu1 %v4032_v30  ;;  %2794 = vmatprep.mubr.bf16.mxu0 %v3230_v59  ;;  %v4093_v29 = vld [vmem:[%s4246_s25 + $0x500] sm:$0xff]   ;;  %v4121_v59 = vld [vmem:[%s4246_s25 + $0x610] sm:$0xff]  }
  0x9c   : > { %2834 = vmatprep.mubr.bf16.mxu1 %v3232_v62  ;;  %v4094_v30 = vld [vmem:[%s4246_s25 + $0x580] sm:$0xff]   ;;  %v4124_v62 = vld [vmem:[%s4246_s25 + $0x6c8] sm:$0xff]  }
  0x9d   : > { %3685 = vmatpush3.bf16.msra.mxu0 %v4033_v31  ;;  %v276_v31 = vld [vmem:[%s4241_s21 + $0x50] sm:$0xff] }
  0x9e   : > { %3707 = vmatpush3.bf16.msra.mxu1 %v4034_v32  ;;  %3686 = vmatprep.subr.bf16.mxu0 %v4035_v33  ;;  %v277_v32 = vld [vmem:[%s4241_s21 + $0x58] sm:$0xff]  ;;  %v3233_v33 = vcombine.low %v276_v31, %v276_v31 }
  0x9f   : > { %3708 = vmatprep.subr.bf16.mxu1 %v4036_v34  ;;  %v3234_v34 = vcombine.high %v276_v31, %v276_v31  ;;  %v4144_v31 = vld [vmem:[%s4246_s25 + $0x7e8] sm:$0xff]  }
  0xa1   : > { %3687 = vmatpush3.bf16.msra.mxu0 %v4037_v35  ;;  %v3235_v35 = vcombine.low %v277_v32, %v277_v32 }
  0xa2   : > { %3709 = vmatpush3.bf16.msra.mxu1 %v4038_v36  ;;  %3688 = vmatprep.subr.bf16.mxu0 %v4039_v37  ;;  %v3236_v36 = vcombine.high %v277_v32, %v277_v32  ;;  %v4099_v37 = vld [vmem:[%s4246_s25 + $0x678] sm:$0xff]   ;;  %v4145_v32 = vld [vmem:[%s4246_s25 + $0x728] sm:$0xff]  }
  0xa3   : > { %3710 = vmatprep.subr.bf16.mxu1 %v4040_v38  ;;  %v4100_v38 = vld [vmem:[%s4246_s25 + $0x6f8] sm:$0xff]  }
  0xa5   : > { %3689 = vmatpush3.bf16.msra.mxu0 %v4041_v39  ;;  %v4101_v39 = vld [vmem:[%s4246_s25 + $0x638] sm:$0xff]  }
  0xa6   : > { %3711 = vmatpush3.bf16.msra.mxu1 %v4042_v40  ;;  %3690 = vmatprep.subr.bf16.mxu0 %v4043_v41  ;;  %v4102_v40 = vld [vmem:[%s4246_s25 + $0x6b8] sm:$0xff]   ;;  %v4103_v41 = vld [vmem:[%s4246_s25 + $0x670] sm:$0xff]  }
  0xa7   : > { %3712 = vmatprep.subr.bf16.mxu1 %v4044_v42  ;;  %v4104_v42 = vld [vmem:[%s4246_s25 + $0x6f0] sm:$0xff]  }
  0xa9   : > { %3691 = vmatpush3.bf16.msra.mxu0 %v4045_v43  ;;  %v4105_v43 = vld [vmem:[%s4246_s25 + $0x630] sm:$0xff]  }
  0xaa   : > { %3713 = vmatpush3.bf16.msra.mxu1 %v4046_v44  ;;  %3692 = vmatprep.subr.bf16.mxu0 %v4047_v45  ;;  %v4106_v44 = vld [vmem:[%s4246_s25 + $0x6b0] sm:$0xff]   ;;  %v4107_v45 = vld [vmem:[%s4246_s25 + $0x668] sm:$0xff]  }
  0xab   : > { %3714 = vmatprep.subr.bf16.mxu1 %v4048_v46  ;;  %v4108_v46 = vld [vmem:[%s4246_s25 + $0x6e8] sm:$0xff]  }
  0xad   : > { %3693 = vmatpush3.bf16.msra.mxu0 %v4049_v47  ;;  %v4109_v47 = vld [vmem:[%s4246_s25 + $0x628] sm:$0xff]  }
  0xae   : > { %3715 = vmatpush3.bf16.msra.mxu1 %v4050_v48  ;;  %3694 = vmatprep.subr.bf16.mxu0 %v4051_v49  ;;  %v4110_v48 = vld [vmem:[%s4246_s25 + $0x6a8] sm:$0xff]   ;;  %v4111_v49 = vld [vmem:[%s4246_s25 + $0x660] sm:$0xff]  }
  0xaf   : > { %3716 = vmatprep.subr.bf16.mxu1 %v4052_v50  ;;  %v4112_v50 = vld [vmem:[%s4246_s25 + $0x6e0] sm:$0xff]  }
  0xb1   : > { %3695 = vmatpush3.bf16.msra.mxu0 %v4053_v51  ;;  %v4113_v51 = vld [vmem:[%s4246_s25 + $0x620] sm:$0xff]  }
  0xb2   : > { %3717 = vmatpush3.bf16.msra.mxu1 %v4054_v52  ;;  %3696 = vmatprep.subr.bf16.mxu0 %v4055_v53  ;;  %v4114_v52 = vld [vmem:[%s4246_s25 + $0x6a0] sm:$0xff]   ;;  %v4115_v53 = vld [vmem:[%s4246_s25 + $0x658] sm:$0xff]  }
  0xb3   : > { %3718 = vmatprep.subr.bf16.mxu1 %v4056_v54  ;;  %v4116_v54 = vld [vmem:[%s4246_s25 + $0x6d8] sm:$0xff]  }
  0xb5   : > { %3697 = vmatpush3.bf16.msra.mxu0 %v4057_v55  ;;  %v4117_v55 = vld [vmem:[%s4246_s25 + $0x618] sm:$0xff]  }
  0xb6   : > { %3719 = vmatpush3.bf16.msra.mxu1 %v4058_v56  ;;  %3726 = vmatprep.subr.bf16.mxu0 %v4063_v63  ;;  %v4118_v56 = vld [vmem:[%s4246_s25 + $0x698] sm:$0xff]   ;;  %v4125_v63 = vld [vmem:[%s4246_s25 + $0x608] sm:$0xff]  }
  0xb7   : > { %3748 = vmatprep.subr.bf16.mxu1 %v4064_v0  ;;  %v4126_v0 = vld [vmem:[%s4246_s25 + $0x688] sm:$0xff]  }
  0xb8   : > { %2795 = vmatmul.mubr.bf16.vlgmr.msra.gmra.mxu0 %v3229_v58  ;;  %v4120_v58 = vld [vmem:[%s4246_s25 + $0x6d0] sm:$0xff]  }
  0xb9   : > { %2835 = vmatmul.mubr.bf16.vlgmr.msra.gmra.mxu1 %v3231_v61  ;;  %3727 = vmatpush3.bf16.msra.mxu0 %v4065_v1  ;;  %v4123_v61 = vld [vmem:[%s4246_s25 + $0x648] sm:$0xff]   ;;  %v4127_v1 = vld [vmem:[%s4246_s25 + $0x640] sm:$0xff]  }
  0xba   : > { %3749 = vmatpush3.bf16.msra.mxu1 %v4066_v2  ;;  %3728 = vmatprep.subr.bf16.mxu0 %v4067_v3  ;;  %v4128_v2 = vld [vmem:[%s4246_s25 + $0x6c0] sm:$0xff]  }
  0xbb   : > { %3750 = vmatprep.subr.bf16.mxu1 %v4068_v4  ;;  %2874 = vmatprep.mubr.bf16.mxu0 %v3234_v34  ;;  %v4129_v3 = vld [vmem:[%s4246_s25 + $0x600] sm:$0xff]  }
  0xbc   : > { %2914 = vmatprep.mubr.bf16.mxu1 %v3236_v36  ;;  %v4130_v4 = vld [vmem:[%s4246_s25 + $0x680] sm:$0xff]  }
  0xbd   : > { %3729 = vmatpush3.bf16.msra.mxu0 %v4069_v5  ;;  %v278_v5 = vld [vmem:[%s4241_s21 + $0x60] sm:$0xff] }
  0xbe   : > { %3751 = vmatpush3.bf16.msra.mxu1 %v4070_v6  ;;  %3730 = vmatprep.subr.bf16.mxu0 %v4071_v7  ;;  %v279_v6 = vld [vmem:[%s4241_s21 + $0x68] sm:$0xff]  ;;  %v4147_v34 = vld [vmem:[%s4246_s25 + $0x760] sm:$0xff]  }
  0xbf   : > { %3752 = vmatprep.subr.bf16.mxu1 %v4072_v8  ;;  %v4149_v36 = vld [vmem:[%s4246_s25 + $0x720] sm:$0xff]  }
  0xc1   : > { %3731 = vmatpush3.bf16.msra.mxu0 %v4073_v9  ;;  %v3237_v9 = vcombine.low %v278_v5, %v278_v5 }
  0xc2   : > { %3753 = vmatpush3.bf16.msra.mxu1 %v4074_v10  ;;  %3732 = vmatprep.subr.bf16.mxu0 %v4075_v11  ;;  %v3238_v10 = vcombine.high %v278_v5, %v278_v5  ;;  %v3239_v11 = vcombine.low %v279_v6, %v279_v6 }
  0xc3   : > { %3754 = vmatprep.subr.bf16.mxu1 %v4076_v12  ;;  %v4135_v12 = vld [vmem:[%s4246_s25 + $0x778] sm:$0xff]  }
  0xc5   : > { %3733 = vmatpush3.bf16.msra.mxu0 %v4077_v13  ;;  %v3240_v13 = vcombine.high %v279_v6, %v279_v6 }
  0xc6   : > { %3755 = vmatpush3.bf16.msra.mxu1 %v4078_v14  ;;  %3734 = vmatprep.subr.bf16.mxu0 %v4079_v15  ;;  %v4136_v14 = vld [vmem:[%s4246_s25 + $0x7f8] sm:$0xff]  }
  0xc7   : > { %3756 = vmatprep.subr.bf16.mxu1 %v4080_v16 }
  0xc9   : > { %3735 = vmatpush3.bf16.msra.mxu0 %v4081_v17  ;;  %v4137_v17 = vld [vmem:[%s4246_s25 + $0x738] sm:$0xff]  }
  0xca   : > { %3757 = vmatpush3.bf16.msra.mxu1 %v4082_v18  ;;  %3736 = vmatprep.subr.bf16.mxu0 %v4083_v19 }
  0xcb   : > { %3758 = vmatprep.subr.bf16.mxu1 %v4084_v20  ;;  %v4138_v20 = vld [vmem:[%s4246_s25 + $0x7b8] sm:$0xff]  }
  0xcd   : > { %3737 = vmatpush3.bf16.msra.mxu0 %v4085_v21 }
  0xce   : > { %3759 = vmatpush3.bf16.msra.mxu1 %v4086_v22  ;;  %3738 = vmatprep.subr.bf16.mxu0 %v4087_v23 }
  0xcf   : > { %3760 = vmatprep.subr.bf16.mxu1 %v4088_v24  ;;  %v4139_v24 = vld [vmem:[%s4246_s25 + $0x770] sm:$0xff]  }
  0xd1   : > { %3739 = vmatpush3.bf16.msra.mxu0 %v4089_v25  ;;  %v4140_v25 = vld [vmem:[%s4246_s25 + $0x7f0] sm:$0xff]  }
  0xd2   : > { %3761 = vmatpush3.bf16.msra.mxu1 %v4090_v26  ;;  %3740 = vmatprep.subr.bf16.mxu0 %v4091_v27 }
  0xd3   : > { %3762 = vmatprep.subr.bf16.mxu1 %v4092_v28  ;;  %v4141_v28 = vld [vmem:[%s4246_s25 + $0x730] sm:$0xff]  }
  0xd5   : > { %3741 = vmatpush3.bf16.msra.mxu0 %v4093_v29  ;;  %v4142_v29 = vld [vmem:[%s4246_s25 + $0x7b0] sm:$0xff]  }
  0xd6   : > { %3763 = vmatpush3.bf16.msra.mxu1 %v4094_v30  ;;  %3770 = vmatprep.subr.bf16.mxu0 %v4099_v37  ;;  %v4143_v30 = vld [vmem:[%s4246_s25 + $0x768] sm:$0xff]   ;;  %v4150_v37 = vld [vmem:[%s4246_s25 + $0x7a0] sm:$0xff]  }
  0xd7   : > { %3792 = vmatprep.subr.bf16.mxu1 %v4100_v38  ;;  %v4151_v38 = vld [vmem:[%s4246_s25 + $0x758] sm:$0xff]  }
  0xd8   : > { %2875 = vmatmul.mubr.bf16.vlgmr.msra.gmra.mxu0 %v3233_v33  ;;  %v4146_v33 = vld [vmem:[%s4246_s25 + $0x7a8] sm:$0xff]  }
  0xd9   : > { %2915 = vmatmul.mubr.bf16.vlgmr.msra.gmra.mxu1 %v3235_v35  ;;  %3771 = vmatpush3.bf16.msra.mxu0 %v4101_v39  ;;  %v4148_v35 = vld [vmem:[%s4246_s25 + $0x7e0] sm:$0xff]   ;;  %v4152_v39 = vld [vmem:[%s4246_s25 + $0x7d8] sm:$0xff]  }
  0xda   : > { %3793 = vmatpush3.bf16.msra.mxu1 %v4102_v40  ;;  %3772 = vmatprep.subr.bf16.mxu0 %v4103_v41  ;;  %v4153_v40 = vld [vmem:[%s4246_s25 + $0x718] sm:$0xff]  }
  0xdb   : > { %3794 = vmatprep.subr.bf16.mxu1 %v4104_v42  ;;  %2954 = vmatprep.mubr.bf16.mxu0 %v3238_v10  ;;  %v4154_v41 = vld [vmem:[%s4246_s25 + $0x798] sm:$0xff]   ;;  %v4155_v42 = vld [vmem:[%s4246_s25 + $0x750] sm:$0xff]  }
  0xdc   : > { %2994 = vmatprep.mubr.bf16.mxu1 %v3240_v13 }
  0xdd   : > { %3773 = vmatpush3.bf16.msra.mxu0 %v4105_v43  ;;  %v4156_v43 = vld [vmem:[%s4246_s25 + $0x7d0] sm:$0xff]  }
  0xde   : > { %3795 = vmatpush3.bf16.msra.mxu1 %v4106_v44  ;;  %3774 = vmatprep.subr.bf16.mxu0 %v4107_v45  ;;  %v4157_v44 = vld [vmem:[%s4246_s25 + $0x710] sm:$0xff]  }
  0xdf   : > { %3796 = vmatprep.subr.bf16.mxu1 %v4108_v46  ;;  %v4158_v45 = vld [vmem:[%s4246_s25 + $0x790] sm:$0xff]   ;;  %v4159_v46 = vld [vmem:[%s4246_s25 + $0x748] sm:$0xff]  }
  0xe1   : > { %3775 = vmatpush3.bf16.msra.mxu0 %v4109_v47  ;;  %v4160_v47 = vld [vmem:[%s4246_s25 + $0x7c8] sm:$0xff]  }
  0xe2   : > { %3797 = vmatpush3.bf16.msra.mxu1 %v4110_v48  ;;  %3776 = vmatprep.subr.bf16.mxu0 %v4111_v49  ;;  %v4161_v48 = vld [vmem:[%s4246_s25 + $0x708] sm:$0xff]  }
  0xe3   : > { %3798 = vmatprep.subr.bf16.mxu1 %v4112_v50  ;;  %v4162_v49 = vld [vmem:[%s4246_s25 + $0x788] sm:$0xff]   ;;  %v4163_v50 = vld [vmem:[%s4246_s25 + $0x740] sm:$0xff]  }
  0xe5   : > { %3777 = vmatpush3.bf16.msra.mxu0 %v4113_v51  ;;  %v4164_v51 = vld [vmem:[%s4246_s25 + $0x7c0] sm:$0xff]  }
  0xe6   : > { %3799 = vmatpush3.bf16.msra.mxu1 %v4114_v52  ;;  %3778 = vmatprep.subr.bf16.mxu0 %v4115_v53  ;;  %v4165_v52 = vld [vmem:[%s4246_s25 + $0x700] sm:$0xff]  }
  0xe7   : > { %3800 = vmatprep.subr.bf16.mxu1 %v4116_v54  ;;  %v4166_v53 = vld [vmem:[%s4246_s25 + $0x780] sm:$0xff]   ;;  %v280_v54 = vld [vmem:[%s4241_s21 + $0x70] sm:$0xff] }
  0xe9   : > { %3779 = vmatpush3.bf16.msra.mxu0 %v4117_v55  ;;  %v3241_v55 = vcombine.low %v280_v54, %v280_v54 }
  0xea   : > { %3801 = vmatpush3.bf16.msra.mxu1 %v4118_v56  ;;  %3780 = vmatprep.subr.bf16.mxu0 %v4119_v57  ;;  %v3242_v56 = vcombine.high %v280_v54, %v280_v54  ;;  %v281_v57 = vld [vmem:[%s4241_s21 + $0x78] sm:$0xff] }
  0xeb   : > { %3802 = vmatprep.subr.bf16.mxu1 %v4120_v58 }
  0xed   : > { %3781 = vmatpush3.bf16.msra.mxu0 %v4121_v59 }
  0xee   : > { %3803 = vmatpush3.bf16.msra.mxu1 %v4122_v60  ;;  %3782 = vmatprep.subr.bf16.mxu0 %v4123_v61  ;;  %v3243_v60 = vcombine.low %v281_v57, %v281_v57  ;;  %v3244_v61 = vcombine.high %v281_v57, %v281_v57 }
  0xef   : > { %3804 = vmatprep.subr.bf16.mxu1 %v4124_v62 }
  0xf1   : > { %3783 = vmatpush3.bf16.msra.mxu0 %v4125_v63 }
  0xf2   : > { %3805 = vmatpush3.bf16.msra.mxu1 %v4126_v0  ;;  %3784 = vmatprep.subr.bf16.mxu0 %v4127_v1 }
  0xf3   : > { %3806 = vmatprep.subr.bf16.mxu1 %v4128_v2 }
  0xf5   : > { %3785 = vmatpush3.bf16.msra.mxu0 %v4129_v3 }
  0xf6   : > { %3807 = vmatpush3.bf16.msra.mxu1 %v4130_v4  ;;  %3814 = vmatprep.subr.bf16.mxu0 %v4135_v12 }
  0xf7   : > { %3836 = vmatprep.subr.bf16.mxu1 %v4136_v14 }
  0xf8   : > { %v3522_v7 = vpop.f32.mrf.mxu0  ;;  %2955 = vmatmul.mubr.bf16.vlgmr.msra.gmra.mxu0 %v3237_v9 }
  0xf9   : > { %v3544_v8 = vpop.f32.mrf.mxu1  ;;  %2995 = vmatmul.mubr.bf16.vlgmr.msra.gmra.mxu1 %v3239_v11  ;;  %3815 = vmatpush3.bf16.msra.mxu0 %v4137_v17 }
  0xfa   : > { %v3523_v15 = vpop.f32.mrf.mxu0  ;;  %3837 = vmatpush3.bf16.msra.mxu1 %v4138_v20  ;;  %3816 = vmatprep.subr.bf16.mxu0 %v4139_v24 }
  0xfb   : > { %v3545_v16 = vpop.f32.mrf.mxu1  ;;  %v3524_v18 = vadd.f32 %v3523_v15, %v3522_v7  ;;  %3838 = vmatprep.subr.bf16.mxu1 %v4140_v25  ;;  %3034 = vmatprep.mubr.bf16.mxu0 %v3242_v56 }
  0xfc   : > { %v3546_v19 = vadd.f32 %v3545_v16, %v3544_v8  ;;  %v3525_v21 = vpop.f32.mrf.mxu0  ;;  %3074 = vmatprep.mubr.bf16.mxu1 %v3244_v61 }
  0xfd   : > { %v3547_v22 = vpop.f32.mrf.mxu1  ;;  %3817 = vmatpush3.bf16.msra.mxu0 %v4141_v28 }
  0xfe   : > { %v4491_v23 = vadd.f32 %v3546_v19, %v3524_v18  ;;  %v3526_v26 = vpop.f32.mrf.mxu0  ;;  %3839 = vmatpush3.bf16.msra.mxu1 %v4142_v29  ;;  %3818 = vmatprep.subr.bf16.mxu0 %v4143_v30 }
  0xff   : > { %v3548_v27 = vpop.f32.mrf.mxu1  ;;  %3840 = vmatprep.subr.bf16.mxu1 %v4144_v31 }
 0x101   : > { %3819 = vmatpush3.bf16.msra.mxu0 %v4145_v32 }
 0x102   : > { %3841 = vmatpush3.bf16.msra.mxu1 %v4146_v33  ;;  %3820 = vmatprep.subr.bf16.mxu0 %v4147_v34 }
 0x103   : > { %3842 = vmatprep.subr.bf16.mxu1 %v4148_v35 }
 0x105   : > { %3821 = vmatpush3.bf16.msra.mxu0 %v4149_v36 }
 0x106   : > { %3843 = vmatpush3.bf16.msra.mxu1 %v4150_v37  ;;  %3822 = vmatprep.subr.bf16.mxu0 %v4151_v38 }
 0x107   : > { %3844 = vmatprep.subr.bf16.mxu1 %v4152_v39 }
 0x109   : > { %3823 = vmatpush3.bf16.msra.mxu0 %v4153_v40 }
 0x10a   : > { %3845 = vmatpush3.bf16.msra.mxu1 %v4154_v41  ;;  %3824 = vmatprep.subr.bf16.mxu0 %v4155_v42 }
 0x10b   : > { %3846 = vmatprep.subr.bf16.mxu1 %v4156_v43 }
 0x10d   : > { %3825 = vmatpush3.bf16.msra.mxu0 %v4157_v44 }
 0x10e   : > { %3847 = vmatpush3.bf16.msra.mxu1 %v4158_v45  ;;  %3826 = vmatprep.subr.bf16.mxu0 %v4159_v46 }
 0x10f   : > { %3848 = vmatprep.subr.bf16.mxu1 %v4160_v47 }
 0x111   : > { %3827 = vmatpush3.bf16.msra.mxu0 %v4161_v48 }
 0x112   : > { %3849 = vmatpush3.bf16.msra.mxu1 %v4162_v49  ;;  %3828 = vmatprep.subr.bf16.mxu0 %v4163_v50 }
 0x113   : > { %3850 = vmatprep.subr.bf16.mxu1 %v4164_v51 }
 0x115   : > { %3829 = vmatpush3.bf16.msra.mxu0 %v4165_v52 }
 0x116   : > { %3851 = vmatpush3.bf16.msra.mxu1 %v4166_v53 }
 0x118   : > { %v3566_v58 = vpop.f32.mrf.mxu0  ;;  %3035 = vmatmul.mubr.bf16.vlgmr.msra.gmra.mxu0 %v3241_v55 }
 0x119   : > { %v3588_v59 = vpop.f32.mrf.mxu1  ;;  %3075 = vmatmul.mubr.bf16.vlgmr.msra.gmra.mxu1 %v3243_v60 }
 0x11a   : > { %v3567_v62 = vpop.f32.mrf.mxu0 }
 0x11b   : > { %v3589_v63 = vpop.f32.mrf.mxu1  ;;  %v3568_v0 = vadd.f32 %v3567_v62, %v3566_v58 }
 0x11c   : > { %v3590_v1 = vadd.f32 %v3589_v63, %v3588_v59  ;;  %v3569_v2 = vpop.f32.mrf.mxu0 }
 0x11d   : > { %v3591_v3 = vpop.f32.mrf.mxu1  ;;  %v2557_v4 = vadd.f32 %v3568_v0, %v4491_v23 }
 0x11e   : > { %v3570_v5 = vpop.f32.mrf.mxu0 }
 0x11f   : > { %v3592_v6 = vpop.f32.mrf.mxu1  ;;  %v2597_v7 = vadd.f32 %v3590_v1, %v2557_v4 }
 0x138   : > { %v3610_v8 = vpop.f32.mrf.mxu0 }
 0x139   : > { %v3632_v9 = vpop.f32.mrf.mxu1 }
 0x13a   : > { %v3611_v10 = vpop.f32.mrf.mxu0 }
 0x13b   : > { %v3612_v11 = vadd.f32 %v3611_v10, %v3610_v8  ;;  %v3633_v12 = vpop.f32.mrf.mxu1 }
 0x13c   : > { %v3634_v13 = vadd.f32 %v3633_v12, %v3632_v9  ;;  %v3613_v14 = vpop.f32.mrf.mxu0 }
 0x13d   : > { %v2637_v15 = vadd.f32 %v3612_v11, %v2597_v7  ;;  %v3635_v16 = vpop.f32.mrf.mxu1 }
 0x13e   : > { %v3614_v17 = vpop.f32.mrf.mxu0 }
 0x13f   : > { %v2677_v18 = vadd.f32 %v3634_v13, %v2637_v15  ;;  %v3636_v19 = vpop.f32.mrf.mxu1  ;;  %v265_v13 = vld [vmem:[#allocation2] sm:$0xff] }
 0x158   : > { %v3654_v20 = vpop.f32.mrf.mxu0 }
 0x159   : > { %v3676_v21 = vpop.f32.mrf.mxu1 }
 0x15a   : > { %v3655_v22 = vpop.f32.mrf.mxu0 }
 0x15b   : > { %v3656_v24 = vadd.f32 %v3655_v22, %v3654_v20  ;;  %v3677_v23 = vpop.f32.mrf.mxu1 }
 0x15c   : > { %v3678_v25 = vadd.f32 %v3677_v23, %v3676_v21  ;;  %v3657_v26 = vpop.f32.mrf.mxu0 }
 0x15d   : > { %v2717_v27 = vadd.f32 %v3656_v24, %v2677_v18  ;;  %v3679_v28 = vpop.f32.mrf.mxu1 }
 0x15e   : > { %v3658_v29 = vpop.f32.mrf.mxu0 }
 0x15f   : > { %v2757_v30 = vadd.f32 %v3678_v25, %v2717_v27  ;;  %v3680_v31 = vpop.f32.mrf.mxu1 }
 0x178   : > { %v3698_v32 = vpop.f32.mrf.mxu0 }
 0x179   : > { %v3720_v33 = vpop.f32.mrf.mxu1 }
 0x17a   : > { %v3699_v34 = vpop.f32.mrf.mxu0 }
 0x17b   : > { %v3721_v35 = vpop.f32.mrf.mxu1  ;;  %v3700_v36 = vadd.f32 %v3699_v34, %v3698_v32 }
 0x17c   : > { %v3722_v37 = vadd.f32 %v3721_v35, %v3720_v33  ;;  %v3701_v38 = vpop.f32.mrf.mxu0 }
 0x17d   : > { %v3723_v39 = vpop.f32.mrf.mxu1  ;;  %v2797_v40 = vadd.f32 %v3700_v36, %v2757_v30 }
 0x17e   : > { %v3702_v41 = vpop.f32.mrf.mxu0 }
 0x17f   : > { %v3724_v42 = vpop.f32.mrf.mxu1  ;;  %v2837_v43 = vadd.f32 %v3722_v37, %v2797_v40 }
 0x198   : > { %v3742_v44 = vpop.f32.mrf.mxu0 }
 0x199   : > { %v3764_v45 = vpop.f32.mrf.mxu1 }
 0x19a   : > { %v3743_v46 = vpop.f32.mrf.mxu0 }
 0x19b   : > { %v3765_v47 = vpop.f32.mrf.mxu1  ;;  %v3744_v60 = vadd.f32 %v3743_v46, %v3742_v44 }
 0x19c   : > { %v3745_v48 = vpop.f32.mrf.mxu0  ;;  %v3766_v62 = vadd.f32 %v3765_v47, %v3764_v45 }
 0x19d   : > { %v3767_v49 = vpop.f32.mrf.mxu1  ;;  %v2877_v61 = vadd.f32 %v3744_v60, %v2837_v43 }
 0x19e   : > { %v3746_v50 = vpop.f32.mrf.mxu0 }
 0x19f   : > { %v3768_v51 = vpop.f32.mrf.mxu1  ;;  %v2917_v0 = vadd.f32 %v3766_v62, %v2877_v61 }
 0x1b8   : > { %v3786_v52 = vpop.f32.mrf.mxu0 }
 0x1b9   : > { %v3808_v53 = vpop.f32.mrf.mxu1 }
 0x1ba   : > { %v3787_v54 = vpop.f32.mrf.mxu0 }
 0x1bb   : > { %v3809_v55 = vpop.f32.mrf.mxu1  ;;  %v3788_v63 = vadd.f32 %v3787_v54, %v3786_v52 }
 0x1bc   : > { %v3789_v56 = vpop.f32.mrf.mxu0  ;;  %v3810_v2 = vadd.f32 %v3809_v55, %v3808_v53 }
 0x1bd   : > { %v3811_v57 = vpop.f32.mrf.mxu1  ;;  %v2957_v1 = vadd.f32 %v3788_v63, %v2917_v0 }
 0x1be   : > { %v3790_v58 = vpop.f32.mrf.mxu0 }
 0x1bf   : > { %v3812_v59 = vpop.f32.mrf.mxu1  ;;  %v2997_v7 = vadd.f32 %v3810_v2, %v2957_v1 }
 0x1d8   : > { %v3830_v3 = vpop.f32.mrf.mxu0 }
 0x1d9   : > { %v3852_v4 = vpop.f32.mrf.mxu1 }
 0x1da   : > { %v3831_v5 = vpop.f32.mrf.mxu0 }
 0x1db   : > { %v3853_v6 = vpop.f32.mrf.mxu1  ;;  %v3832_v8 = vadd.f32 %v3831_v5, %v3830_v3 }
 0x1dc   : > { %v3833_v9 = vpop.f32.mrf.mxu0  ;;  %v3854_v12 = vadd.f32 %v3853_v6, %v3852_v4 }
 0x1dd   : > { %v3855_v10 = vpop.f32.mrf.mxu1  ;;  %v3037_v11 = vadd.f32 %v3832_v8, %v2997_v7 }
 0x1de   : > { %v3834_v14 = vpop.f32.mrf.mxu0 }
 0x1df   : > { %v3856_v15 = vpop.f32.mrf.mxu1  ;;  %v3077_v16 = vadd.f32 %v3854_v12, %v3037_v11  ;;  %3087 = sbr.rel (%p3501_p7) target bundleno = 494 (0x1ee), region = 40 }
 0x1e1   : > { %v3082_v17 = vadd.f32 %v3077_v16, %v265_v13 }
 0x1e3   : > { %3083 = vst [vmem:[#allocation2] sm:$0xff] %v3082_v17 }
 0x1e4   : > { %v3502_v19 = vld [vmem:[%s4542_s2] ss:$0 sm:$0xff] }
 0x1ea   : > { %v3088_v18 = vld [vmem:[#allocation2] sm:$0xff] }
 0x1eb   : > { %v3096_v20 = vadd.f32 %v3502_v19, %v3088_v18 }
 0x1ed   : > { %3097 = vst [vmem:[%s4543_s3] sm:$0xff] %v3096_v20 }
 0x1ee PF: > { %s13_s14 = sadd.s32 1, %s4193_s14   ;;  %s4544_s12 = smov %s4189_s13 }
 0x1ef   : > { %p10_p8 = scmp.ge.s32.totalorder %s13_s14, 4   ;;  %s4545_s13 = smov %s4547_s15 }
 0x1f1   :  { %12 = sbr.rel (!%p10_p8) target bundleno = 2 (0x2), region = 76 }

</bundles_post_ra>
